<compile_context>
chip_gen: v5e
topology: v5e:2x2
jax: 0.10.0
libtpu: 0.0.40
codegen_flags: <defaults>
</compile_context>

<pallas_src>
import functools

import jax
import jax.numpy as jnp
import numpy as np
from jax import lax
from jax.experimental import pallas as pl
from jax.experimental.pallas import tpu as pltpu

_B_TILE = 8          # batch rows per block (one f32 sublane tile)
_TB = 8              # timesteps per prologue/epilogue matmul block (M = _TB * _B_TILE)


def _round_up(x, m):
    return (x + m - 1) // m * m


# ----------------------------------------------------------------------------- kernel
def _lstm_decoder_kernel(x_ref, wih_ref, whh_ref, b_ref, wlin_ref, blin_ref,
                         out_ref, hfin_ref,
                         h_sc, c_sc, gx_sc, hall_sc, *, t_last):
    """One grid step == one (batch-tile, time-chunk) block.

    x_ref   : (T, B, L)      time-major input chunk
    wih_ref : (L, 4*Hp)      input->gates weights, gate-major, each gate padded to Hp
    whh_ref : (Hp, 4*Hp)     hidden->gates weights (same layout)
    b_ref   : (1, 4*Hp)      combined bias (b_ih + b_hh)
    wlin_ref: (Hp, Op)       output projection weight
    blin_ref: (1, Op)        output projection bias
    out_ref : (T, B, Op)     decoded outputs for this chunk
    hfin_ref: (B, Hp)        final hidden state (written on the last real timestep)
    h_sc/c_sc: (B, Hp)       recurrent carry (persists across the time-chunk grid axis)
    gx_sc   : (T, B, 4*Hp)   precomputed input gates for the chunk
    hall_sc : (T, B, Hp)     per-step hidden states for the chunk
    """
    c = pl.program_id(1)                 # chunk index along the sequential time axis

    T, B, L = x_ref.shape
    Hp = h_sc.shape[1]
    Op = out_ref.shape[2]
    n_blk = T // _TB

    @pl.when(c == 0)
    def _():
        h_sc[...] = jnp.zeros_like(h_sc)
        c_sc[...] = jnp.zeros_like(c_sc)

    # ---- prologue: hoisted input->gates matmul for the whole chunk (M = _TB*B rows) ----
    for blk in range(n_blk):
        xb = x_ref[blk * _TB:(blk + 1) * _TB].reshape(_TB * B, L)
        gx = (jnp.dot(xb, wih_ref[...], preferred_element_type=jnp.float32)
              + b_ref[...])
        gx_sc[blk * _TB:(blk + 1) * _TB] = gx.reshape(_TB, B, 4 * Hp)

    # ---- serial recurrence: only h_prev @ W_hh is on the critical path ----
    h = h_sc[...]
    cell = c_sc[...]
    h_last = h
    for t in range(T):                   # static unroll (T is a Python int)
        g = gx_sc[t] + jnp.dot(h, whh_ref[...], preferred_element_type=jnp.float32)
        i_g = jax.nn.sigmoid(g[:, 0 * Hp:1 * Hp])     # 128-lane aligned gate slices
        f_g = jax.nn.sigmoid(g[:, 1 * Hp:2 * Hp])
        g_g = jnp.tanh(g[:, 2 * Hp:3 * Hp])
        o_g = jax.nn.sigmoid(g[:, 3 * Hp:4 * Hp])
        cell = f_g * cell + i_g * g_g
        h = o_g * jnp.tanh(cell)
        hall_sc[t] = h
        if t == t_last:                  # static: position of the last *real* timestep
            h_last = h

    h_sc[...] = h
    c_sc[...] = cell

    @pl.when(c == pl.num_programs(1) - 1)
    def _():
        hfin_ref[...] = h_last

    # ---- epilogue: hoisted output projection, lane-dense (Op multiple of 128) stores ----
    for blk in range(n_blk):
        hb = hall_sc[blk * _TB:(blk + 1) * _TB].reshape(_TB * B, Hp)
        pr = (jnp.dot(hb, wlin_ref[...], preferred_element_type=jnp.float32)
              + blin_ref[...])
        out_ref[blk * _TB:(blk + 1) * _TB] = pr.reshape(_TB, B, Op)


# ----------------------------------------------------------------------------- wrapper
def lstm_decoder_forward(x, params, *, chunk=None):
    """Forward pass matching LSTMDecoder.forward.

    x: (n_samples, seq_len, latent_size) or (seq_len, latent_size)
    returns (out, h): out (..., seq_len, output_size), h (..., hidden_size)
    """
    squeeze_batch = (x.ndim == 2)
    if squeeze_batch:
        x = x[None]

    B, S, L = x.shape
    H = params["hidden_size"]
    O = params["output_size"]
    Hp = params["w_hh"].shape[0]
    Op = params["w_lin"].shape[1]

    Bp = _round_up(B, _B_TILE)
    if chunk is None:
        chunk = min(32, _round_up(S, _TB))
    chunk = _round_up(chunk, _TB)
    Sp = _round_up(S, chunk)
    t_last = (S - 1) % chunk             # local index of the last real step (last chunk)

    # time-major layout + zero padding of batch/time so the serial loop sees contiguous
    # (B, ·) rows per step.  TODO(synk): for very large S*B*L the transpose could be
    # folded into the gate precompute to save an HBM pass.
    x_tm = jnp.transpose(x.astype(jnp.float32), (1, 0, 2))
    x_tm = jnp.pad(x_tm, ((0, Sp - S), (0, Bp - B), (0, 0)))

    n_bt = Bp // _B_TILE
    n_ct = Sp // chunk

    kernel = functools.partial(_lstm_decoder_kernel, t_last=t_last)

    out_tm, h_fin = pl.pallas_call(
        kernel,
        out_shape=(
            jax.ShapeDtypeStruct((Sp, Bp, Op), jnp.float32),
            jax.ShapeDtypeStruct((Bp, Hp), jnp.float32),
        ),
        grid_spec=pltpu.PrefetchScalarGridSpec(
            num_scalar_prefetch=0,
            grid=(n_bt, n_ct),           # (parallel batch tiles, sequential time chunks)
            in_specs=[
                pl.BlockSpec((chunk, _B_TILE, L), lambda b, c: (c, b, 0)),   # x chunk
                pl.BlockSpec((L, 4 * Hp), lambda b, c: (0, 0)),              # w_ih
                pl.BlockSpec((Hp, 4 * Hp), lambda b, c: (0, 0)),             # w_hh
                pl.BlockSpec((1, 4 * Hp), lambda b, c: (0, 0)),              # bias
                pl.BlockSpec((Hp, Op), lambda b, c: (0, 0)),                 # w_lin
                pl.BlockSpec((1, Op), lambda b, c: (0, 0)),                  # b_lin
            ],
            out_specs=[
                pl.BlockSpec((chunk, _B_TILE, Op), lambda b, c: (c, b, 0)),  # outputs
                pl.BlockSpec((_B_TILE, Hp), lambda b, c: (b, 0)),            # final h
            ],
            scratch_shapes=[
                pltpu.VMEM((_B_TILE, Hp), jnp.float32),              # h carry
                pltpu.VMEM((_B_TILE, Hp), jnp.float32),              # c carry
                pltpu.VMEM((chunk, _B_TILE, 4 * Hp), jnp.float32),   # precomputed gates
                pltpu.VMEM((chunk, _B_TILE, Hp), jnp.float32),       # per-step hiddens
            ],
        ),
        compiler_params=pltpu.CompilerParams(
            dimension_semantics=("parallel", "arbitrary")),
    )(x_tm, params["w_ih"], params["w_hh"], params["b"],
      params["w_lin"], params["b_lin"])

    out = jnp.transpose(out_tm[:S, :B, :O], (1, 0, 2))    # (B, S, O)
    h = h_fin[:B, :H]                                     # (B, H)

    if squeeze_batch:
        out = out[0]                     # (S, O)
        h = h[0]                         # (H,)  == torch h.squeeze(0) for unbatched input
    return out, h


# ----------------------------------------------------------------------------- params
def init_raw_params(key, output_size, hidden_size, latent_size):
    """PyTorch-layout params with U(-1/sqrt(H), 1/sqrt(H)) init (like nn.LSTM/nn.Linear)."""
    k = jax.random.split(key, 6)
    s = 1.0 / np.sqrt(hidden_size)
    return {
        "w_ih": jax.random.uniform(k[0], (4 * hidden_size, latent_size), jnp.float32, -s, s),
        "w_hh": jax.random.uniform(k[1], (4 * hidden_size, hidden_size), jnp.float32, -s, s),
        "b_ih": jax.random.uniform(k[2], (4 * hidden_size,), jnp.float32, -s, s),
        "b_hh": jax.random.uniform(k[3], (4 * hidden_size,), jnp.float32, -s, s),
        "w_lin": jax.random.uniform(k[4], (output_size, hidden_size), jnp.float32, -s, s),
        "b_lin": jax.random.uniform(k[5], (output_size,), jnp.float32, -s, s),
    }


def pack_params(raw):
    """Convert PyTorch-layout params to the kernel's gate-major, 128-padded layout."""
    w_ih, w_hh = raw["w_ih"], raw["w_hh"]          # (4H, L), (4H, H)
    b_ih, b_hh = raw["b_ih"], raw["b_hh"]          # (4H,)
    w_lin, b_lin = raw["w_lin"], raw["b_lin"]      # (O, H), (O,)
    H = w_hh.shape[1]
    L = w_ih.shape[1]
    O = w_lin.shape[0]
    Hp = _round_up(H, 128)
    Op = _round_up(O, 128)

    def gate_major(w):                              # (4H, K) -> (K, 4*Hp)
        w4 = w.reshape(4, H, -1)                    # (4, H, K), PyTorch gate order i,f,g,o
        w4 = jnp.pad(w4, ((0, 0), (0, Hp - H), (0, 0)))
        return jnp.transpose(w4, (2, 0, 1)).reshape(w.shape[1], 4 * Hp)

    wih_p = gate_major(w_ih)                                        # (L, 4Hp)
    whh_p = jnp.pad(gate_major(w_hh), ((0, Hp - H), (0, 0)))        # (Hp, 4Hp)
    b_p = jnp.pad((b_ih + b_hh).reshape(4, H),
                  ((0, 0), (0, Hp - H))).reshape(1, 4 * Hp)         # (1, 4Hp)
    wlin_p = jnp.pad(w_lin.T, ((0, Hp - H), (0, Op - O)))           # (Hp, Op)
    blin_p = jnp.pad(b_lin, (0, Op - O))[None, :]                   # (1, Op)

    return {
        "w_ih": wih_p.astype(jnp.float32),
        "w_hh": whh_p.astype(jnp.float32),
        "b": b_p.astype(jnp.float32),
        "w_lin": wlin_p.astype(jnp.float32),
        "b_lin": blin_p.astype(jnp.float32),
        "hidden_size": H,
        "output_size": O,
        "latent_size": L,
    }


# ----------------------------------------------------------------------------- JAX reference
def reference_forward(x, raw):
    """Pure-JAX reference (lax.scan) on the raw PyTorch-layout params."""
    squeeze_batch = (x.ndim == 2)
    if squeeze_batch:
        x = x[None]
    B, S, L = x.shape
    H = raw["w_hh"].shape[1]
    wih = raw["w_ih"].T
    whh = raw["w_hh"].T
    b = (raw["b_ih"] + raw["b_hh"])[None, :]

    def step(carry, x_t):
        h, c = carry
        gates = x_t @ wih + h @ whh + b
        i = jax.nn.sigmoid(gates[:, 0 * H:1 * H])
        f = jax.nn.sigmoid(gates[:, 1 * H:2 * H])
        g = jnp.tanh(gates[:, 2 * H:3 * H])
        o = jax.nn.sigmoid(gates[:, 3 * H:4 * H])
        c = f * c + i * g
        h = o * jnp.tanh(c)
        return (h, c), h

    init = (jnp.zeros((B, H), jnp.float32), jnp.zeros((B, H), jnp.float32))
    (h_fin, _), hs = lax.scan(step, init, jnp.transpose(x, (1, 0, 2)))
    out = jnp.transpose(hs, (1, 0, 2)) @ raw["w_lin"].T + raw["b_lin"]
    if squeeze_batch:
        out, h_fin = out[0], h_fin[0]
    return out, h_fin


# ----------------------------------------------------------------------------- main
if __name__ == "__main__":
    B, S = 2, 8
    latent_size, hidden_size, output_size = 16, 32, 20

    key = jax.random.PRNGKey(0)
    kx, kp = jax.random.split(key)
    x = jax.random.normal(kx, (B, S, latent_size), jnp.float32)

    raw = init_raw_params(kp, output_size, hidden_size, latent_size)
    params = pack_params(raw)

    out, h = lstm_decoder_forward(x, params)
    out, h = jax.block_until_ready(out), jax.block_until_ready(h)

    out_ref, h_ref = reference_forward(x, raw)
    np.testing.assert_allclose(np.asarray(out), np.asarray(out_ref), rtol=1e-5, atol=1e-5)
    np.testing.assert_allclose(np.asarray(h), np.asarray(h_ref), rtol=1e-5, atol=1e-5)

    assert out.shape == (B, S, output_size)
    assert h.shape == (B, hidden_size)
    print("KERNEL_OK")
</pallas_src>

<mosaic_0001>
module attributes {stable_mosaic.version = 11 : i64} {
  func.func @_lstm_decoder_kernel(%arg0: i32, %arg1: i32, %arg2: memref<8x8x16xf32, #tpu.memory_space<vmem>>, %arg3: memref<16x512xf32, #tpu.memory_space<vmem>>, %arg4: memref<128x512xf32, #tpu.memory_space<vmem>>, %arg5: memref<1x512xf32, #tpu.memory_space<vmem>>, %arg6: memref<128x128xf32, #tpu.memory_space<vmem>>, %arg7: memref<1x128xf32, #tpu.memory_space<vmem>>, %arg8: memref<8x8x128xf32, #tpu.memory_space<vmem>>, %arg9: memref<8x128xf32, #tpu.memory_space<vmem>>, %arg10: memref<8x128xf32, #tpu.memory_space<vmem>>, %arg11: memref<8x128xf32, #tpu.memory_space<vmem>>, %arg12: memref<8x8x512xf32, #tpu.memory_space<vmem>>, %arg13: memref<8x8x128xf32, #tpu.memory_space<vmem>>) attributes {dimension_semantics = [#tpu.dimension_semantics<parallel>, #tpu.dimension_semantics<arbitrary>], iteration_bounds = array<i64: 1, 1>, scalar_prefetch = 0 : i64, scratch_operands = 4 : i64, tpu.core_type = #tpu.core_type<tc>, window_params = [{transform_indices = @transform_0, window_bounds = array<i64: 8, 8, 16>}, {pipeline_mode = #tpu.pipeline_mode<synchronous>, transform_indices = @transform_1, window_bounds = array<i64: 16, 512>}, {pipeline_mode = #tpu.pipeline_mode<synchronous>, transform_indices = @transform_2, window_bounds = array<i64: 128, 512>}, {pipeline_mode = #tpu.pipeline_mode<synchronous>, transform_indices = @transform_3, window_bounds = array<i64: 1, 512>}, {pipeline_mode = #tpu.pipeline_mode<synchronous>, transform_indices = @transform_4, window_bounds = array<i64: 128, 128>}, {pipeline_mode = #tpu.pipeline_mode<synchronous>, transform_indices = @transform_5, window_bounds = array<i64: 1, 128>}, {transform_indices = @transform_6, window_bounds = array<i64: 8, 8, 128>}, {transform_indices = @transform_7, window_bounds = array<i64: 8, 128>}]} {
    %c0_i32 = arith.constant 0 : i32
    %0 = arith.cmpi eq, %arg1, %c0_i32 : i32
    %1 = arith.extui %0 : i1 to i32
    %c0_i32_0 = arith.constant 0 : i32
    %2 = arith.cmpi ne, %1, %c0_i32_0 : i32
    scf.if %2 {
      %cst_120 = arith.constant 0.000000e+00 : f32
      %292 = vector.broadcast %cst_120 : f32 to vector<8x128xf32>
      %c0_121 = arith.constant 0 : index
      %c0_122 = arith.constant 0 : index
      %293 = vector.load %arg10[%c0_121, %c0_122] : memref<8x128xf32, #tpu.memory_space<vmem>>, vector<8x128xf32>
      tpu.vector_store %arg10[%c0_121, %c0_122], %292 {strides = array<i32>} : memref<8x128xf32, #tpu.memory_space<vmem>>, vector<8x128xf32>,
      %cst_123 = arith.constant 0.000000e+00 : f32
      %294 = vector.broadcast %cst_123 : f32 to vector<8x128xf32>
      %c0_124 = arith.constant 0 : index
      %c0_125 = arith.constant 0 : index
      %295 = vector.load %arg11[%c0_124, %c0_125] : memref<8x128xf32, #tpu.memory_space<vmem>>, vector<8x128xf32>
      tpu.vector_store %arg11[%c0_124, %c0_125], %294 {strides = array<i32>} : memref<8x128xf32, #tpu.memory_space<vmem>>, vector<8x128xf32>,
    } else {
    }
    %c0 = arith.constant 0 : index
    %c0_1 = arith.constant 0 : index
    %c0_2 = arith.constant 0 : index
    %3 = vector.load %arg2[%c0, %c0_1, %c0_2] : memref<8x8x16xf32, #tpu.memory_space<vmem>>, vector<8x8x16xf32>
    %4 = vector.shape_cast %3 : vector<8x8x16xf32> to vector<64x16xf32>
    %c0_3 = arith.constant 0 : index
    %c0_4 = arith.constant 0 : index
    %5 = vector.load %arg3[%c0_3, %c0_4] : memref<16x512xf32, #tpu.memory_space<vmem>>, vector<16x512xf32>
    %cst = arith.constant dense<0.000000e+00> : vector<64x512xf32>
    %6 = tpu.matmul %4, %5, %cst {dimension_numbers = #tpu.dot_dimension_numbers<[1], [0], [0], [1], [0, 0, 1, 1], [], []>} : vector<64x16xf32>, vector<16x512xf32>, vector<64x512xf32> -> vector<64x512xf32>
    %c0_5 = arith.constant 0 : index
    %c0_6 = arith.constant 0 : index
    %7 = vector.load %arg5[%c0_5, %c0_6] : memref<1x512xf32, #tpu.memory_space<vmem>>, vector<1x512xf32>
    %8 = vector.broadcast %7 : vector<1x512xf32> to vector<64x512xf32>
    %9 = arith.addf %6, %8 : vector<64x512xf32>
    %10 = vector.shape_cast %9 : vector<64x512xf32> to vector<8x8x512xf32>
    %c0_7 = arith.constant 0 : index
    %c0_8 = arith.constant 0 : index
    %c0_9 = arith.constant 0 : index
    %11 = vector.load %arg12[%c0_7, %c0_8, %c0_9] : memref<8x8x512xf32, #tpu.memory_space<vmem>>, vector<8x8x512xf32>
    tpu.vector_store %arg12[%c0_7, %c0_8, %c0_9], %10 {strides = array<i32>} : memref<8x8x512xf32, #tpu.memory_space<vmem>>, vector<8x8x512xf32>,
    %c0_10 = arith.constant 0 : index
    %c0_11 = arith.constant 0 : index
    %12 = vector.load %arg10[%c0_10, %c0_11] : memref<8x128xf32, #tpu.memory_space<vmem>>, vector<8x128xf32>
    %c0_12 = arith.constant 0 : index
    %c0_13 = arith.constant 0 : index
    %13 = vector.load %arg11[%c0_12, %c0_13] : memref<8x128xf32, #tpu.memory_space<vmem>>, vector<8x128xf32>
    %c0_14 = arith.constant 0 : index
    %c0_15 = arith.constant 0 : index
    %c0_16 = arith.constant 0 : index
    %14 = vector.load %arg12[%c0_14, %c0_15, %c0_16] : memref<8x8x512xf32, #tpu.memory_space<vmem>>, vector<1x8x512xf32>
    %15 = vector.shape_cast %14 : vector<1x8x512xf32> to vector<8x512xf32>
    %c0_17 = arith.constant 0 : index
    %c0_18 = arith.constant 0 : index
    %16 = vector.load %arg4[%c0_17, %c0_18] : memref<128x512xf32, #tpu.memory_space<vmem>>, vector<128x512xf32>
    %cst_19 = arith.constant dense<0.000000e+00> : vector<8x512xf32>
    %17 = tpu.matmul %12, %16, %cst_19 {dimension_numbers = #tpu.dot_dimension_numbers<[1], [0], [0], [1], [0, 0, 1, 1], [], []>} : vector<8x128xf32>, vector<128x512xf32>, vector<8x512xf32> -> vector<8x512xf32>
    %18 = arith.addf %15, %17 : vector<8x512xf32>
    %19 = vector.extract_strided_slice %18 {offsets = [0, 0], sizes = [8, 128], strides = [1, 1]} : vector<8x512xf32> to vector<8x128xf32>
    %20 = arith.negf %19 : vector<8x128xf32>
    %21 = math.exp %20 : vector<8x128xf32>
    %cst_20 = arith.constant 1.000000e+00 : f32
    %22 = vector.broadcast %cst_20 : f32 to vector<8x128xf32>
    %23 = arith.addf %22, %21 : vector<8x128xf32>
    %24 = arith.divf %22, %23 : vector<8x128xf32>
    %25 = vector.extract_strided_slice %18 {offsets = [0, 128], sizes = [8, 128], strides = [1, 1]} : vector<8x512xf32> to vector<8x128xf32>
    %26 = arith.negf %25 : vector<8x128xf32>
    %27 = math.exp %26 : vector<8x128xf32>
    %cst_21 = arith.constant 1.000000e+00 : f32
    %28 = vector.broadcast %cst_21 : f32 to vector<8x128xf32>
    %29 = arith.addf %28, %27 : vector<8x128xf32>
    %30 = arith.divf %28, %29 : vector<8x128xf32>
    %31 = vector.extract_strided_slice %18 {offsets = [0, 256], sizes = [8, 128], strides = [1, 1]} : vector<8x512xf32> to vector<8x128xf32>
    %32 = math.tanh %31 : vector<8x128xf32>
    %33 = vector.extract_strided_slice %18 {offsets = [0, 384], sizes = [8, 128], strides = [1, 1]} : vector<8x512xf32> to vector<8x128xf32>
    %34 = arith.negf %33 : vector<8x128xf32>
    %35 = math.exp %34 : vector<8x128xf32>
    %cst_22 = arith.constant 1.000000e+00 : f32
    %36 = vector.broadcast %cst_22 : f32 to vector<8x128xf32>
    %37 = arith.addf %36, %35 : vector<8x128xf32>
    %38 = arith.divf %36, %37 : vector<8x128xf32>
    %39 = arith.mulf %30, %13 : vector<8x128xf32>
    %40 = arith.mulf %24, %32 : vector<8x128xf32>
    %41 = arith.addf %39, %40 : vector<8x128xf32>
    %42 = math.tanh %41 : vector<8x128xf32>
    %43 = arith.mulf %38, %42 : vector<8x128xf32>
    %c0_23 = arith.constant 0 : index
    %c0_24 = arith.constant 0 : index
    %c0_25 = arith.constant 0 : index
    %44 = vector.load %arg13[%c0_23, %c0_24, %c0_25] : memref<8x8x128xf32, #tpu.memory_space<vmem>>, vector<1x8x128xf32>
    %45 = vector.shape_cast %44 : vector<1x8x128xf32> to vector<8x128xf32>
    %46 = vector.shape_cast %43 : vector<8x128xf32> to vector<1x8x128xf32>
    tpu.vector_store %arg13[%c0_23, %c0_24, %c0_25], %46 {strides = array<i32>} : memref<8x8x128xf32, #tpu.memory_space<vmem>>, vector<1x8x128xf32>,
    %c1 = arith.constant 1 : index
    %c0_26 = arith.constant 0 : index
    %c0_27 = arith.constant 0 : index
    %47 = vector.load %arg12[%c1, %c0_26, %c0_27] : memref<8x8x512xf32, #tpu.memory_space<vmem>>, vector<1x8x512xf32>
    %48 = vector.shape_cast %47 : vector<1x8x512xf32> to vector<8x512xf32>
    %c0_28 = arith.constant 0 : index
    %c0_29 = arith.constant 0 : index
    %49 = vector.load %arg4[%c0_28, %c0_29] : memref<128x512xf32, #tpu.memory_space<vmem>>, vector<128x512xf32>
    %cst_30 = arith.constant dense<0.000000e+00> : vector<8x512xf32>
    %50 = tpu.matmul %43, %49, %cst_30 {dimension_numbers = #tpu.dot_dimension_numbers<[1], [0], [0], [1], [0, 0, 1, 1], [], []>} : vector<8x128xf32>, vector<128x512xf32>, vector<8x512xf32> -> vector<8x512xf32>
    %51 = arith.addf %48, %50 : vector<8x512xf32>
    %52 = vector.extract_strided_slice %51 {offsets = [0, 0], sizes = [8, 128], strides = [1, 1]} : vector<8x512xf32> to vector<8x128xf32>
    %53 = arith.negf %52 : vector<8x128xf32>
    %54 = math.exp %53 : vector<8x128xf32>
    %cst_31 = arith.constant 1.000000e+00 : f32
    %55 = vector.broadcast %cst_31 : f32 to vector<8x128xf32>
    %56 = arith.addf %55, %54 : vector<8x128xf32>
    %57 = arith.divf %55, %56 : vector<8x128xf32>
    %58 = vector.extract_strided_slice %51 {offsets = [0, 128], sizes = [8, 128], strides = [1, 1]} : vector<8x512xf32> to vector<8x128xf32>
    %59 = arith.negf %58 : vector<8x128xf32>
    %60 = math.exp %59 : vector<8x128xf32>
    %cst_32 = arith.constant 1.000000e+00 : f32
    %61 = vector.broadcast %cst_32 : f32 to vector<8x128xf32>
    %62 = arith.addf %61, %60 : vector<8x128xf32>
    %63 = arith.divf %61, %62 : vector<8x128xf32>
    %64 = vector.extract_strided_slice %51 {offsets = [0, 256], sizes = [8, 128], strides = [1, 1]} : vector<8x512xf32> to vector<8x128xf32>
    %65 = math.tanh %64 : vector<8x128xf32>
    %66 = vector.extract_strided_slice %51 {offsets = [0, 384], sizes = [8, 128], strides = [1, 1]} : vector<8x512xf32> to vector<8x128xf32>
    %67 = arith.negf %66 : vector<8x128xf32>
    %68 = math.exp %67 : vector<8x128xf32>
    %cst_33 = arith.constant 1.000000e+00 : f32
    %69 = vector.broadcast %cst_33 : f32 to vector<8x128xf32>
    %70 = arith.addf %69, %68 : vector<8x128xf32>
    %71 = arith.divf %69, %70 : vector<8x128xf32>
    %72 = arith.mulf %63, %41 : vector<8x128xf32>
    %73 = arith.mulf %57, %65 : vector<8x128xf32>
    %74 = arith.addf %72, %73 : vector<8x128xf32>
    %75 = math.tanh %74 : vector<8x128xf32>
    %76 = arith.mulf %71, %75 : vector<8x128xf32>
    %c1_34 = arith.constant 1 : index
    %c0_35 = arith.constant 0 : index
    %c0_36 = arith.constant 0 : index
    %77 = vector.load %arg13[%c1_34, %c0_35, %c0_36] : memref<8x8x128xf32, #tpu.memory_space<vmem>>, vector<1x8x128xf32>
    %78 = vector.shape_cast %77 : vector<1x8x128xf32> to vector<8x128xf32>
    %79 = vector.shape_cast %76 : vector<8x128xf32> to vector<1x8x128xf32>
    tpu.vector_store %arg13[%c1_34, %c0_35, %c0_36], %79 {strides = array<i32>} : memref<8x8x128xf32, #tpu.memory_space<vmem>>, vector<1x8x128xf32>,
    %c2 = arith.constant 2 : index
    %c0_37 = arith.constant 0 : index
    %c0_38 = arith.constant 0 : index
    %80 = vector.load %arg12[%c2, %c0_37, %c0_38] : memref<8x8x512xf32, #tpu.memory_space<vmem>>, vector<1x8x512xf32>
    %81 = vector.shape_cast %80 : vector<1x8x512xf32> to vector<8x512xf32>
    %c0_39 = arith.constant 0 : index
    %c0_40 = arith.constant 0 : index
    %82 = vector.load %arg4[%c0_39, %c0_40] : memref<128x512xf32, #tpu.memory_space<vmem>>, vector<128x512xf32>
    %cst_41 = arith.constant dense<0.000000e+00> : vector<8x512xf32>
    %83 = tpu.matmul %76, %82, %cst_41 {dimension_numbers = #tpu.dot_dimension_numbers<[1], [0], [0], [1], [0, 0, 1, 1], [], []>} : vector<8x128xf32>, vector<128x512xf32>, vector<8x512xf32> -> vector<8x512xf32>
    %84 = arith.addf %81, %83 : vector<8x512xf32>
    %85 = vector.extract_strided_slice %84 {offsets = [0, 0], sizes = [8, 128], strides = [1, 1]} : vector<8x512xf32> to vector<8x128xf32>
    %86 = arith.negf %85 : vector<8x128xf32>
    %87 = math.exp %86 : vector<8x128xf32>
    %cst_42 = arith.constant 1.000000e+00 : f32
    %88 = vector.broadcast %cst_42 : f32 to vector<8x128xf32>
    %89 = arith.addf %88, %87 : vector<8x128xf32>
    %90 = arith.divf %88, %89 : vector<8x128xf32>
    %91 = vector.extract_strided_slice %84 {offsets = [0, 128], sizes = [8, 128], strides = [1, 1]} : vector<8x512xf32> to vector<8x128xf32>
    %92 = arith.negf %91 : vector<8x128xf32>
    %93 = math.exp %92 : vector<8x128xf32>
    %cst_43 = arith.constant 1.000000e+00 : f32
    %94 = vector.broadcast %cst_43 : f32 to vector<8x128xf32>
    %95 = arith.addf %94, %93 : vector<8x128xf32>
    %96 = arith.divf %94, %95 : vector<8x128xf32>
    %97 = vector.extract_strided_slice %84 {offsets = [0, 256], sizes = [8, 128], strides = [1, 1]} : vector<8x512xf32> to vector<8x128xf32>
    %98 = math.tanh %97 : vector<8x128xf32>
    %99 = vector.extract_strided_slice %84 {offsets = [0, 384], sizes = [8, 128], strides = [1, 1]} : vector<8x512xf32> to vector<8x128xf32>
    %100 = arith.negf %99 : vector<8x128xf32>
    %101 = math.exp %100 : vector<8x128xf32>
    %cst_44 = arith.constant 1.000000e+00 : f32
    %102 = vector.broadcast %cst_44 : f32 to vector<8x128xf32>
    %103 = arith.addf %102, %101 : vector<8x128xf32>
    %104 = arith.divf %102, %103 : vector<8x128xf32>
    %105 = arith.mulf %96, %74 : vector<8x128xf32>
    %106 = arith.mulf %90, %98 : vector<8x128xf32>
    %107 = arith.addf %105, %106 : vector<8x128xf32>
    %108 = math.tanh %107 : vector<8x128xf32>
    %109 = arith.mulf %104, %108 : vector<8x128xf32>
    %c2_45 = arith.constant 2 : index
    %c0_46 = arith.constant 0 : index
    %c0_47 = arith.constant 0 : index
    %110 = vector.load %arg13[%c2_45, %c0_46, %c0_47] : memref<8x8x128xf32, #tpu.memory_space<vmem>>, vector<1x8x128xf32>
    %111 = vector.shape_cast %110 : vector<1x8x128xf32> to vector<8x128xf32>
    %112 = vector.shape_cast %109 : vector<8x128xf32> to vector<1x8x128xf32>
    tpu.vector_store %arg13[%c2_45, %c0_46, %c0_47], %112 {strides = array<i32>} : memref<8x8x128xf32, #tpu.memory_space<vmem>>, vector<1x8x128xf32>,
    %c3 = arith.constant 3 : index
    %c0_48 = arith.constant 0 : index
    %c0_49 = arith.constant 0 : index
    %113 = vector.load %arg12[%c3, %c0_48, %c0_49] : memref<8x8x512xf32, #tpu.memory_space<vmem>>, vector<1x8x512xf32>
    %114 = vector.shape_cast %113 : vector<1x8x512xf32> to vector<8x512xf32>
    %c0_50 = arith.constant 0 : index
    %c0_51 = arith.constant 0 : index
    %115 = vector.load %arg4[%c0_50, %c0_51] : memref<128x512xf32, #tpu.memory_space<vmem>>, vector<128x512xf32>
    %cst_52 = arith.constant dense<0.000000e+00> : vector<8x512xf32>
    %116 = tpu.matmul %109, %115, %cst_52 {dimension_numbers = #tpu.dot_dimension_numbers<[1], [0], [0], [1], [0, 0, 1, 1], [], []>} : vector<8x128xf32>, vector<128x512xf32>, vector<8x512xf32> -> vector<8x512xf32>
    %117 = arith.addf %114, %116 : vector<8x512xf32>
    %118 = vector.extract_strided_slice %117 {offsets = [0, 0], sizes = [8, 128], strides = [1, 1]} : vector<8x512xf32> to vector<8x128xf32>
    %119 = arith.negf %118 : vector<8x128xf32>
    %120 = math.exp %119 : vector<8x128xf32>
    %cst_53 = arith.constant 1.000000e+00 : f32
    %121 = vector.broadcast %cst_53 : f32 to vector<8x128xf32>
    %122 = arith.addf %121, %120 : vector<8x128xf32>
    %123 = arith.divf %121, %122 : vector<8x128xf32>
    %124 = vector.extract_strided_slice %117 {offsets = [0, 128], sizes = [8, 128], strides = [1, 1]} : vector<8x512xf32> to vector<8x128xf32>
    %125 = arith.negf %124 : vector<8x128xf32>
    %126 = math.exp %125 : vector<8x128xf32>
    %cst_54 = arith.constant 1.000000e+00 : f32
    %127 = vector.broadcast %cst_54 : f32 to vector<8x128xf32>
    %128 = arith.addf %127, %126 : vector<8x128xf32>
    %129 = arith.divf %127, %128 : vector<8x128xf32>
    %130 = vector.extract_strided_slice %117 {offsets = [0, 256], sizes = [8, 128], strides = [1, 1]} : vector<8x512xf32> to vector<8x128xf32>
    %131 = math.tanh %130 : vector<8x128xf32>
    %132 = vector.extract_strided_slice %117 {offsets = [0, 384], sizes = [8, 128], strides = [1, 1]} : vector<8x512xf32> to vector<8x128xf32>
    %133 = arith.negf %132 : vector<8x128xf32>
    %134 = math.exp %133 : vector<8x128xf32>
    %cst_55 = arith.constant 1.000000e+00 : f32
    %135 = vector.broadcast %cst_55 : f32 to vector<8x128xf32>
    %136 = arith.addf %135, %134 : vector<8x128xf32>
    %137 = arith.divf %135, %136 : vector<8x128xf32>
    %138 = arith.mulf %129, %107 : vector<8x128xf32>
    %139 = arith.mulf %123, %131 : vector<8x128xf32>
    %140 = arith.addf %138, %139 : vector<8x128xf32>
    %141 = math.tanh %140 : vector<8x128xf32>
    %142 = arith.mulf %137, %141 : vector<8x128xf32>
    %c3_56 = arith.constant 3 : index
    %c0_57 = arith.constant 0 : index
    %c0_58 = arith.constant 0 : index
    %143 = vector.load %arg13[%c3_56, %c0_57, %c0_58] : memref<8x8x128xf32, #tpu.memory_space<vmem>>, vector<1x8x128xf32>
    %144 = vector.shape_cast %143 : vector<1x8x128xf32> to vector<8x128xf32>
    %145 = vector.shape_cast %142 : vector<8x128xf32> to vector<1x8x128xf32>
    tpu.vector_store %arg13[%c3_56, %c0_57, %c0_58], %145 {strides = array<i32>} : memref<8x8x128xf32, #tpu.memory_space<vmem>>, vector<1x8x128xf32>,
    %c4 = arith.constant 4 : index
    %c0_59 = arith.constant 0 : index
    %c0_60 = arith.constant 0 : index
    %146 = vector.load %arg12[%c4, %c0_59, %c0_60] : memref<8x8x512xf32, #tpu.memory_space<vmem>>, vector<1x8x512xf32>
    %147 = vector.shape_cast %146 : vector<1x8x512xf32> to vector<8x512xf32>
    %c0_61 = arith.constant 0 : index
    %c0_62 = arith.constant 0 : index
    %148 = vector.load %arg4[%c0_61, %c0_62] : memref<128x512xf32, #tpu.memory_space<vmem>>, vector<128x512xf32>
    %cst_63 = arith.constant dense<0.000000e+00> : vector<8x512xf32>
    %149 = tpu.matmul %142, %148, %cst_63 {dimension_numbers = #tpu.dot_dimension_numbers<[1], [0], [0], [1], [0, 0, 1, 1], [], []>} : vector<8x128xf32>, vector<128x512xf32>, vector<8x512xf32> -> vector<8x512xf32>
    %150 = arith.addf %147, %149 : vector<8x512xf32>
    %151 = vector.extract_strided_slice %150 {offsets = [0, 0], sizes = [8, 128], strides = [1, 1]} : vector<8x512xf32> to vector<8x128xf32>
    %152 = arith.negf %151 : vector<8x128xf32>
    %153 = math.exp %152 : vector<8x128xf32>
    %cst_64 = arith.constant 1.000000e+00 : f32
    %154 = vector.broadcast %cst_64 : f32 to vector<8x128xf32>
    %155 = arith.addf %154, %153 : vector<8x128xf32>
    %156 = arith.divf %154, %155 : vector<8x128xf32>
    %157 = vector.extract_strided_slice %150 {offsets = [0, 128], sizes = [8, 128], strides = [1, 1]} : vector<8x512xf32> to vector<8x128xf32>
    %158 = arith.negf %157 : vector<8x128xf32>
    %159 = math.exp %158 : vector<8x128xf32>
    %cst_65 = arith.constant 1.000000e+00 : f32
    %160 = vector.broadcast %cst_65 : f32 to vector<8x128xf32>
    %161 = arith.addf %160, %159 : vector<8x128xf32>
    %162 = arith.divf %160, %161 : vector<8x128xf32>
    %163 = vector.extract_strided_slice %150 {offsets = [0, 256], sizes = [8, 128], strides = [1, 1]} : vector<8x512xf32> to vector<8x128xf32>
    %164 = math.tanh %163 : vector<8x128xf32>
    %165 = vector.extract_strided_slice %150 {offsets = [0, 384], sizes = [8, 128], strides = [1, 1]} : vector<8x512xf32> to vector<8x128xf32>
    %166 = arith.negf %165 : vector<8x128xf32>
    %167 = math.exp %166 : vector<8x128xf32>
    %cst_66 = arith.constant 1.000000e+00 : f32
    %168 = vector.broadcast %cst_66 : f32 to vector<8x128xf32>
    %169 = arith.addf %168, %167 : vector<8x128xf32>
    %170 = arith.divf %168, %169 : vector<8x128xf32>
    %171 = arith.mulf %162, %140 : vector<8x128xf32>
    %172 = arith.mulf %156, %164 : vector<8x128xf32>
    %173 = arith.addf %171, %172 : vector<8x128xf32>
    %174 = math.tanh %173 : vector<8x128xf32>
    %175 = arith.mulf %170, %174 : vector<8x128xf32>
    %c4_67 = arith.constant 4 : index
    %c0_68 = arith.constant 0 : index
    %c0_69 = arith.constant 0 : index
    %176 = vector.load %arg13[%c4_67, %c0_68, %c0_69] : memref<8x8x128xf32, #tpu.memory_space<vmem>>, vector<1x8x128xf32>
    %177 = vector.shape_cast %176 : vector<1x8x128xf32> to vector<8x128xf32>
    %178 = vector.shape_cast %175 : vector<8x128xf32> to vector<1x8x128xf32>
    tpu.vector_store %arg13[%c4_67, %c0_68, %c0_69], %178 {strides = array<i32>} : memref<8x8x128xf32, #tpu.memory_space<vmem>>, vector<1x8x128xf32>,
    %c5 = arith.constant 5 : index
    %c0_70 = arith.constant 0 : index
    %c0_71 = arith.constant 0 : index
    %179 = vector.load %arg12[%c5, %c0_70, %c0_71] : memref<8x8x512xf32, #tpu.memory_space<vmem>>, vector<1x8x512xf32>
    %180 = vector.shape_cast %179 : vector<1x8x512xf32> to vector<8x512xf32>
    %c0_72 = arith.constant 0 : index
    %c0_73 = arith.constant 0 : index
    %181 = vector.load %arg4[%c0_72, %c0_73] : memref<128x512xf32, #tpu.memory_space<vmem>>, vector<128x512xf32>
    %cst_74 = arith.constant dense<0.000000e+00> : vector<8x512xf32>
    %182 = tpu.matmul %175, %181, %cst_74 {dimension_numbers = #tpu.dot_dimension_numbers<[1], [0], [0], [1], [0, 0, 1, 1], [], []>} : vector<8x128xf32>, vector<128x512xf32>, vector<8x512xf32> -> vector<8x512xf32>
    %183 = arith.addf %180, %182 : vector<8x512xf32>
    %184 = vector.extract_strided_slice %183 {offsets = [0, 0], sizes = [8, 128], strides = [1, 1]} : vector<8x512xf32> to vector<8x128xf32>
    %185 = arith.negf %184 : vector<8x128xf32>
    %186 = math.exp %185 : vector<8x128xf32>
    %cst_75 = arith.constant 1.000000e+00 : f32
    %187 = vector.broadcast %cst_75 : f32 to vector<8x128xf32>
    %188 = arith.addf %187, %186 : vector<8x128xf32>
    %189 = arith.divf %187, %188 : vector<8x128xf32>
    %190 = vector.extract_strided_slice %183 {offsets = [0, 128], sizes = [8, 128], strides = [1, 1]} : vector<8x512xf32> to vector<8x128xf32>
    %191 = arith.negf %190 : vector<8x128xf32>
    %192 = math.exp %191 : vector<8x128xf32>
    %cst_76 = arith.constant 1.000000e+00 : f32
    %193 = vector.broadcast %cst_76 : f32 to vector<8x128xf32>
    %194 = arith.addf %193, %192 : vector<8x128xf32>
    %195 = arith.divf %193, %194 : vector<8x128xf32>
    %196 = vector.extract_strided_slice %183 {offsets = [0, 256], sizes = [8, 128], strides = [1, 1]} : vector<8x512xf32> to vector<8x128xf32>
    %197 = math.tanh %196 : vector<8x128xf32>
    %198 = vector.extract_strided_slice %183 {offsets = [0, 384], sizes = [8, 128], strides = [1, 1]} : vector<8x512xf32> to vector<8x128xf32>
    %199 = arith.negf %198 : vector<8x128xf32>
    %200 = math.exp %199 : vector<8x128xf32>
    %cst_77 = arith.constant 1.000000e+00 : f32
    %201 = vector.broadcast %cst_77 : f32 to vector<8x128xf32>
    %202 = arith.addf %201, %200 : vector<8x128xf32>
    %203 = arith.divf %201, %202 : vector<8x128xf32>
    %204 = arith.mulf %195, %173 : vector<8x128xf32>
    %205 = arith.mulf %189, %197 : vector<8x128xf32>
    %206 = arith.addf %204, %205 : vector<8x128xf32>
    %207 = math.tanh %206 : vector<8x128xf32>
    %208 = arith.mulf %203, %207 : vector<8x128xf32>
    %c5_78 = arith.constant 5 : index
    %c0_79 = arith.constant 0 : index
    %c0_80 = arith.constant 0 : index
    %209 = vector.load %arg13[%c5_78, %c0_79, %c0_80] : memref<8x8x128xf32, #tpu.memory_space<vmem>>, vector<1x8x128xf32>
    %210 = vector.shape_cast %209 : vector<1x8x128xf32> to vector<8x128xf32>
    %211 = vector.shape_cast %208 : vector<8x128xf32> to vector<1x8x128xf32>
    tpu.vector_store %arg13[%c5_78, %c0_79, %c0_80], %211 {strides = array<i32>} : memref<8x8x128xf32, #tpu.memory_space<vmem>>, vector<1x8x128xf32>,
    %c6 = arith.constant 6 : index
    %c0_81 = arith.constant 0 : index
    %c0_82 = arith.constant 0 : index
    %212 = vector.load %arg12[%c6, %c0_81, %c0_82] : memref<8x8x512xf32, #tpu.memory_space<vmem>>, vector<1x8x512xf32>
    %213 = vector.shape_cast %212 : vector<1x8x512xf32> to vector<8x512xf32>
    %c0_83 = arith.constant 0 : index
    %c0_84 = arith.constant 0 : index
    %214 = vector.load %arg4[%c0_83, %c0_84] : memref<128x512xf32, #tpu.memory_space<vmem>>, vector<128x512xf32>
    %cst_85 = arith.constant dense<0.000000e+00> : vector<8x512xf32>
    %215 = tpu.matmul %208, %214, %cst_85 {dimension_numbers = #tpu.dot_dimension_numbers<[1], [0], [0], [1], [0, 0, 1, 1], [], []>} : vector<8x128xf32>, vector<128x512xf32>, vector<8x512xf32> -> vector<8x512xf32>
    %216 = arith.addf %213, %215 : vector<8x512xf32>
    %217 = vector.extract_strided_slice %216 {offsets = [0, 0], sizes = [8, 128], strides = [1, 1]} : vector<8x512xf32> to vector<8x128xf32>
    %218 = arith.negf %217 : vector<8x128xf32>
    %219 = math.exp %218 : vector<8x128xf32>
    %cst_86 = arith.constant 1.000000e+00 : f32
    %220 = vector.broadcast %cst_86 : f32 to vector<8x128xf32>
    %221 = arith.addf %220, %219 : vector<8x128xf32>
    %222 = arith.divf %220, %221 : vector<8x128xf32>
    %223 = vector.extract_strided_slice %216 {offsets = [0, 128], sizes = [8, 128], strides = [1, 1]} : vector<8x512xf32> to vector<8x128xf32>
    %224 = arith.negf %223 : vector<8x128xf32>
    %225 = math.exp %224 : vector<8x128xf32>
    %cst_87 = arith.constant 1.000000e+00 : f32
    %226 = vector.broadcast %cst_87 : f32 to vector<8x128xf32>
    %227 = arith.addf %226, %225 : vector<8x128xf32>
    %228 = arith.divf %226, %227 : vector<8x128xf32>
    %229 = vector.extract_strided_slice %216 {offsets = [0, 256], sizes = [8, 128], strides = [1, 1]} : vector<8x512xf32> to vector<8x128xf32>
    %230 = math.tanh %229 : vector<8x128xf32>
    %231 = vector.extract_strided_slice %216 {offsets = [0, 384], sizes = [8, 128], strides = [1, 1]} : vector<8x512xf32> to vector<8x128xf32>
    %232 = arith.negf %231 : vector<8x128xf32>
    %233 = math.exp %232 : vector<8x128xf32>
    %cst_88 = arith.constant 1.000000e+00 : f32
    %234 = vector.broadcast %cst_88 : f32 to vector<8x128xf32>
    %235 = arith.addf %234, %233 : vector<8x128xf32>
    %236 = arith.divf %234, %235 : vector<8x128xf32>
    %237 = arith.mulf %228, %206 : vector<8x128xf32>
    %238 = arith.mulf %222, %230 : vector<8x128xf32>
    %239 = arith.addf %237, %238 : vector<8x128xf32>
    %240 = math.tanh %239 : vector<8x128xf32>
    %241 = arith.mulf %236, %240 : vector<8x128xf32>
    %c6_89 = arith.constant 6 : index
    %c0_90 = arith.constant 0 : index
    %c0_91 = arith.constant 0 : index
    %242 = vector.load %arg13[%c6_89, %c0_90, %c0_91] : memref<8x8x128xf32, #tpu.memory_space<vmem>>, vector<1x8x128xf32>
    %243 = vector.shape_cast %242 : vector<1x8x128xf32> to vector<8x128xf32>
    %244 = vector.shape_cast %241 : vector<8x128xf32> to vector<1x8x128xf32>
    tpu.vector_store %arg13[%c6_89, %c0_90, %c0_91], %244 {strides = array<i32>} : memref<8x8x128xf32, #tpu.memory_space<vmem>>, vector<1x8x128xf32>,
    %c7 = arith.constant 7 : index
    %c0_92 = arith.constant 0 : index
    %c0_93 = arith.constant 0 : index
    %245 = vector.load %arg12[%c7, %c0_92, %c0_93] : memref<8x8x512xf32, #tpu.memory_space<vmem>>, vector<1x8x512xf32>
    %246 = vector.shape_cast %245 : vector<1x8x512xf32> to vector<8x512xf32>
    %c0_94 = arith.constant 0 : index
    %c0_95 = arith.constant 0 : index
    %247 = vector.load %arg4[%c0_94, %c0_95] : memref<128x512xf32, #tpu.memory_space<vmem>>, vector<128x512xf32>
    %cst_96 = arith.constant dense<0.000000e+00> : vector<8x512xf32>
    %248 = tpu.matmul %241, %247, %cst_96 {dimension_numbers = #tpu.dot_dimension_numbers<[1], [0], [0], [1], [0, 0, 1, 1], [], []>} : vector<8x128xf32>, vector<128x512xf32>, vector<8x512xf32> -> vector<8x512xf32>
    %249 = arith.addf %246, %248 : vector<8x512xf32>
    %250 = vector.extract_strided_slice %249 {offsets = [0, 0], sizes = [8, 128], strides = [1, 1]} : vector<8x512xf32> to vector<8x128xf32>
    %251 = arith.negf %250 : vector<8x128xf32>
    %252 = math.exp %251 : vector<8x128xf32>
    %cst_97 = arith.constant 1.000000e+00 : f32
    %253 = vector.broadcast %cst_97 : f32 to vector<8x128xf32>
    %254 = arith.addf %253, %252 : vector<8x128xf32>
    %255 = arith.divf %253, %254 : vector<8x128xf32>
    %256 = vector.extract_strided_slice %249 {offsets = [0, 128], sizes = [8, 128], strides = [1, 1]} : vector<8x512xf32> to vector<8x128xf32>
    %257 = arith.negf %256 : vector<8x128xf32>
    %258 = math.exp %257 : vector<8x128xf32>
    %cst_98 = arith.constant 1.000000e+00 : f32
    %259 = vector.broadcast %cst_98 : f32 to vector<8x128xf32>
    %260 = arith.addf %259, %258 : vector<8x128xf32>
    %261 = arith.divf %259, %260 : vector<8x128xf32>
    %262 = vector.extract_strided_slice %249 {offsets = [0, 256], sizes = [8, 128], strides = [1, 1]} : vector<8x512xf32> to vector<8x128xf32>
    %263 = math.tanh %262 : vector<8x128xf32>
    %264 = vector.extract_strided_slice %249 {offsets = [0, 384], sizes = [8, 128], strides = [1, 1]} : vector<8x512xf32> to vector<8x128xf32>
    %265 = arith.negf %264 : vector<8x128xf32>
    %266 = math.exp %265 : vector<8x128xf32>
    %cst_99 = arith.constant 1.000000e+00 : f32
    %267 = vector.broadcast %cst_99 : f32 to vector<8x128xf32>
    %268 = arith.addf %267, %266 : vector<8x128xf32>
    %269 = arith.divf %267, %268 : vector<8x128xf32>
    %270 = arith.mulf %261, %239 : vector<8x128xf32>
    %271 = arith.mulf %255, %263 : vector<8x128xf32>
    %272 = arith.addf %270, %271 : vector<8x128xf32>
    %273 = math.tanh %272 : vector<8x128xf32>
    %274 = arith.mulf %269, %273 : vector<8x128xf32>
    %c7_100 = arith.constant 7 : index
    %c0_101 = arith.constant 0 : index
    %c0_102 = arith.constant 0 : index
    %275 = vector.load %arg13[%c7_100, %c0_101, %c0_102] : memref<8x8x128xf32, #tpu.memory_space<vmem>>, vector<1x8x128xf32>
    %276 = vector.shape_cast %275 : vector<1x8x128xf32> to vector<8x128xf32>
    %277 = vector.shape_cast %274 : vector<8x128xf32> to vector<1x8x128xf32>
    tpu.vector_store %arg13[%c7_100, %c0_101, %c0_102], %277 {strides = array<i32>} : memref<8x8x128xf32, #tpu.memory_space<vmem>>, vector<1x8x128xf32>,
    %c0_103 = arith.constant 0 : index
    %c0_104 = arith.constant 0 : index
    %278 = vector.load %arg10[%c0_103, %c0_104] : memref<8x128xf32, #tpu.memory_space<vmem>>, vector<8x128xf32>
    tpu.vector_store %arg10[%c0_103, %c0_104], %274 {strides = array<i32>} : memref<8x128xf32, #tpu.memory_space<vmem>>, vector<8x128xf32>,
    %c0_105 = arith.constant 0 : index
    %c0_106 = arith.constant 0 : index
    %279 = vector.load %arg11[%c0_105, %c0_106] : memref<8x128xf32, #tpu.memory_space<vmem>>, vector<8x128xf32>
    tpu.vector_store %arg11[%c0_105, %c0_106], %272 {strides = array<i32>} : memref<8x128xf32, #tpu.memory_space<vmem>>, vector<8x128xf32>,
    %c0_i32_107 = arith.constant 0 : i32
    %280 = arith.cmpi eq, %arg1, %c0_i32_107 : i32
    %281 = arith.extui %280 : i1 to i32
    %c0_i32_108 = arith.constant 0 : i32
    %282 = arith.cmpi ne, %281, %c0_i32_108 : i32
    scf.if %282 {
      %c0_120 = arith.constant 0 : index
      %c0_121 = arith.constant 0 : index
      %292 = vector.load %arg9[%c0_120, %c0_121] : memref<8x128xf32, #tpu.memory_space<vmem>>, vector<8x128xf32>
      tpu.vector_store %arg9[%c0_120, %c0_121], %274 {strides = array<i32>} : memref<8x128xf32, #tpu.memory_space<vmem>>, vector<8x128xf32>,
    } else {
    }
    %c0_109 = arith.constant 0 : index
    %c0_110 = arith.constant 0 : index
    %c0_111 = arith.constant 0 : index
    %283 = vector.load %arg13[%c0_109, %c0_110, %c0_111] : memref<8x8x128xf32, #tpu.memory_space<vmem>>, vector<8x8x128xf32>
    %284 = vector.shape_cast %283 : vector<8x8x128xf32> to vector<64x128xf32>
    %c0_112 = arith.constant 0 : index
    %c0_113 = arith.constant 0 : index
    %285 = vector.load %arg6[%c0_112, %c0_113] : memref<128x128xf32, #tpu.memory_space<vmem>>, vector<128x128xf32>
    %cst_114 = arith.constant dense<0.000000e+00> : vector<64x128xf32>
    %286 = tpu.matmul %284, %285, %cst_114 {dimension_numbers = #tpu.dot_dimension_numbers<[1], [0], [0], [1], [0, 0, 1, 1], [], []>} : vector<64x128xf32>, vector<128x128xf32>, vector<64x128xf32> -> vector<64x128xf32>
    %c0_115 = arith.constant 0 : index
    %c0_116 = arith.constant 0 : index
    %287 = vector.load %arg7[%c0_115, %c0_116] : memref<1x128xf32, #tpu.memory_space<vmem>>, vector<1x128xf32>
    %288 = vector.broadcast %287 : vector<1x128xf32> to vector<64x128xf32>
    %289 = arith.addf %286, %288 : vector<64x128xf32>
    %290 = vector.shape_cast %289 : vector<64x128xf32> to vector<8x8x128xf32>
    %c0_117 = arith.constant 0 : index
    %c0_118 = arith.constant 0 : index
    %c0_119 = arith.constant 0 : index
    %291 = vector.load %arg8[%c0_117, %c0_118, %c0_119] : memref<8x8x128xf32, #tpu.memory_space<vmem>>, vector<8x8x128xf32>
    tpu.vector_store %arg8[%c0_117, %c0_118, %c0_119], %290 {strides = array<i32>} : memref<8x8x128xf32, #tpu.memory_space<vmem>>, vector<8x8x128xf32>,
    return
  }
  func.func @transform_0(%arg0: i32, %arg1: i32) -> (i32, i32, i32) {
    %c0_i32 = arith.constant 0 : i32
    %c0_i32_0 = arith.constant 0 : i32
    return %arg1, %arg0, %c0_i32 : i32, i32, i32
  }
  func.func @transform_1(%arg0: i32, %arg1: i32) -> (i32, i32) {
    %c0_i32 = arith.constant 0 : i32
    %c0_i32_0 = arith.constant 0 : i32
    %c0_i32_1 = arith.constant 0 : i32
    return %c0_i32, %c0_i32_0 : i32, i32
  }
  func.func @transform_2(%arg0: i32, %arg1: i32) -> (i32, i32) {
    %c0_i32 = arith.constant 0 : i32
    %c0_i32_0 = arith.constant 0 : i32
    %c0_i32_1 = arith.constant 0 : i32
    return %c0_i32, %c0_i32_0 : i32, i32
  }
  func.func @transform_3(%arg0: i32, %arg1: i32) -> (i32, i32) {
    %c0_i32 = arith.constant 0 : i32
    %c0_i32_0 = arith.constant 0 : i32
    %c0_i32_1 = arith.constant 0 : i32
    return %c0_i32, %c0_i32_0 : i32, i32
  }
  func.func @transform_4(%arg0: i32, %arg1: i32) -> (i32, i32) {
    %c0_i32 = arith.constant 0 : i32
    %c0_i32_0 = arith.constant 0 : i32
    %c0_i32_1 = arith.constant 0 : i32
    return %c0_i32, %c0_i32_0 : i32, i32
  }
  func.func @transform_5(%arg0: i32, %arg1: i32) -> (i32, i32) {
    %c0_i32 = arith.constant 0 : i32
    %c0_i32_0 = arith.constant 0 : i32
    %c0_i32_1 = arith.constant 0 : i32
    return %c0_i32, %c0_i32_0 : i32, i32
  }
  func.func @transform_6(%arg0: i32, %arg1: i32) -> (i32, i32, i32) {
    %c0_i32 = arith.constant 0 : i32
    %c0_i32_0 = arith.constant 0 : i32
    return %arg1, %arg0, %c0_i32 : i32, i32, i32
  }
  func.func @transform_7(%arg0: i32, %arg1: i32) -> (i32, i32) {
    %c0_i32 = arith.constant 0 : i32
    %c0_i32_0 = arith.constant 0 : i32
    return %arg0, %c0_i32 : i32, i32
  }
}

</mosaic_0001>

<bundles_post_ra>
// kernel: tpu_custom_call.1
= control target key start
LH: loop header
LB: loop body
LE: loop exit
PB: predicated region body
PF: predicated region fallthrough
CT: control target
= control target key end

     0   :  { %13 = vsyncpa [#allocation7], 0  ;;  %s3902_s0 = inlined_call_operand.hbm [shape: f32[8,8,16], index: 0, kind: input, shape index: {}]   ;;  %s3903_s1 = inlined_call_operand.hbm [shape: f32[16,512], index: 1, kind: input, shape index: {}]   ;;  %s3904_s2 = inlined_call_operand.hbm [shape: f32[128,512], index: 2, kind: input, shape index: {}]   ;;  %s3905_s3 = inlined_call_operand.hbm [shape: f32[1,512], index: 3, kind: input, shape index: {}]   ;;  %s3906_s4 = inlined_call_operand.hbm [shape: f32[128,128], index: 4, kind: input, shape index: {}]   ;;  %s3907_s5 = inlined_call_operand.vmem [shape: f32[1,128], index: 5, kind: input, shape index: {}]   ;;  %s3908_s6 = inlined_call_operand.hbm [shape: f32[8,8,128], index: 6, kind: output, shape index: {0}]   ;;  %s3909_s7 = inlined_call_operand.hbm [shape: f32[8,128], index: 7, kind: output, shape index: {1}]  }
   0x1   :  { %14 = vsyncpa [#allocation10], 0 }
   0x2   :  { %15 = vsyncpa [#allocation13], 0 }
   0x3   :  { %16 = vsyncpa [#allocation8], 0  ;;  %s35_s26 = sshll.u32 %s3903_s1, 4  ;;  %s36_s26 = int_to_ptr.hbm [resolvable:$true] %s35_s26 }
   0x4   :  { %17 = vsyncpa [#allocation17], 0  ;;  %s2599_s27 = smov [#allocation9]   ;;  %s62_s8 = sshll.u32 %s3905_s3, 4  ;;  %s63_s8 = int_to_ptr.hbm [resolvable:$true] %s62_s8 }
   0x5   :  { %s37_s28 = sshll.u32 %s2599_s27, 4  ;;  %s2600_s9 = smov 512   ;;  %s38_s28 = int_to_ptr.vmem [resolvable:$true] %s37_s28 }
   0x6   :  { %s2601_s10 = smov 32   ;;  %s2602_s11 = smov [#allocation12]  }
   0x7   :  { %43 = dma.hbm_to_vmem [thread:$0]  %s36_s26, 1024, %s38_s28, [#allocation10], %s2600_s9, %s2600_s9, %s2601_s10  }
   0x8   :  { %s64_s12 = sshll.u32 %s2602_s11, 4  ;;  %s22_s15 = sshll.u32 %s3902_s0, 4  ;;  %s65_s12 = int_to_ptr.vmem [resolvable:$true] %s64_s12  ;;  %s23_s15 = int_to_ptr.hbm [resolvable:$true] %s22_s15 }
   0x9   :  { %67 = dma.hbm_to_vmem [thread:$0]  %s63_s8, 64, %s65_s12, [#allocation13]  }
   0xa   :  { %s2603_s1 = smov [#allocation6]   ;;  %s48_s3 = sshll.u32 %s3904_s2, 4  ;;  %s49_s3 = int_to_ptr.hbm [resolvable:$true] %s48_s3 }
   0xb   :  { %s24_s16 = sshll.u32 %s2603_s1, 4  ;;  %s2604_s19 = smov 128   ;;  %s25_s16 = int_to_ptr.vmem [resolvable:$true] %s24_s16 }
   0xc   :  { %s2605_s20 = smov 8   ;;  %s2606_s21 = smov [#allocation11]  }
   0xd   :  { %30 = dma.hbm_to_vmem [thread:$0]  %s23_s15, 1024, %s25_s16, [#allocation7], %s2604_s19, %s2604_s19, %s2605_s20  }
   0xe   :  { %s50_s22 = sshll.u32 %s2606_s21, 4  ;;  %s72_s24 = sshll.u32 %s3906_s4, 4  ;;  %s51_s22 = int_to_ptr.vmem [resolvable:$true] %s50_s22  ;;  %s73_s24 = int_to_ptr.hbm [resolvable:$true] %s72_s24 }
   0xf   :  { %56 = dma.hbm_to_vmem [thread:$0]  %s49_s3, 8192, %s51_s22, [#allocation10], %s2600_s9, %s2600_s9, %s2601_s10  }
  0x10   :  { %s2607_s25 = smov [#allocation14]  }
  0x11   :  { %s74_s26 = sshll.u32 %s2607_s25, 4  ;;  %s75_s26 = int_to_ptr.vmem [resolvable:$true] %s74_s26 }
  0x12   :  { %80 = dma.hbm_to_vmem [thread:$0]  %s73_s24, 2048, %s75_s26, [#allocation13], %s2604_s19, %s2604_s19, %s2605_s20  }
  0x13   :  { %2589 = dma.done.wait [#allocation7], 1024  }
  0x14   :  { %2590 = vsyncadd [#allocation7], 4294966272 }
  0x15   :  { %2591 = dma.done.wait [#allocation10], 9216  }
  0x16   :  { %2592 = vsyncadd [#allocation10], 4294958080 }
  0x17   :  { %2593 = dma.done.wait [#allocation13], 2112  }
  0x18   :  { %2594 = vsyncadd [#allocation13], 4294965184  ;;  %v121_v0 = vld [vmem:[#allocation9 + $0x20] sm:$0xff]  ;;  %v123_v1 = vld [vmem:[#allocation9 + $0x30] sm:$0xff]  ;;  %vm135_vm0 = vcmask 130048   ;;  %s2203_s30 = sshll.u32 %s3909_s7, 4  ;;  %s2204_s30 = int_to_ptr.hbm [resolvable:$true] %s2203_s30 }
  0x19   :  { %v117_v2 = vld [vmem:[#allocation9] sm:$0xff]  ;;  %2276 = vmatpush.msra.mxu1 %v121_v0  ;;  %2277 = vmatpush.msra.mxu3 %v121_v0  ;;  %v119_v3 = vld [vmem:[#allocation9 + $0x10] sm:$0xff]  ;;  %v2674_v5 = vld [vmem:[#allocation6 + $0x28] sm:$0xff]  ;;  %s2610_s8 = smov [#allocation15]   ;;  %s2189_s12 = sshll.u32 %s3908_s6, 4  ;;  %s2190_s12 = int_to_ptr.hbm [resolvable:$true] %s2189_s12 }
  0x1a   :  { %v2672_v4 = vld [vmem:[#allocation6 + $0x20] sm:$0xff]  ;;  %256 = vmatpush.msra.mxu2 %v123_v1  ;;  %174 = vmatpush.msra.mxu0 %v121_v0  ;;  %v124_v7 = vld [vmem:[#allocation9 + $0x38] sm:$0xff]  ;;  %v122_v8 = vld [vmem:[#allocation9 + $0x28] sm:$0xff]  ;;  %s2187_s9 = sshll.u32 %s2610_s8, 4  ;;  %s2188_s9 = int_to_ptr.vmem [resolvable:$true] %s2187_s9 }
  0x1b   :  { %v2676_v6 = vld [vmem:[#allocation6] sm:$0xff]  ;;  %2278 = vmatpush.msra.mxu1 %v117_v2  ;;  %2279 = vmatpush.msra.mxu3 %v117_v2  ;;  %v118_v10 = vld [vmem:[#allocation9 + $0x8] sm:$0xff]  ;;  %v120_v11 = vld [vmem:[#allocation9 + $0x18] sm:$0xff] }
  0x1c   :  { %257 = vmatpush.msra.mxu2 %v119_v3  ;;  %2224 = vmatmul.msk.f32.vlgmr.msra.gmra.mxu1 %vm135_vm0, %v2672_v4  ;;  %v2680_v9 = vld [vmem:[#allocation11 + $0x1e0] sm:$0xff]  ;;  %v2688_v13 = vld [vmem:[#allocation11 + $0x1e8] sm:$0xff]  ;;  %v2695_v16 = vld [vmem:[#allocation11 + $0x1f8] sm:$0xff] }
  0x1d   :  { %2225 = vmatmul.msk.f32.vlgmr.msra.gmra.mxu3 %vm135_vm0, %v2674_v5  ;;  %2236 = vmatmul.msk.f32.vlgmr.msra.gmra.mxu2 %vm135_vm0, %v2676_v6  ;;  %v2686_v12 = vld [vmem:[#allocation11 + $0x1c0] sm:$0xff]  ;;  %v2693_v15 = vld [vmem:[#allocation11 + $0x1c8] sm:$0xff]  ;;  %v2699_v17 = vld [vmem:[#allocation6 + $0x30] sm:$0xff] }
  0x1e   :  { %297 = vmatpush.msrb.mxu3 %v124_v7  ;;  %215 = vmatpush.msrb.mxu1 %v122_v8  ;;  %v2691_v14 = vld [vmem:[#allocation11 + $0x1a0] sm:$0xff]  ;;  %v2701_v18 = vld [vmem:[#allocation6 + $0x8] sm:$0xff]  ;;  %v2704_v19 = vld [vmem:[#allocation11 + $0x1d8] sm:$0xff] }
  0x1f   :  { %426 = vmatpush.msrb.mxu2 %v2680_v9  ;;  %175 = vmatpush.msra.mxu0 %v117_v2  ;;  %v2709_v20 = vld [vmem:[#allocation11 + $0x180] sm:$0xff]  ;;  %v2712_v21 = vld [vmem:[#allocation11 + $0x1a8] sm:$0xff]  ;;  %v2717_v22 = vld [vmem:[#allocation11 + $0x1b8] sm:$0xff] }
  0x20   :  { %216 = vmatpush.msrb.mxu1 %v118_v10  ;;  %298 = vmatpush.msrb.mxu3 %v120_v11  ;;  %v2723_v23 = vld [vmem:[#allocation11 + $0x160] sm:$0xff]  ;;  %v2725_v24 = vld [vmem:[#allocation11 + $0x188] sm:$0xff]  ;;  %v2729_v25 = vld [vmem:[#allocation11 + $0x198] sm:$0xff] }
  0x21   :  { %427 = vmatpush.msrb.mxu2 %v2686_v12  ;;  %2220 = vmatmul.msk.f32.vlgmr.msra.gmra.mxu0 %vm135_vm0, %v2676_v6  ;;  %v2731_v26 = vld [vmem:[#allocation11 + $0x140] sm:$0xff]  ;;  %v2734_v27 = vld [vmem:[#allocation11 + $0x168] sm:$0xff]  ;;  %v2739_v28 = vld [vmem:[#allocation11 + $0x178] sm:$0xff] }
  0x22   :  { %446 = vmatpush.msra.mxu1 %v2688_v13  ;;  %486 = vmatpush.msra.mxu3 %v2695_v16  ;;  %v398_v29 = vld [vmem:[#allocation11 + $0x120] sm:$0xff]  ;;  %v2743_v30 = vld [vmem:[#allocation6 + $0x38] sm:$0xff]  ;;  %v2745_v31 = vld [vmem:[#allocation6 + $0x10] sm:$0xff] }
  0x23   :  { %428 = vmatpush.msrb.mxu2 %v2691_v14  ;;  %643 = vmatpush.msrb.mxu0 %v2680_v9  ;;  %v394_v32 = vld [vmem:[#allocation11 + $0x100] sm:$0xff]  ;;  %v2749_v33 = vld [vmem:[#allocation11 + $0x148] sm:$0xff]  ;;  %v2755_v34 = vld [vmem:[#allocation11 + $0x158] sm:$0xff] }
  0x24   :  { %447 = vmatpush.msra.mxu1 %v2693_v15  ;;  %487 = vmatpush.msra.mxu3 %v2704_v19  ;;  %v2761_v35 = vld [vmem:[#allocation11 + $0xe0] sm:$0xff]  ;;  %v2763_v36 = vld [vmem:[#allocation11 + $0x128] sm:$0xff]  ;;  %v2766_v37 = vld [vmem:[#allocation11 + $0x138] sm:$0xff] }
  0x25   :  { %2228 = vmatmul.msk.f32.vlgmr.msrb.gmra.mxu1 %vm135_vm0, %v2676_v6  ;;  %2226 = vmatmul.msk.f32.gmra.mxu3 %vm135_vm0, %v2699_v17  ;;  %v2768_v38 = vld [vmem:[#allocation11 + $0xc0] sm:$0xff]  ;;  %v2771_v39 = vld [vmem:[#allocation11 + $0x108] sm:$0xff]  ;;  %v2776_v40 = vld [vmem:[#allocation11 + $0x118] sm:$0xff] }
  0x26   :  { %2237 = vmatmul.msk.f32.gmra.mxu2 %vm135_vm0, %v2701_v18  ;;  %448 = vmatpush.msra.mxu1 %v2712_v21  ;;  %v2778_v41 = vld [vmem:[#allocation11 + $0xa0] sm:$0xff]  ;;  %v2783_v42 = vld [vmem:[#allocation6 + $0x18] sm:$0xff]  ;;  %v2789_v44 = vld [vmem:[#allocation11 + $0xe8] sm:$0xff] }
  0x27   :  { %429 = vmatpush.msrb.mxu2 %v2709_v20  ;;  %488 = vmatpush.msra.mxu3 %v2717_v22  ;;  %v2787_v43 = vld [vmem:[#allocation11 + $0x80] sm:$0xff]  ;;  %v2802_v46 = vld [vmem:[#allocation11 + $0xc8] sm:$0xff]  ;;  %v2804_v47 = vld [vmem:[#allocation11 + $0xf8] sm:$0xff] }
  0x28   :  { %449 = vmatpush.msra.mxu1 %v2725_v24  ;;  %644 = vmatpush.msrb.mxu0 %v2686_v12  ;;  %v2800_v45 = vld [vmem:[#allocation11 + $0x60] sm:$0xff]  ;;  %v2808_v48 = vld [vmem:[#allocation11 + $0xd8] sm:$0xff]  ;;  %v2813_v50 = vld [vmem:[#allocation11 + $0xa8] sm:$0xff] }
  0x29   :  { %430 = vmatpush.msrb.mxu2 %v2723_v23  ;;  %489 = vmatpush.msra.mxu3 %v2729_v25  ;;  %v2810_v49 = vld [vmem:[#allocation11 + $0x40] sm:$0xff]  ;;  %v2825_v53 = vld [vmem:[#allocation11 + $0x88] sm:$0xff]  ;;  %v2830_v54 = vld [vmem:[#allocation11 + $0x1f0] sm:$0xff] }
  0x2a   :  { %450 = vmatpush.msra.mxu1 %v2734_v27  ;;  %645 = vmatpush.msrb.mxu0 %v2691_v14  ;;  %v2818_v51 = vld [vmem:[#allocation11 + $0x20] sm:$0xff]  ;;  %v2836_v55 = vld [vmem:[#allocation11 + $0xb8] sm:$0xff]  ;;  %v2838_v56 = vld [vmem:[#allocation11 + $0x68] sm:$0xff] }
  0x2b   :  { %431 = vmatpush.msrb.mxu2 %v2731_v26  ;;  %490 = vmatpush.msra.mxu3 %v2739_v28  ;;  %v2823_v52 = vld [vmem:[#allocation11] sm:$0xff]  ;;  %v2841_v57 = vld [vmem:[#allocation11 + $0x1d0] sm:$0xff]  ;;  %v2844_v58 = vld [vmem:[#allocation11 + $0x98] sm:$0xff] }
  0x2c   :  { %451 = vmatpush.msra.mxu1 %v2749_v33  ;;  %646 = vmatpush.msrb.mxu0 %v2709_v20  ;;  %v2848_v59 = vld [vmem:[#allocation11 + $0x48] sm:$0xff]  ;;  %v2850_v60 = vld [vmem:[#allocation11 + $0x1b0] sm:$0xff]  ;;  %v2875_v1 = vld [vmem:[#allocation11 + $0x78] sm:$0xff] }
  0x2d   :  { %2229 = vmatmul.msk.f32.gmra.mxu1 %vm135_vm0, %v2701_v18  ;;  %432 = vmatpush.msrb.mxu2 %v398_v29  ;;  %v2860_v61 = vld [vmem:[#allocation11 + $0x190] sm:$0xff]  ;;  %v2862_v62 = vld [vmem:[#allocation11 + $0x28] sm:$0xff]  ;;  %v2879_v2 = vld [vmem:[#allocation11 + $0x58] sm:$0xff] }
  0x2e   :  { %2227 = vmatmul.msk.f32.gmra.mxu3 %vm135_vm0, %v2743_v30  ;;  %2238 = vmatmul.msk.f32.gmra.mxu2 %vm135_vm0, %v2745_v31  ;;  %v2871_v63 = vld [vmem:[#allocation11 + $0x170] sm:$0xff]  ;;  %v2873_v0 = vld [vmem:[#allocation11 + $0x8] sm:$0xff]  ;;  %v2907_v10 = vld [vmem:[#allocation11 + $0x38] sm:$0xff] }
  0x2f   :  { %433 = vmatpush.msrb.mxu2 %v394_v32  ;;  %491 = vmatpush.msra.mxu3 %v2755_v34  ;;  %v2881_v3 = vld [vmem:[#allocation11 + $0x150] sm:$0xff]  ;;  %v2909_v11 = vld [vmem:[#allocation11 + $0x18] sm:$0xff] }
  0x30   :  { %452 = vmatpush.msra.mxu1 %v2763_v36  ;;  %2221 = vmatmul.msk.f32.gmra.mxu0 %vm135_vm0, %v2701_v18  ;;  %v2893_v7 = vld [vmem:[#allocation11 + $0x110] sm:$0xff] }
  0x31   :  { %434 = vmatpush.msrb.mxu2 %v2761_v35  ;;  %492 = vmatpush.msra.mxu3 %v2766_v37  ;;  %v2905_v8 = vld [vmem:[#allocation11 + $0xf0] sm:$0xff] }
  0x32   :  { %453 = vmatpush.msra.mxu1 %v2771_v39  ;;  %647 = vmatpush.msrb.mxu0 %v2723_v23 }
  0x33   :  { %435 = vmatpush.msrb.mxu2 %v2768_v38  ;;  %493 = vmatpush.msra.mxu3 %v2776_v40 }
  0x34   :  { %454 = vmatpush.msra.mxu1 %v2789_v44  ;;  %648 = vmatpush.msrb.mxu0 %v2731_v26 }
  0x35   :  { %2230 = vmatmul.msk.f32.gmra.mxu1 %vm135_vm0, %v2745_v31  ;;  %436 = vmatpush.msrb.mxu2 %v2778_v41 }
  0x36   :  { %2239 = vmatmul.msk.f32.gmra.mxu2 %vm135_vm0, %v2783_v42  ;;  %2244 = vmatmul.msk.f32.vlgmr.msrb.gmra.mxu3 %vm135_vm0, %v2676_v6  ;;  %v2887_v6 = vld [vmem:[#allocation11 + $0x130] sm:$0xff] }
  0x37   :  { %437 = vmatpush.msrb.mxu2 %v2787_v43  ;;  %494 = vmatpush.msra.mxu3 %v2804_v47 }
  0x38   :  { %455 = vmatpush.msra.mxu1 %v2802_v46  ;;  %649 = vmatpush.msrb.mxu0 %v398_v29  ;;  %v2919_v29 = vld [vmem:[#allocation11 + $0xb0] sm:$0xff] }
  0x39   :  { %438 = vmatpush.msrb.mxu2 %v2800_v45  ;;  %495 = vmatpush.msra.mxu3 %v2808_v48 }
  0x3a   :  { %456 = vmatpush.msra.mxu1 %v2813_v50  ;;  %650 = vmatpush.msrb.mxu0 %v394_v32  ;;  %v2936_v32 = vld [vmem:[#allocation11 + $0x70] sm:$0xff] }
  0x3b   :  { %439 = vmatpush.msrb.mxu2 %v2810_v49  ;;  %496 = vmatpush.msra.mxu3 %v2836_v55 }
  0x3c   :  { %457 = vmatpush.msra.mxu1 %v2825_v53  ;;  %2222 = vmatmul.msk.f32.gmra.mxu0 %vm135_vm0, %v2745_v31 }
  0x3d   :  { %2231 = vmatmul.msk.f32.gmra.mxu1 %vm135_vm0, %v2783_v42  ;;  %440 = vmatpush.msrb.mxu2 %v2818_v51 }
  0x3e   :  { %2240 = vmatmul.msk.f32.gmra.mxu2 %vm135_vm0, %v2672_v4  ;;  %2245 = vmatmul.msk.f32.gmra.mxu3 %vm135_vm0, %v2701_v18  ;;  %v2913_v18 = vld [vmem:[#allocation11 + $0xd0] sm:$0xff] }
  0x3f   :  { %441 = vmatpush.msrb.mxu2 %v2823_v52  ;;  %458 = vmatpush.msra.mxu1 %v2838_v56 }
  0x40   :  { %497 = vmatpush.msra.mxu3 %v2844_v58  ;;  %651 = vmatpush.msrb.mxu0 %v2761_v35  ;;  %v2940_v35 = vld [vmem:[#allocation11 + $0x50] sm:$0xff] }
  0x41   :  { %466 = vmatpush.msra.mxu2 %v2830_v54  ;;  %459 = vmatpush.msra.mxu1 %v2848_v59 }
  0x42   :  { %652 = vmatpush.msrb.mxu0 %v2768_v38  ;;  %498 = vmatpush.msra.mxu3 %v2875_v1  ;;  %v2946_v38 = vld [vmem:[#allocation11 + $0x30] sm:$0xff] }
  0x43   :  { %467 = vmatpush.msra.mxu2 %v2841_v57  ;;  %460 = vmatpush.msra.mxu1 %v2862_v62 }
  0x44   :  { %653 = vmatpush.msrb.mxu0 %v2778_v41  ;;  %499 = vmatpush.msra.mxu3 %v2879_v2  ;;  %v2608_v41 = vmov 0.0  }
  0x45   :  { %468 = vmatpush.msra.mxu2 %v2850_v60  ;;  %2232 = vmatmul.msk.f32.gmra.mxu1 %vm135_vm0, %v2672_v4 }
  0x46   :  { %2241 = vmatmul.msk.f32.gmra.mxu2 %vm135_vm0, %v2674_v5  ;;  %2246 = vmatmul.msk.f32.gmra.mxu3 %vm135_vm0, %v2745_v31  ;;  %v2925_v31 = vld [vmem:[#allocation11 + $0x90] sm:$0xff] }
  0x47   :  { %469 = vmatpush.msra.mxu2 %v2860_v61  ;;  %461 = vmatpush.msra.mxu1 %v2873_v0 }
  0x48   :  { %654 = vmatpush.msrb.mxu0 %v2787_v43  ;;  %500 = vmatpush.msra.mxu3 %v2907_v10 }
  0x49   :  { %470 = vmatpush.msra.mxu2 %v2871_v63  ;;  %663 = vmatpush.msrb.mxu1 %v2688_v13 }
  0x4a   :  { %2223 = vmatmul.msk.f32.gmra.mxu0 %vm135_vm0, %v2783_v42  ;;  %501 = vmatpush.msra.mxu3 %v2909_v11 }
  0x4b   :  { %471 = vmatpush.msra.mxu2 %v2881_v3  ;;  %664 = vmatpush.msrb.mxu1 %v2693_v15 }
  0x4c   :  { %655 = vmatpush.msrb.mxu0 %v2800_v45  ;;  %703 = vmatpush.msrb.mxu3 %v2695_v16 }
  0x4d   :  { %2233 = vmatmul.msk.f32.gmra.mxu1 %vm135_vm0, %v2674_v5  ;;  %472 = vmatpush.msra.mxu2 %v2887_v6 }
  0x4e   :  { %2242 = vmatmul.msk.f32.gmra.mxu2 %vm135_vm0, %v2699_v17  ;;  %2247 = vmatmul.msk.f32.gmra.mxu3 %vm135_vm0, %v2783_v42 }
  0x4f   :  { %473 = vmatpush.msra.mxu2 %v2893_v7  ;;  %665 = vmatpush.msrb.mxu1 %v2712_v21 }
  0x50   :  { %656 = vmatpush.msrb.mxu0 %v2810_v49  ;;  %704 = vmatpush.msrb.mxu3 %v2704_v19 }
  0x51   :  { %474 = vmatpush.msra.mxu2 %v2905_v8  ;;  %666 = vmatpush.msrb.mxu1 %v2725_v24 }
  0x52   :  { %705 = vmatpush.msrb.mxu3 %v2717_v22  ;;  %657 = vmatpush.msrb.mxu0 %v2818_v51 }
  0x53   :  { %475 = vmatpush.msra.mxu2 %v2913_v18  ;;  %667 = vmatpush.msrb.mxu1 %v2734_v27 }
  0x54   :  { %706 = vmatpush.msrb.mxu3 %v2729_v25  ;;  %658 = vmatpush.msrb.mxu0 %v2823_v52 }
  0x55   :  { %2234 = vmatmul.msk.f32.gmra.mxu1 %vm135_vm0, %v2699_v17  ;;  %476 = vmatpush.msra.mxu2 %v2919_v29 }
  0x56   :  { %2243 = vmatmul.msk.f32.gmra.mxu2 %vm135_vm0, %v2743_v30  ;;  %2248 = vmatmul.msk.f32.gmra.mxu3 %vm135_vm0, %v2672_v4  ;;  %v2952_v4 = vld [vmem:[#allocation11 + $0x10] sm:$0xff] }
  0x57   :  { %477 = vmatpush.msra.mxu2 %v2925_v31  ;;  %668 = vmatpush.msrb.mxu1 %v2749_v33 }
  0x58   :  { %707 = vmatpush.msrb.mxu3 %v2739_v28  ;;  %861 = vmatpush.msra.mxu0 %v2680_v9 }
  0x59   :  { %478 = vmatpush.msra.mxu2 %v2936_v32  ;;  %669 = vmatpush.msrb.mxu1 %v2763_v36 }
  0x5a   :  { %708 = vmatpush.msrb.mxu3 %v2755_v34  ;;  %862 = vmatpush.msra.mxu0 %v2686_v12 }
  0x5b   :  { %479 = vmatpush.msra.mxu2 %v2940_v35  ;;  %670 = vmatpush.msrb.mxu1 %v2771_v39 }
  0x5c   :  { %709 = vmatpush.msrb.mxu3 %v2766_v37  ;;  %863 = vmatpush.msra.mxu0 %v2691_v14  ;;  %v125_v14 = vld [vmem:[#allocation12] sm:$0xf] }
  0x5d   :  { %2235 = vmatmul.msk.f32.gmra.mxu1 %vm135_vm0, %v2743_v30  ;;  %480 = vmatpush.msra.mxu2 %v2946_v38 }
  0x5e   :  { %2249 = vmatmul.msk.f32.gmra.mxu3 %vm135_vm0, %v2674_v5  ;;  %442 = vmatmul.f32.vlgmr.msrb.gmra.mxu2 %v2608_v41 }
  0x5f   :  { %481 = vmatpush.msra.mxu2 %v2952_v4  ;;  %671 = vmatpush.msrb.mxu1 %v2789_v44 }
  0x60   :  { %710 = vmatpush.msrb.mxu3 %v2776_v40  ;;  %864 = vmatpush.msra.mxu0 %v2709_v20 }
  0x61   :  { %683 = vmatpush.msrb.mxu2 %v2830_v54  ;;  %672 = vmatpush.msrb.mxu1 %v2802_v46 }
  0x62   :  { %711 = vmatpush.msrb.mxu3 %v2804_v47  ;;  %865 = vmatpush.msra.mxu0 %v2723_v23 }
  0x63   :  { %684 = vmatpush.msrb.mxu2 %v2841_v57  ;;  %673 = vmatpush.msrb.mxu1 %v2813_v50 }
  0x64   :  { %712 = vmatpush.msrb.mxu3 %v2808_v48  ;;  %866 = vmatpush.msra.mxu0 %v2731_v26 }
  0x65   :  { %685 = vmatpush.msrb.mxu2 %v2850_v60  ;;  %462 = vmatmul.f32.vlgmr.msra.gmra.mxu1 %v2608_v41 }
  0x66   :  { %2250 = vmatmul.msk.f32.gmra.mxu3 %vm135_vm0, %v2699_v17  ;;  %482 = vmatmul.f32.vlgmr.msra.gmra.mxu2 %v2608_v41 }
  0x67   :  { %686 = vmatpush.msrb.mxu2 %v2860_v61  ;;  %674 = vmatpush.msrb.mxu1 %v2825_v53 }
  0x68   :  { %713 = vmatpush.msrb.mxu3 %v2836_v55 }
  0x69   :  { %687 = vmatpush.msrb.mxu2 %v2871_v63  ;;  %675 = vmatpush.msrb.mxu1 %v2838_v56 }
  0x6a   :  { %714 = vmatpush.msrb.mxu3 %v2844_v58 }
  0x6b   :  { %688 = vmatpush.msrb.mxu2 %v2881_v3  ;;  %676 = vmatpush.msrb.mxu1 %v2848_v59 }
  0x6c   :  { %715 = vmatpush.msrb.mxu3 %v2875_v1 }
  0x6d   :  { %689 = vmatpush.msrb.mxu2 %v2887_v6  ;;  %677 = vmatpush.msrb.mxu1 %v2862_v62 }
  0x6e   :  { %2251 = vmatmul.msk.f32.gmra.mxu3 %vm135_vm0, %v2743_v30 }
  0x6f   :  { %690 = vmatpush.msrb.mxu2 %v2893_v7  ;;  %716 = vmatpush.msrb.mxu3 %v2879_v2 }
  0x70   :  { %678 = vmatpush.msrb.mxu1 %v2873_v0 }
  0x71   :  { %691 = vmatpush.msrb.mxu2 %v2905_v8  ;;  %717 = vmatpush.msrb.mxu3 %v2907_v10 }
  0x72   :  { %881 = vmatpush.msra.mxu1 %v2688_v13 }
  0x73   :  { %692 = vmatpush.msrb.mxu2 %v2913_v18  ;;  %718 = vmatpush.msrb.mxu3 %v2909_v11 }
  0x74   :  { %882 = vmatpush.msra.mxu1 %v2693_v15  ;;  %v3060_v15 = vperm.slane %v125_v14, 2 }
  0x75   :  { %693 = vmatpush.msrb.mxu2 %v2919_v29 }
  0x76   :  { %502 = vmatmul.f32.vlgmr.msra.gmra.mxu3 %v2608_v41  ;;  %883 = vmatpush.msra.mxu1 %v2712_v21 }
  0x77   :  { %694 = vmatpush.msrb.mxu2 %v2925_v31  ;;  %921 = vmatpush.msra.mxu3 %v2695_v16  ;;  %v128_v16 = vperm.slane %v125_v14, 1 }
  0x78   :  { %884 = vmatpush.msra.mxu1 %v2725_v24 }
  0x79   :  { %695 = vmatpush.msrb.mxu2 %v2936_v32  ;;  %922 = vmatpush.msra.mxu3 %v2704_v19 }
  0x7a   :  { %885 = vmatpush.msra.mxu1 %v2734_v27 }
  0x7b   :  { %696 = vmatpush.msrb.mxu2 %v2940_v35  ;;  %923 = vmatpush.msra.mxu3 %v2717_v22 }
  0x7c   :  { %886 = vmatpush.msra.mxu1 %v2749_v33 }
  0x7d   :  { %697 = vmatpush.msrb.mxu2 %v2946_v38  ;;  %924 = vmatpush.msra.mxu3 %v2729_v25 }
  0x7e   :  { %887 = vmatpush.msra.mxu1 %v2763_v36 }
  0x7f   :  { %698 = vmatpush.msrb.mxu2 %v2952_v4  ;;  %925 = vmatpush.msra.mxu3 %v2739_v28 }
  0x80   :  { %888 = vmatpush.msra.mxu1 %v2771_v39 }
  0x81   :  { %901 = vmatpush.msra.mxu2 %v2830_v54  ;;  %926 = vmatpush.msra.mxu3 %v2755_v34 }
  0x82   :  { %889 = vmatpush.msra.mxu1 %v2789_v44 }
  0x83   :  { %902 = vmatpush.msra.mxu2 %v2841_v57  ;;  %927 = vmatpush.msra.mxu3 %v2766_v37  ;;  %v130_v37 = vperm.slane %v125_v14, 3 }
  0x84   :  { %890 = vmatpush.msra.mxu1 %v2802_v46 }
  0x85   :  { %903 = vmatpush.msra.mxu2 %v2850_v60  ;;  %928 = vmatpush.msra.mxu3 %v2776_v40 }
  0x86   :  { %891 = vmatpush.msra.mxu1 %v2813_v50 }
  0x87   :  { %904 = vmatpush.msra.mxu2 %v2860_v61  ;;  %929 = vmatpush.msra.mxu3 %v2804_v47 }
  0x88   :  { %892 = vmatpush.msra.mxu1 %v2825_v53 }
  0x89   :  { %905 = vmatpush.msra.mxu2 %v2871_v63  ;;  %930 = vmatpush.msra.mxu3 %v2808_v48 }
  0x8a   :  { %893 = vmatpush.msra.mxu1 %v2838_v56 }
  0x8b   :  { %906 = vmatpush.msra.mxu2 %v2881_v3  ;;  %931 = vmatpush.msra.mxu3 %v2836_v55 }
  0x8c   :  { %894 = vmatpush.msra.mxu1 %v2848_v59 }
  0x8d   :  { %907 = vmatpush.msra.mxu2 %v2887_v6  ;;  %932 = vmatpush.msra.mxu3 %v2844_v58 }
  0x8e   :  { %895 = vmatpush.msra.mxu1 %v2862_v62 }
  0x8f   :  { %908 = vmatpush.msra.mxu2 %v2893_v7  ;;  %933 = vmatpush.msra.mxu3 %v2875_v1  ;;  %v3109_v1 = vperm.slane %v125_v14, 0 }
  0x90   :  { %896 = vmatpush.msra.mxu1 %v2873_v0 }
  0x91   :  { %909 = vmatpush.msra.mxu2 %v2905_v8  ;;  %934 = vmatpush.msra.mxu3 %v2879_v2  ;;  %3964 = vst [vmem:[#allocation39_spill] sm:$0xff] %v3109_v1 }
  0x93   :  { %910 = vmatpush.msra.mxu2 %v2913_v18  ;;  %935 = vmatpush.msra.mxu3 %v2907_v10 }
  0x95   :  { %911 = vmatpush.msra.mxu2 %v2919_v29  ;;  %936 = vmatpush.msra.mxu3 %v2909_v11 }
  0x97   :  { %912 = vmatpush.msra.mxu2 %v2925_v31 }
  0x99   :  { %913 = vmatpush.msra.mxu2 %v2936_v32  ;;  %v3051_v5 = vpop.f32.mrf.mxu1 }
  0x9a   :  { %3948 = vst [vmem:[#allocation23_spill] sm:$0xff] %v3051_v5 }
  0x9b   :  { %914 = vmatpush.msra.mxu2 %v2940_v35 }
  0x9d   :  { %915 = vmatpush.msra.mxu2 %v2946_v38 }
  0x9e   :  { %v177_v0 = vpop.f32.mrf.mxu0 }
  0x9f   :  { %916 = vmatpush.msra.mxu2 %v2952_v4  ;;  %v178_v2 = vadd.f32 %v177_v0, %v3109_v1 }
  0xa0   :  { %v3056_v9 = vpop.f32.mrf.mxu3  ;;  %v3058_v12 = vpop.f32.mrf.mxu2 }
  0xa1   :  { %3949 = vst [vmem:[#allocation24_spill] sm:$0xff] %v3056_v9 }
  0xa2   :  { %v218_v13 = vpop.f32.mrf.mxu1 }
  0xa3   :  { %v219_v3 = vadd.f32 %v218_v13, %v128_v16 }
  0xa8   :  { %v3062_v17 = vpop.f32.mrf.mxu3 }
  0xa9   :  { %3950 = vst [vmem:[#allocation25_spill] sm:$0xff] %v3062_v17  ;;  %v262_v19 = vpop.f32.mrf.mxu2 }
  0xaa   :  { %v3065_v20 = vadd.f32 %v262_v19, %v3060_v15  ;;  %v221_v21 = vpop.f32.mrf.mxu1 }
  0xab   :  { %v3067_v22 = vadd.f32 %v221_v21, %v128_v16 }
  0xb1   :  { %v3069_v23 = vpop.f32.mrf.mxu3  ;;  %v265_v24 = vpop.f32.mrf.mxu2 }
  0xb2   :  { %3951 = vst [vmem:[#allocation26_spill] sm:$0xff] %v3069_v23  ;;  %v3072_v25 = vadd.f32 %v265_v24, %v3060_v15  ;;  %v224_v26 = vpop.f32.mrf.mxu1  ;;  %v3269_v23 = vld [vmem:[#allocation11 + $0x118] sm:$0xff] }
  0xb3   :  { %v3074_v27 = vadd.f32 %v224_v26, %v128_v16 }
  0xb9   :  { %v268_v28 = vpop.f32.mrf.mxu2  ;;  %v300_v30 = vpop.f32.mrf.mxu3 }
  0xba   :  { %v3077_v33 = vadd.f32 %v268_v28, %v3060_v15  ;;  %v227_v34 = vpop.f32.mrf.mxu1  ;;  %v301_v28 = vadd.f32 %v300_v30, %v130_v37 }
  0xbb   :  { %v3079_v36 = vadd.f32 %v227_v34, %v128_v16 }
  0xbc   :  { %3952 = vst [vmem:[#allocation27_spill] sm:$0xff] %v3077_v33 }
  0xbd   :  { %3953 = vst [vmem:[#allocation28_spill] sm:$0xff] %v3079_v36 }
  0xc1   :  { %v271_v39 = vpop.f32.mrf.mxu2  ;;  %v303_v40 = vpop.f32.mrf.mxu3 }
  0xc2   :  { %v3082_v42 = vadd.f32 %v271_v39, %v3060_v15  ;;  %v3084_v43 = vadd.f32 %v303_v40, %v130_v37  ;;  %v230_v44 = vpop.f32.mrf.mxu1 }
  0xc3   :  { %v3086_v45 = vadd.f32 %v230_v44, %v128_v16 }
  0xc4   :  { %3954 = vst [vmem:[#allocation29_spill] sm:$0xff] %v3082_v42 }
  0xc5   :  { %3955 = vst [vmem:[#allocation30_spill] sm:$0xff] %v3086_v45  ;;  %v3302_v45 = vld [vmem:[#allocation11 + $0xb8] sm:$0xff] }
  0xc9   :  { %v274_v46 = vpop.f32.mrf.mxu2  ;;  %v306_v47 = vpop.f32.mrf.mxu3 }
  0xca   :  { %v3089_v48 = vadd.f32 %v274_v46, %v3060_v15  ;;  %v3091_v49 = vadd.f32 %v306_v47, %v130_v37  ;;  %v233_v50 = vpop.f32.mrf.mxu1 }
  0xcb   :  { %v3093_v51 = vadd.f32 %v233_v50, %v128_v16 }
  0xcc   :  { %3956 = vst [vmem:[#allocation31_spill] sm:$0xff] %v3089_v48  ;;  %v3287_v48 = vld [vmem:[#allocation11 + $0xc8] sm:$0xff] }
  0xcd   :  { %3957 = vst [vmem:[#allocation32_spill] sm:$0xff] %v3093_v51  ;;  %v3291_v51 = vld [vmem:[#allocation11 + $0xd8] sm:$0xff] }
  0xd1   :  { %v277_v52 = vpop.f32.mrf.mxu2  ;;  %v309_v53 = vpop.f32.mrf.mxu3 }
  0xd2   :  { %v3096_v54 = vadd.f32 %v277_v52, %v3060_v15  ;;  %v3098_v55 = vadd.f32 %v309_v53, %v130_v37  ;;  %v236_v56 = vpop.f32.mrf.mxu1  ;;  %v260_v53 = vadd.f32 %v3058_v12, %v3060_v15 }
  0xd3   :  { %v3100_v57 = vadd.f32 %v236_v56, %v128_v16 }
  0xd4   :  { %3958 = vst [vmem:[#allocation33_spill] sm:$0xff] %v3096_v54  ;;  %v3279_v54 = vld [vmem:[#allocation11 + $0xf8] sm:$0xff] }
  0xd5   :  { %3959 = vst [vmem:[#allocation34_spill] sm:$0xff] %v3098_v55  ;;  %v3324_v55 = vld [vmem:[#allocation11 + $0x48] sm:$0xff] }
  0xd6   :  { %3960 = vst [vmem:[#allocation35_spill] sm:$0xff] %v3100_v57 }
  0xd7   :  { %3991 = vst [vmem:[#allocation64_spill] sm:$0xff] %v3324_v55 }
  0xd9   :  { %v280_v58 = vpop.f32.mrf.mxu2  ;;  %v312_v59 = vpop.f32.mrf.mxu3 }
  0xda   :  { %v3103_v60 = vadd.f32 %v280_v58, %v3060_v15  ;;  %v3105_v61 = vadd.f32 %v312_v59, %v130_v37  ;;  %v239_v62 = vpop.f32.mrf.mxu1 }
  0xdb   :  { %v3107_v63 = vadd.f32 %v239_v62, %v128_v16 }
  0xdc   :  { %3961 = vst [vmem:[#allocation36_spill] sm:$0xff] %v3103_v60  ;;  %v3259_v60 = vld [vmem:[#allocation11 + $0x138] sm:$0xff] }
  0xdd   :  { %3962 = vst [vmem:[#allocation37_spill] sm:$0xff] %v3105_v61  ;;  %v3300_v61 = vld [vmem:[#allocation11 + $0xb0] sm:$0xff] }
  0xde   :  { %3963 = vst [vmem:[#allocation38_spill] sm:$0xff] %v3107_v63  ;;  %v3267_v63 = vld [vmem:[#allocation11 + $0x110] sm:$0xff] }
  0xdf   :  { %3986 = vst [vmem:[#allocation59_spill] sm:$0xff] %v3259_v60 }
  0xe1   :  { %v315_v6 = vpop.f32.mrf.mxu3  ;;  %v443_v7 = vpop.f32.mrf.mxu2 }
  0xe2   :  { %v3112_v8 = vadd.f32 %v315_v6, %v130_v37  ;;  %v506_v10 = vadd.f32 %v443_v7, %v178_v2  ;;  %v463_v11 = vpop.f32.mrf.mxu1 }
  0xe3   :  { %v507_v18 = vadd.f32 %v463_v11, %v219_v3 }
  0xe4   :  { %3965 = vst [vmem:[#allocation40_spill] sm:$0xff] %v3112_v8  ;;  %v2252_v29 = vmul.f32 -1.442695, %v506_v10  ;;  %v3289_v8 = vld [vmem:[#allocation11 + $0xd0] sm:$0xff] }
  0xe5   :  { %v2253_v31 = vmul.f32 -1.442695, %v507_v18 }
  0xe6   :  { %2293 = vpow2.f32 %v2252_v29 }
  0xe7   :  { %2295 = vpow2.f32 %v2253_v31 }
  0xe9   :  { %v318_v32 = vpop.f32.mrf.mxu3  ;;  %v483_v50 = vpop.f32.mrf.mxu2 }
  0xea   :  { %v3114_v35 = vadd.f32 %v318_v32, %v130_v37  ;;  %v508_v59 = vadd.f32 %v483_v50, %v260_v53  ;;  %v3139_v50 = vld [vmem:[#allocation11 + $0x120] sm:$0xff] }
  0xeb   :  { %867 = vmatpush.msra.mxu0 %v3139_v50  ;;  %v3145_v53 = vld [vmem:[#allocation11 + $0xe0] sm:$0xff] }
  0xec   :  { %3966 = vst [vmem:[#allocation41_spill] sm:$0xff] %v3114_v35  ;;  %v2294_v38 = vpop.eup %2293 }
  0xed   :  { %v2296_v4 = vpop.eup %2295  ;;  %v513_v41 = vadd.f32 1.0, %v2294_v38 }
  0xee   :  { %v532_v14 = vadd.f32 1.0, %v2296_v4 }
  0xef   :  { %2297 = vrcp.f32 %v513_v41  ;;  %vm519_vm1 = vweird.f32 %v513_v41  ;;  %v525_v62 = vand.u32 2147483648, %v513_v41  ;;  %v523_v0 = vand.u32 2147483647, %v513_v41 }
  0xf0   :  { %2299 = vrcp.f32 %v532_v14  ;;  %v544_v58 = vand.u32 2147483648, %v532_v14  ;;  %vm538_vm4 = vweird.f32 %v532_v14  ;;  %v542_v2 = vand.u32 2147483647, %v532_v14 }
  0xf1   :  { %v321_v13 = vpop.f32.mrf.mxu3  ;;  %v526_v15 = vor.u32 1.1754944e-38, %v525_v62  ;;  %vm524_vm7 = vcmp.eq.f32.partialorder %v523_v0, 8.507059e+37  ;;  %v3149_v62 = vld [vmem:[#allocation11 + $0xc0] sm:$0xff] }
  0xf2   :  { %v3116_v16 = vadd.f32 %v321_v13, %v130_v37  ;;  %v545_v12 = vor.u32 1.1754944e-38, %v544_v58  ;;  %vm543_vm8 = vcmp.eq.f32.partialorder %v542_v2, 8.507059e+37  ;;  %v3153_v0 = vld [vmem:[#allocation11 + $0xa0] sm:$0xff] }
  0xf4   :  { %3967 = vst [vmem:[#allocation42_spill] sm:$0xff] %v3116_v16  ;;  %v3265_v16 = vld [vmem:[#allocation11 + $0x108] sm:$0xff] }
  0xf5   :  { %v2298_v19 = vpop.eup %2297 }
  0xf6   :  { %v2300_v21 = vpop.eup %2299  ;;  %v515_v24 = vmul.f32 %v2298_v19, %v513_v41  ;;  %vm520_vm2 = vweird.f32 %v2298_v19 }
  0xf7   :  { %v534_v26 = vmul.f32 %v2300_v21, %v532_v14  ;;  %vm539_vm3 = vweird.f32 %v2300_v21  ;;  %vm3120_vm5 = vmor %vm519_vm1, %vm520_vm2 }
  0xf8   :  { %v516_v34 = vsub.f32 1.0, %v515_v24  ;;  %vm540_vm6 = vmor %vm538_vm4, %vm539_vm3 }
  0xf9   :  { %v535_v39 = vsub.f32 1.0, %v534_v26  ;;  %v503_v40 = vpop.f32.mrf.mxu3 }
  0xfa   :  { %v509_v44 = vadd.f32 %v503_v40, %v301_v28  ;;  %v517_v52 = vmul.f32 %v2298_v19, %v516_v34 }
  0xfb   :  { %v536_v46 = vmul.f32 %v2300_v21, %v535_v39 }
  0xfc   :  { %v2254_v47 = vmul.f32 -1.442695, %v509_v44  ;;  %v518_v30 = vadd.f32 %v2298_v19, %v517_v52  ;;  %v180_v44 = vpop.f32.mrf.mxu0  ;;  %v3142_v52 = vld [vmem:[#allocation11 + $0x100] sm:$0xff] }
  0xfd   :  { %v537_v56 = vadd.f32 %v2300_v21, %v536_v46  ;;  %868 = vmatpush.msra.mxu0 %v3142_v52 }
  0xfe   :  { %2301 = vpow2.f32 %v2254_v47  ;;  %v522_v7 = vsel %vm3120_vm5, %v2298_v19, %v518_v30 }
  0xff   :  { %v541_v3 = vsel %vm540_vm6, %v2300_v21, %v537_v56  ;;  %2303 = vtanh.f32 %v508_v59  ;;  %v527_v18 = vsel %vm524_vm7, %v526_v15, %v522_v7  ;;  %v181_v56 = vadd.f32 %v180_v44, %v3109_v1  ;;  %869 = vmatpush.msra.mxu0 %v3145_v53  ;;  %v3161_v15 = vld [vmem:[#allocation11 + $0x40] sm:$0xff] }
 0x100   :  { %v546_v11 = vsel %vm543_vm8, %v545_v12, %v541_v3  ;;  %v3158_v12 = vld [vmem:[#allocation11 + $0x60] sm:$0xff]  ;;  %3973 = vst [vmem:[#allocation46_spill] sm:$0xff] %v3161_v15 }
 0x101   :  { %v568_v29 = vmul.f32 0.0, %v546_v11  ;;  %870 = vmatpush.msra.mxu0 %v3149_v62  ;;  %3972 = vst [vmem:[#allocation45_spill] sm:$0xff] %v3158_v12 }
 0x103   :  { %871 = vmatpush.msra.mxu0 %v3153_v0 }
 0x104   :  { %v2302_v6 = vpop.eup %2301  ;;  %v3135_v46 = vpop.f32.mrf.mxu0 }
 0x105   :  { %v552_v10 = vadd.f32 1.0, %v2302_v6  ;;  %v2304_v31 = vpop.eup %2303  ;;  %v3156_v6 = vld [vmem:[#allocation11 + $0x80] sm:$0xff]  ;;  %v184_v35 = vadd.f32 %v3135_v46, %v3109_v1  ;;  %v3298_v46 = vld [vmem:[#allocation11 + $0xa8] sm:$0xff] }
 0x106   :  { %v569_v32 = vmul.f32 %v2304_v31, %v527_v18  ;;  %872 = vmatpush.msra.mxu0 %v3156_v6  ;;  %v3168_v18 = vld [vmem:[#allocation11] sm:$0xff] }
 0x107   :  { %2305 = vrcp.f32 %v552_v10  ;;  %v564_v13 = vand.u32 2147483648, %v552_v10  ;;  %v562_v19 = vand.u32 2147483647, %v552_v10  ;;  %vm558_vm10 = vweird.f32 %v552_v10 }
 0x108   :  { %v3126_v4 = vadd.f32 %v569_v32, %v568_v29  ;;  %873 = vmatpush.msra.mxu0 %v3158_v12 }
 0x109   :  { %v565_v26 = vor.u32 1.1754944e-38, %v564_v13  ;;  %vm563_vm12 = vcmp.eq.f32.partialorder %v562_v19, 8.507059e+37 }
 0x10a   :  { %2307 = vtanh.f32 %v3126_v4  ;;  %874 = vmatpush.msra.mxu0 %v3161_v15 }
 0x10c   :  { %v3137_v47 = vpop.f32.mrf.mxu0 }
 0x10d   :  { %v2306_v38 = vpop.eup %2305  ;;  %3971 = vst [vmem:[#allocation44_spill] sm:$0xff] %v3137_v47  ;;  %v3330_v47 = vld [vmem:[#allocation11 + $0x58] sm:$0xff] }
 0x10e   :  { %v554_v41 = vmul.f32 %v2306_v38, %v552_v10  ;;  %vm559_vm9 = vweird.f32 %v2306_v38  ;;  %v3165_v10 = vld [vmem:[#allocation11 + $0x20] sm:$0xff] }
 0x10f   :  { %vm560_vm11 = vmor %vm558_vm10, %vm559_vm9  ;;  %875 = vmatpush.msra.mxu0 %v3165_v10 }
 0x110   :  { %v555_v14 = vsub.f32 1.0, %v554_v41  ;;  %v2308_v34 = vpop.eup %2307 }
 0x111   :  { %876 = vmatpush.msra.mxu0 %v3168_v18 }
 0x112   :  { %v556_v21 = vmul.f32 %v2306_v38, %v555_v14 }
 0x114   :  { %v557_v24 = vadd.f32 %v2306_v38, %v556_v21 }
 0x116   :  { %v561_v28 = vsel %vm560_vm11, %v2306_v38, %v557_v24 }
 0x117   :  { %v566_v39 = vsel %vm563_vm12, %v565_v26, %v561_v28 }
 0x118   :  { %v3129_v40 = vmul.f32 %v2308_v34, %v566_v39 }
 0x11a   :  { %3970 = vst [vmem:[#allocation43_spill] sm:$0xff] %v3129_v40  ;;  %659 = vmatmul.f32.vlgmr.msrb.gmra.mxu0 %v3129_v40  ;;  %679 = vmatmul.f32.vlgmr.msrb.gmra.mxu1 %v3129_v40 }
 0x11b   :  { %699 = vmatmul.f32.vlgmr.msrb.gmra.mxu2 %v3129_v40  ;;  %719 = vmatmul.f32.vlgmr.msrb.gmra.mxu3 %v3129_v40  ;;  %v3277_v40 = vld [vmem:[#allocation11 + $0xf0] sm:$0xff] }
 0x197   :  { %v660_v58 = vpop.f32.mrf.mxu0  ;;  %v680_v59 = vpop.f32.mrf.mxu1 }
 0x198   :  { %v723_v30 = vadd.f32 %v660_v58, %v181_v56  ;;  %v724_v37 = vadd.f32 %v680_v59, %v3067_v22 }
 0x19a   :  { %v2255_v2 = vmul.f32 -1.442695, %v723_v30  ;;  %v2256_v3 = vmul.f32 -1.442695, %v724_v37 }
 0x19c   :  { %2309 = vpow2.f32 %v2255_v2 }
 0x19d   :  { %2311 = vpow2.f32 %v2256_v3 }
 0x19e   :  { %v720_v7 = vpop.f32.mrf.mxu3  ;;  %v700_v41 = vpop.f32.mrf.mxu2 }
 0x19f   :  { %v726_v22 = vadd.f32 %v720_v7, %v3084_v43  ;;  %v725_v21 = vadd.f32 %v700_v41, %v3065_v20 }
 0x1a1   :  { %v2257_v11 = vmul.f32 -1.442695, %v726_v22 }
 0x1a2   :  { %v2310_v29 = vpop.eup %2309 }
 0x1a3   :  { %v2312_v31 = vpop.eup %2311  ;;  %v730_v32 = vadd.f32 1.0, %v2310_v29  ;;  %2313 = vpow2.f32 %v2257_v11 }
 0x1a4   :  { %v749_v38 = vadd.f32 1.0, %v2312_v31 }
 0x1a5   :  { %2315 = vrcp.f32 %v730_v32  ;;  %v742_v39 = vand.u32 2147483648, %v730_v32  ;;  %v740_v58 = vand.u32 2147483647, %v730_v32  ;;  %vm736_vm15 = vweird.f32 %v730_v32 }
 0x1a6   :  { %2317 = vrcp.f32 %v749_v38  ;;  %v761_v44 = vand.u32 2147483648, %v749_v38  ;;  %v759_v30 = vand.u32 2147483647, %v749_v38  ;;  %vm755_vm0 = vweird.f32 %v749_v38 }
 0x1a7   :  { %v743_v20 = vor.u32 1.1754944e-38, %v742_v39  ;;  %vm741_vm3 = vcmp.eq.f32.partialorder %v740_v58, 8.507059e+37 }
 0x1a8   :  { %v762_v22 = vor.u32 1.1754944e-38, %v761_v44  ;;  %vm760_vm4 = vcmp.eq.f32.partialorder %v759_v30, 8.507059e+37  ;;  %v3191_v30 = vld [vmem:[#allocation11 + $0x1f8] sm:$0xff] }
 0x1a9   :  { %v2314_v43 = vpop.eup %2313  ;;  %1139 = vmatpush.msrb.mxu3 %v3191_v30 }
 0x1aa   :  { %v769_v14 = vadd.f32 1.0, %v2314_v43 }
 0x1ab   :  { %v2316_v13 = vpop.eup %2315 }
 0x1ac   :  { %v2318_v19 = vpop.eup %2317  ;;  %v732_v24 = vmul.f32 %v2316_v13, %v730_v32  ;;  %2319 = vrcp.f32 %v769_v14  ;;  %vm737_vm13 = vweird.f32 %v2316_v13  ;;  %vm775_vm6 = vweird.f32 %v769_v14 }
 0x1ad   :  { %v751_v26 = vmul.f32 %v2318_v19, %v749_v38  ;;  %2321 = vtanh.f32 %v725_v21  ;;  %vm756_vm14 = vweird.f32 %v2318_v19  ;;  %vm738_vm1 = vmor %vm736_vm15, %vm737_vm13 }
 0x1ae   :  { %v733_v28 = vsub.f32 1.0, %v732_v24  ;;  %vm757_vm2 = vmor %vm755_vm0, %vm756_vm14 }
 0x1af   :  { %v752_v34 = vsub.f32 1.0, %v751_v26 }
 0x1b0   :  { %v734_v56 = vmul.f32 %v2316_v13, %v733_v28 }
 0x1b1   :  { %v753_v59 = vmul.f32 %v2318_v19, %v752_v34  ;;  %v781_v34 = vand.u32 2147483648, %v769_v14 }
 0x1b2   :  { %v2320_v37 = vpop.eup %2319  ;;  %v735_v2 = vadd.f32 %v2316_v13, %v734_v56 }
 0x1b3   :  { %v754_v3 = vadd.f32 %v2318_v19, %v753_v59  ;;  %v771_v7 = vmul.f32 %v2320_v37, %v769_v14  ;;  %v2322_v29 = vpop.eup %2321  ;;  %vm776_vm5 = vweird.f32 %v2320_v37  ;;  %v782_v44 = vor.u32 1.1754944e-38, %v781_v34  ;;  %v3185_v59 = vld [vmem:[#allocation11 + $0x1e8] sm:$0xff]  ;;  %v3243_v34 = vld [vmem:[#allocation11 + $0x140] sm:$0xff] }
 0x1b4   :  { %v739_v11 = vsel %vm738_vm1, %v2316_v13, %v735_v2  ;;  %v779_v13 = vand.u32 2147483647, %v769_v14  ;;  %vm777_vm7 = vmor %vm775_vm6, %vm776_vm5  ;;  %3975 = vst [vmem:[#allocation48_spill] sm:$0xff] %v3185_v59  ;;  %v3187_v14 = vld [vmem:[#allocation11 + $0x1f0] sm:$0xff]  ;;  %1099 = vmatpush.msrb.mxu1 %v3185_v59  ;;  %v3197_v2 = vld [vmem:[#allocation11 + $0x1c8] sm:$0xff] }
 0x1b5   :  { %v744_v31 = vsel %vm741_vm3, %v743_v20, %v739_v11  ;;  %v758_v41 = vsel %vm757_vm2, %v2318_v19, %v754_v3  ;;  %v772_v43 = vsub.f32 1.0, %v771_v7  ;;  %3976 = vst [vmem:[#allocation49_spill] sm:$0xff] %v3187_v14  ;;  %1119 = vmatpush.msrb.mxu2 %v3187_v14  ;;  %v3199_v20 = vld [vmem:[#allocation11 + $0x1d0] sm:$0xff]  ;;  %v3203_v3 = vld [vmem:[#allocation11 + $0x1d8] sm:$0xff]  ;;  %v3207_v7 = vld [vmem:[#allocation11 + $0x1a0] sm:$0xff] }
 0x1b6   :  { %v763_v21 = vsel %vm760_vm4, %v762_v22, %v758_v41  ;;  %v786_v24 = vmul.f32 %v2322_v29, %v744_v31  ;;  %vm780_vm8 = vcmp.eq.f32.partialorder %v779_v13, 8.507059e+37  ;;  %3978 = vst [vmem:[#allocation51_spill] sm:$0xff] %v3197_v2  ;;  %1100 = vmatpush.msrb.mxu1 %v3197_v2  ;;  %1140 = vmatpush.msrb.mxu3 %v3203_v3  ;;  %v3209_v22 = vld [vmem:[#allocation11 + $0x1a8] sm:$0xff]  ;;  %v3211_v11 = vld [vmem:[#allocation11 + $0x1b0] sm:$0xff]  ;;  %v3215_v29 = vld [vmem:[#allocation11 + $0x1b8] sm:$0xff] }
 0x1b7   :  { %v785_v26 = vmul.f32 %v763_v21, %v3126_v4  ;;  %v773_v28 = vmul.f32 %v2320_v37, %v772_v43  ;;  %v3183_v4 = vld [vmem:[#allocation11 + $0x1e0] sm:$0xff]  ;;  %1120 = vmatpush.msrb.mxu2 %v3199_v20  ;;  %3979 = vst [vmem:[#allocation52_spill] sm:$0xff] %v3215_v29  ;;  %v3221_v41 = vld [vmem:[#allocation11 + $0x188] sm:$0xff]  ;;  %v3223_v43 = vld [vmem:[#allocation11 + $0x190] sm:$0xff] }
 0x1b8   :  { %1079 = vmatpush.msrb.mxu0 %v3183_v4  ;;  %1101 = vmatpush.msrb.mxu1 %v3209_v22  ;;  %v3219_v31 = vld [vmem:[#allocation11 + $0x180] sm:$0xff]  ;;  %3981 = vst [vmem:[#allocation54_spill] sm:$0xff] %v3221_v41  ;;  %v3227_v21 = vld [vmem:[#allocation11 + $0x198] sm:$0xff]  ;;  %v3245_v13 = vld [vmem:[#allocation11 + $0x148] sm:$0xff] }
 0x1b9   :  { %v3174_v32 = vadd.f32 %v786_v24, %v785_v26  ;;  %v774_v38 = vadd.f32 %v2320_v37, %v773_v28  ;;  %1121 = vmatpush.msrb.mxu2 %v3211_v11  ;;  %1141 = vmatpush.msrb.mxu3 %v3215_v29  ;;  %3980 = vst [vmem:[#allocation53_spill] sm:$0xff] %v3219_v31  ;;  %v3231_v24 = vld [vmem:[#allocation11 + $0x160] sm:$0xff]  ;;  %v3233_v26 = vld [vmem:[#allocation11 + $0x168] sm:$0xff]  ;;  %v3235_v28 = vld [vmem:[#allocation11 + $0x170] sm:$0xff] }
 0x1ba   :  { %3982 = vst [vmem:[#allocation55_spill] sm:$0xff] %v3223_v43  ;;  %1102 = vmatpush.msrb.mxu1 %v3221_v41 }
 0x1bb   :  { %2323 = vtanh.f32 %v3174_v32  ;;  %v778_v39 = vsel %vm777_vm7, %v2320_v37, %v774_v38  ;;  %v3195_v37 = vld [vmem:[#allocation11 + $0x1c0] sm:$0xff]  ;;  %1122 = vmatpush.msrb.mxu2 %v3223_v43  ;;  %1142 = vmatpush.msrb.mxu3 %v3227_v21  ;;  %v3239_v38 = vld [vmem:[#allocation11 + $0x178] sm:$0xff] }
 0x1bc   :  { %v783_v56 = vsel %vm780_vm8, %v782_v44, %v778_v39  ;;  %3977 = vst [vmem:[#allocation50_spill] sm:$0xff] %v3195_v37  ;;  %1080 = vmatpush.msrb.mxu0 %v3195_v37  ;;  %1103 = vmatpush.msrb.mxu1 %v3233_v26  ;;  %v3247_v39 = vld [vmem:[#allocation11 + $0x150] sm:$0xff]  ;;  %v3251_v44 = vld [vmem:[#allocation11 + $0x158] sm:$0xff] }
 0x1bd   :  { %3983 = vst [vmem:[#allocation56_spill] sm:$0xff] %v3239_v38  ;;  %1123 = vmatpush.msrb.mxu2 %v3235_v28  ;;  %1143 = vmatpush.msrb.mxu3 %v3239_v38 }
 0x1be   :  { %1081 = vmatpush.msrb.mxu0 %v3207_v7  ;;  %3984 = vst [vmem:[#allocation57_spill] sm:$0xff] %v3247_v39  ;;  %1104 = vmatpush.msrb.mxu1 %v3245_v13 }
 0x1bf   :  { %1124 = vmatpush.msrb.mxu2 %v3247_v39  ;;  %1144 = vmatpush.msrb.mxu3 %v3251_v44 }
 0x1c0   :  { %1082 = vmatpush.msrb.mxu0 %v3219_v31 }
 0x1c1   :  { %v2324_v19 = vpop.eup %2323  ;;  %1145 = vmatpush.msrb.mxu3 %v3259_v60 }
 0x1c2   :  { %v3177_v58 = vmul.f32 %v2324_v19, %v783_v56  ;;  %1083 = vmatpush.msrb.mxu0 %v3231_v24  ;;  %v3255_v19 = vld [vmem:[#allocation11 + $0x128] sm:$0xff]  ;;  %v3257_v56 = vld [vmem:[#allocation11 + $0x130] sm:$0xff] }
 0x1c3   :  { %3985 = vst [vmem:[#allocation58_spill] sm:$0xff] %v3257_v56  ;;  %1105 = vmatpush.msrb.mxu1 %v3255_v19  ;;  %1125 = vmatpush.msrb.mxu2 %v3257_v56 }
 0x1c4   :  { %3974 = vst [vmem:[#allocation47_spill] sm:$0xff] %v3177_v58  ;;  %877 = vmatmul.f32.vlgmr.msra.gmra.mxu0 %v3177_v58  ;;  %897 = vmatmul.f32.vlgmr.msra.gmra.mxu1 %v3177_v58 }
 0x1c5   :  { %917 = vmatmul.f32.vlgmr.msra.gmra.mxu2 %v3177_v58  ;;  %937 = vmatmul.f32.vlgmr.msra.gmra.mxu3 %v3177_v58  ;;  %v3275_v58 = vld [vmem:[#allocation11 + $0xe8] sm:$0xff] }
 0x1c6   :  { %1084 = vmatpush.msrb.mxu0 %v3243_v34  ;;  %1106 = vmatpush.msrb.mxu1 %v3265_v16 }
 0x1c7   :  { %1126 = vmatpush.msrb.mxu2 %v3267_v63  ;;  %1146 = vmatpush.msrb.mxu3 %v3269_v23 }
 0x1c8   :  { %1085 = vmatpush.msrb.mxu0 %v3139_v50  ;;  %1107 = vmatpush.msrb.mxu1 %v3275_v58 }
 0x1c9   :  { %1127 = vmatpush.msrb.mxu2 %v3277_v40  ;;  %1147 = vmatpush.msrb.mxu3 %v3279_v54 }
 0x1ca   :  { %1086 = vmatpush.msrb.mxu0 %v3142_v52  ;;  %1108 = vmatpush.msrb.mxu1 %v3287_v48 }
 0x1cb   :  { %1128 = vmatpush.msrb.mxu2 %v3289_v8  ;;  %1148 = vmatpush.msrb.mxu3 %v3291_v51 }
 0x1cc   :  { %1087 = vmatpush.msrb.mxu0 %v3145_v53  ;;  %1109 = vmatpush.msrb.mxu1 %v3298_v46 }
 0x1cd   :  { %1129 = vmatpush.msrb.mxu2 %v3300_v61  ;;  %1149 = vmatpush.msrb.mxu3 %v3302_v45 }
 0x1ce   :  { %1088 = vmatpush.msrb.mxu0 %v3149_v62 }
 0x1d0   :  { %1089 = vmatpush.msrb.mxu0 %v3153_v0 }
 0x1d2   :  { %1090 = vmatpush.msrb.mxu0 %v3156_v6 }
 0x1d4   :  { %1091 = vmatpush.msrb.mxu0 %v3158_v12  ;;  %v3341_v12 = vld [vmem:[#allocation11 + $0x38] sm:$0xff] }
 0x1d6   :  { %1092 = vmatpush.msrb.mxu0 %v3161_v15  ;;  %v3351_v15 = vld [vmem:[#allocation11 + $0x18] sm:$0xff] }
 0x1d8   :  { %1093 = vmatpush.msrb.mxu0 %v3165_v10 }
 0x1da   :  { %1094 = vmatpush.msrb.mxu0 %v3168_v18 }
 0x1dc   :  { %1297 = vmatpush.msra.mxu0 %v3183_v4 }
 0x1de   :  { %1298 = vmatpush.msra.mxu0 %v3195_v37 }
 0x1e0   :  { %1299 = vmatpush.msra.mxu0 %v3207_v7 }
 0x1e2   :  { %1300 = vmatpush.msra.mxu0 %v3219_v31 }
 0x1e4   :  { %1301 = vmatpush.msra.mxu0 %v3231_v24 }
 0x1e6   :  { %1302 = vmatpush.msra.mxu0 %v3243_v34 }
 0x1e8   :  { %1303 = vmatpush.msra.mxu0 %v3139_v50 }
 0x1ea   :  { %1304 = vmatpush.msra.mxu0 %v3142_v52 }
 0x1ec   :  { %1305 = vmatpush.msra.mxu0 %v3145_v53 }
 0x1ee   :  { %1306 = vmatpush.msra.mxu0 %v3149_v62 }
 0x1f0   :  { %1307 = vmatpush.msra.mxu0 %v3153_v0 }
 0x1f2   :  { %1308 = vmatpush.msra.mxu0 %v3156_v6  ;;  %v3997_v6 = vld [vmem:[#allocation46_spill] sm:$0xff] }
 0x241   :  { %v878_v57 = vpop.f32.mrf.mxu0  ;;  %v898_v17 = vpop.f32.mrf.mxu1 }
 0x242   :  { %v941_v9 = vadd.f32 %v878_v57, %v184_v35  ;;  %v942_v42 = vadd.f32 %v898_v17, %v3074_v27  ;;  %v3308_v17 = vld [vmem:[#allocation11 + $0x88] sm:$0xff]  ;;  %v3310_v27 = vld [vmem:[#allocation11 + $0x90] sm:$0xff]  ;;  %v3312_v57 = vld [vmem:[#allocation11 + $0x98] sm:$0xff] }
 0x243   :  { %3987 = vst [vmem:[#allocation60_spill] sm:$0xff] %v3312_v57  ;;  %1110 = vmatpush.msrb.mxu1 %v3308_v17  ;;  %v3320_v35 = vld [vmem:[#allocation11 + $0x78] sm:$0xff]  ;;  %1130 = vmatpush.msrb.mxu2 %v3310_v27 }
 0x244   :  { %v2258_v5 = vmul.f32 -1.442695, %v941_v9  ;;  %v2259_v33 = vmul.f32 -1.442695, %v942_v42  ;;  %v3316_v9 = vld [vmem:[#allocation11 + $0x68] sm:$0xff]  ;;  %v3318_v42 = vld [vmem:[#allocation11 + $0x70] sm:$0xff]  ;;  %1150 = vmatpush.msrb.mxu3 %v3312_v57 }
 0x245   :  { %3988 = vst [vmem:[#allocation61_spill] sm:$0xff] %v3316_v9  ;;  %1111 = vmatpush.msrb.mxu1 %v3316_v9  ;;  %1131 = vmatpush.msrb.mxu2 %v3318_v42  ;;  %v3339_v57 = vld [vmem:[#allocation11 + $0x30] sm:$0xff] }
 0x246   :  { %2325 = vpow2.f32 %v2258_v5  ;;  %3989 = vst [vmem:[#allocation62_spill] sm:$0xff] %v3318_v42  ;;  %v3328_v5 = vld [vmem:[#allocation11 + $0x50] sm:$0xff]  ;;  %1151 = vmatpush.msrb.mxu3 %v3320_v35 }
 0x247   :  { %3990 = vst [vmem:[#allocation63_spill] sm:$0xff] %v3320_v35  ;;  %2327 = vpow2.f32 %v2259_v33  ;;  %v3335_v33 = vld [vmem:[#allocation11 + $0x28] sm:$0xff]  ;;  %1112 = vmatpush.msrb.mxu1 %v3324_v55  ;;  %1132 = vmatpush.msrb.mxu2 %v3328_v5  ;;  %v3349_v35 = vld [vmem:[#allocation11 + $0x10] sm:$0xff] }
 0x248   :  { %v938_v36 = vpop.f32.mrf.mxu3  ;;  %1152 = vmatpush.msrb.mxu3 %v3330_v47 }
 0x249   :  { %v944_v1 = vadd.f32 %v938_v36, %v3091_v49  ;;  %v3345_v36 = vld [vmem:[#allocation11 + $0x8] sm:$0xff]  ;;  %1113 = vmatpush.msrb.mxu1 %v3335_v33  ;;  %1133 = vmatpush.msrb.mxu2 %v3339_v57 }
 0x24a   :  { %1153 = vmatpush.msrb.mxu3 %v3341_v12  ;;  %v3992_v0 = vld [vmem:[#allocation60_spill] sm:$0xff] }
 0x24b   :  { %v2260_v9 = vmul.f32 -1.442695, %v944_v1  ;;  %1114 = vmatpush.msrb.mxu1 %v3345_v36  ;;  %1134 = vmatpush.msrb.mxu2 %v3349_v35 }
 0x24c   :  { %v2326_v49 = vpop.eup %2325  ;;  %1154 = vmatpush.msrb.mxu3 %v3351_v15 }
 0x24d   :  { %v2328_v55 = vpop.eup %2327  ;;  %v3353_v42 = vadd.f32 1.0, %v2326_v49  ;;  %2329 = vpow2.f32 %v2260_v9  ;;  %1317 = vmatpush.msra.mxu1 %v3185_v59  ;;  %1337 = vmatpush.msra.mxu2 %v3187_v14 }
 0x24e   :  { %v3357_v1 = vadd.f32 1.0, %v2328_v55  ;;  %1357 = vmatpush.msra.mxu3 %v3191_v30  ;;  %v918_v55 = vpop.f32.mrf.mxu2 }
 0x24f   :  { %2331 = vrcp.f32 %v3353_v42  ;;  %1318 = vmatpush.msra.mxu1 %v3197_v2  ;;  %1338 = vmatpush.msra.mxu2 %v3199_v20  ;;  %v943_v14 = vadd.f32 %v918_v55, %v3072_v25  ;;  %vm954_vm11 = vweird.f32 %v3353_v42 }
 0x250   :  { %2333 = vrcp.f32 %v3357_v1  ;;  %1358 = vmatpush.msra.mxu3 %v3203_v3  ;;  %vm973_vm12 = vweird.f32 %v3357_v1 }
 0x251   :  { %1319 = vmatpush.msra.mxu1 %v3209_v22  ;;  %1339 = vmatpush.msra.mxu2 %v3211_v11 }
 0x252   :  { %1359 = vmatpush.msra.mxu3 %v3215_v29  ;;  %v960_v29 = vand.u32 2147483648, %v3353_v42 }
 0x253   :  { %v2330_v9 = vpop.eup %2329  ;;  %1320 = vmatpush.msra.mxu1 %v3221_v41  ;;  %1340 = vmatpush.msra.mxu2 %v3223_v43  ;;  %v979_v41 = vand.u32 2147483648, %v3357_v1  ;;  %v958_v43 = vand.u32 2147483647, %v3353_v42 }
 0x254   :  { %v3373_v49 = vadd.f32 1.0, %v2330_v9  ;;  %1360 = vmatpush.msra.mxu3 %v3227_v21 }
 0x255   :  { %v2332_v59 = vpop.eup %2331  ;;  %1321 = vmatpush.msra.mxu1 %v3233_v26  ;;  %1341 = vmatpush.msra.mxu2 %v3235_v28  ;;  %vm959_vm15 = vcmp.eq.f32.partialorder %v958_v43, 8.507059e+37  ;;  %v3994_v43 = vld [vmem:[#allocation61_spill] sm:$0xff] }
 0x256   :  { %v2334_v37 = vpop.eup %2333  ;;  %v950_v2 = vmul.f32 %v2332_v59, %v3353_v42  ;;  %2335 = vrcp.f32 %v3373_v49  ;;  %1361 = vmatpush.msra.mxu3 %v3239_v38  ;;  %vm955_vm9 = vweird.f32 %v2332_v59  ;;  %v999_v62 = vand.u32 2147483648, %v3373_v49 }
 0x257   :  { %v969_v9 = vmul.f32 %v2334_v37, %v3357_v1  ;;  %2337 = vtanh.f32 %v943_v14  ;;  %1322 = vmatpush.msra.mxu1 %v3245_v13  ;;  %vm974_vm10 = vweird.f32 %v2334_v37  ;;  %1342 = vmatpush.msra.mxu2 %v3247_v39  ;;  %vm956_vm13 = vmor %vm954_vm11, %vm955_vm9  ;;  %vm993_vm2 = vweird.f32 %v3373_v49 }
 0x258   :  { %v951_v25 = vsub.f32 1.0, %v950_v2  ;;  %1362 = vmatpush.msra.mxu3 %v3251_v44  ;;  %vm975_vm14 = vmor %vm973_vm12, %vm974_vm10 }
 0x259   :  { %v970_v55 = vsub.f32 1.0, %v969_v9  ;;  %v977_v9 = vand.u32 2147483647, %v3357_v1  ;;  %1323 = vmatpush.msra.mxu1 %v3255_v19  ;;  %1343 = vmatpush.msra.mxu2 %v3257_v56 }
 0x25a   :  { %v952_v31 = vmul.f32 %v2332_v59, %v951_v25  ;;  %v961_v25 = vor.u32 1.1754944e-38, %v960_v29  ;;  %1363 = vmatpush.msra.mxu3 %v3259_v60 }
 0x25b   :  { %v971_v2 = vmul.f32 %v2334_v37, %v970_v55  ;;  %1324 = vmatpush.msra.mxu1 %v3265_v16  ;;  %vm978_vm0 = vcmp.eq.f32.partialorder %v977_v9, 8.507059e+37  ;;  %1344 = vmatpush.msra.mxu2 %v3267_v63 }
 0x25c   :  { %v3399_v14 = vpop.eup %2335  ;;  %v953_v38 = vadd.f32 %v2332_v59, %v952_v31  ;;  %v980_v31 = vor.u32 1.1754944e-38, %v979_v41  ;;  %1364 = vmatpush.msra.mxu3 %v3269_v23  ;;  %v3993_v41 = vld [vmem:[#allocation45_spill] sm:$0xff] }
 0x25d   :  { %v972_v55 = vadd.f32 %v2334_v37, %v971_v2  ;;  %v989_v39 = vmul.f32 %v3399_v14, %v3373_v49  ;;  %v2338_v50 = vpop.eup %2337  ;;  %1325 = vmatpush.msra.mxu1 %v3275_v58  ;;  %1345 = vmatpush.msra.mxu2 %v3277_v40  ;;  %vm994_vm1 = vweird.f32 %v3399_v14 }
 0x25e   :  { %v957_v42 = vsel %vm956_vm13, %v2332_v59, %v953_v38  ;;  %1365 = vmatpush.msra.mxu3 %v3279_v54  ;;  %vm995_vm3 = vmor %vm993_vm2, %vm994_vm1  ;;  %1309 = vmatpush.msra.mxu0 %v3993_v41  ;;  %v1000_v38 = vor.u32 1.1754944e-38, %v999_v62 }
 0x25f   :  { %v962_v1 = vsel %vm959_vm15, %v961_v25, %v957_v42  ;;  %v976_v29 = vsel %vm975_vm14, %v2334_v37, %v972_v55  ;;  %v990_v2 = vsub.f32 1.0, %v989_v39  ;;  %1326 = vmatpush.msra.mxu1 %v3287_v48  ;;  %1346 = vmatpush.msra.mxu2 %v3289_v8  ;;  %v3995_v39 = vld [vmem:[#allocation62_spill] sm:$0xff]  ;;  %v4001_v55 = vld [vmem:[#allocation49_spill] sm:$0xff]  ;;  %v4003_v42 = vld [vmem:[#allocation51_spill] sm:$0xff] }
 0x260   :  { %v981_v56 = vsel %vm978_vm0, %v980_v31, %v976_v29  ;;  %v1004_v60 = vmul.f32 %v2338_v50, %v962_v1  ;;  %1366 = vmatpush.msra.mxu3 %v3291_v51  ;;  %1310 = vmatpush.msra.mxu0 %v3997_v6  ;;  %v4002_v31 = vld [vmem:[#allocation50_spill] sm:$0xff] }
 0x261   :  { %v1003_v59 = vmul.f32 %v981_v56, %v3174_v32  ;;  %v991_v52 = vmul.f32 %v3399_v14, %v990_v2  ;;  %1327 = vmatpush.msra.mxu1 %v3298_v46  ;;  %1347 = vmatpush.msra.mxu2 %v3300_v61  ;;  %v3996_v56 = vld [vmem:[#allocation63_spill] sm:$0xff]  ;;  %v4006_v50 = vld [vmem:[#allocation54_spill] sm:$0xff] }
 0x262   :  { %1367 = vmatpush.msra.mxu3 %v3302_v45  ;;  %1311 = vmatpush.msra.mxu0 %v3165_v10  ;;  %v4000_v10 = vld [vmem:[#allocation48_spill] sm:$0xff] }
 0x263   :  { %v3423_v37 = vadd.f32 %v1004_v60, %v1003_v59  ;;  %v992_v53 = vadd.f32 %v3399_v14, %v991_v52  ;;  %v997_v60 = vand.u32 2147483647, %v3373_v49  ;;  %1328 = vmatpush.msra.mxu1 %v3308_v17  ;;  %1348 = vmatpush.msra.mxu2 %v3310_v27  ;;  %v3998_v49 = vld [vmem:[#allocation64_spill] sm:$0xff] }
 0x264   :  { %1368 = vmatpush.msra.mxu3 %v3992_v0  ;;  %1312 = vmatpush.msra.mxu0 %v3168_v18  ;;  %v4004_v18 = vld [vmem:[#allocation52_spill] sm:$0xff] }
 0x265   :  { %2339 = vtanh.f32 %v3423_v37  ;;  %v996_v32 = vsel %vm995_vm3, %v3399_v14, %v992_v53  ;;  %1329 = vmatpush.msra.mxu1 %v3994_v43  ;;  %1349 = vmatpush.msra.mxu2 %v3995_v39  ;;  %vm998_vm4 = vcmp.eq.f32.partialorder %v997_v60, 8.507059e+37 }
 0x266   :  { %1369 = vmatpush.msra.mxu3 %v3996_v56  ;;  %v1001_v25 = vsel %vm998_vm4, %v1000_v38, %v996_v32 }
 0x267   :  { %1330 = vmatpush.msra.mxu1 %v3998_v49  ;;  %1350 = vmatpush.msra.mxu2 %v3328_v5 }
 0x268   :  { %1370 = vmatpush.msra.mxu3 %v3330_v47 }
 0x269   :  { %1331 = vmatpush.msra.mxu1 %v3335_v33  ;;  %1351 = vmatpush.msra.mxu2 %v3339_v57 }
 0x26a   :  { %1371 = vmatpush.msra.mxu3 %v3341_v12 }
 0x26b   :  { %v2340_v9 = vpop.eup %2339  ;;  %1332 = vmatpush.msra.mxu1 %v3345_v36  ;;  %1352 = vmatpush.msra.mxu2 %v3349_v35 }
 0x26c   :  { %v3450_v14 = vmul.f32 %v2340_v9, %v1001_v25  ;;  %1372 = vmatpush.msra.mxu3 %v3351_v15 }
 0x26e   :  { %3999 = vst [vmem:[#allocation60_spill] sm:$0xff] %v3450_v14  ;;  %1095 = vmatmul.f32.vlgmr.msrb.gmra.mxu0 %v3450_v14  ;;  %1115 = vmatmul.f32.vlgmr.msrb.gmra.mxu1 %v3450_v14 }
 0x26f   :  { %1135 = vmatmul.f32.vlgmr.msrb.gmra.mxu2 %v3450_v14  ;;  %1155 = vmatmul.f32.vlgmr.msrb.gmra.mxu3 %v3450_v14 }
 0x270   :  { %1515 = vmatpush.msrb.mxu0 %v3183_v4  ;;  %1535 = vmatpush.msrb.mxu1 %v4000_v10  ;;  %v4005_v4 = vld [vmem:[#allocation53_spill] sm:$0xff] }
 0x271   :  { %1555 = vmatpush.msrb.mxu2 %v4001_v55  ;;  %1575 = vmatpush.msrb.mxu3 %v3191_v30  ;;  %v4007_v30 = vld [vmem:[#allocation55_spill] sm:$0xff] }
 0x272   :  { %1516 = vmatpush.msrb.mxu0 %v4002_v31  ;;  %1536 = vmatpush.msrb.mxu1 %v4003_v42 }
 0x273   :  { %1556 = vmatpush.msrb.mxu2 %v3199_v20  ;;  %1576 = vmatpush.msrb.mxu3 %v3203_v3  ;;  %v4008_v20 = vld [vmem:[#allocation56_spill] sm:$0xff]  ;;  %v4009_v3 = vld [vmem:[#allocation57_spill] sm:$0xff] }
 0x274   :  { %1517 = vmatpush.msrb.mxu0 %v3207_v7  ;;  %1537 = vmatpush.msrb.mxu1 %v3209_v22  ;;  %v4010_v7 = vld [vmem:[#allocation58_spill] sm:$0xff]  ;;  %v4011_v22 = vld [vmem:[#allocation59_spill] sm:$0xff] }
 0x275   :  { %1557 = vmatpush.msrb.mxu2 %v3211_v11  ;;  %1577 = vmatpush.msrb.mxu3 %v4004_v18 }
 0x276   :  { %1518 = vmatpush.msrb.mxu0 %v4005_v4  ;;  %1538 = vmatpush.msrb.mxu1 %v4006_v50 }
 0x277   :  { %1558 = vmatpush.msrb.mxu2 %v4007_v30  ;;  %1578 = vmatpush.msrb.mxu3 %v3227_v21 }
 0x278   :  { %1519 = vmatpush.msrb.mxu0 %v3231_v24  ;;  %1539 = vmatpush.msrb.mxu1 %v3233_v26 }
 0x279   :  { %1559 = vmatpush.msrb.mxu2 %v3235_v28  ;;  %1579 = vmatpush.msrb.mxu3 %v4008_v20 }
 0x27a   :  { %1520 = vmatpush.msrb.mxu0 %v3243_v34  ;;  %1540 = vmatpush.msrb.mxu1 %v3245_v13 }
 0x27b   :  { %1560 = vmatpush.msrb.mxu2 %v4009_v3  ;;  %1580 = vmatpush.msrb.mxu3 %v3251_v44  ;;  %v3536_v3 = vld [vmem:[#allocation11 + $0x100] sm:$0xff] }
 0x27c   :  { %1541 = vmatpush.msrb.mxu1 %v3255_v19  ;;  %v4016_v19 = vld [vmem:[#allocation27_spill] sm:$0xff] }
 0x27d   :  { %1561 = vmatpush.msrb.mxu2 %v4010_v7  ;;  %1581 = vmatpush.msrb.mxu3 %v4011_v22  ;;  %v3539_v7 = vld [vmem:[#allocation11 + $0xe0] sm:$0xff]  ;;  %v4018_v22 = vld [vmem:[#allocation23_spill] sm:$0xff] }
 0x27e   :  { %1542 = vmatpush.msrb.mxu1 %v3265_v16 }
 0x27f   :  { %1562 = vmatpush.msrb.mxu2 %v3267_v63  ;;  %1582 = vmatpush.msrb.mxu3 %v3269_v23  ;;  %v4012_v23 = vld [vmem:[#allocation39_spill] sm:$0xff]  ;;  %v4014_v63 = vld [vmem:[#allocation28_spill] sm:$0xff] }
 0x280   :  { %1543 = vmatpush.msrb.mxu1 %v3275_v58 }
 0x281   :  { %1563 = vmatpush.msrb.mxu2 %v3277_v40  ;;  %1583 = vmatpush.msrb.mxu3 %v3279_v54 }
 0x282   :  { %1544 = vmatpush.msrb.mxu1 %v3287_v48 }
 0x283   :  { %1564 = vmatpush.msrb.mxu2 %v3289_v8  ;;  %1584 = vmatpush.msrb.mxu3 %v3291_v51 }
 0x284   :  { %1545 = vmatpush.msrb.mxu1 %v3298_v46 }
 0x285   :  { %1565 = vmatpush.msrb.mxu2 %v3300_v61  ;;  %1585 = vmatpush.msrb.mxu3 %v3302_v45  ;;  %v4013_v45 = vld [vmem:[#allocation44_spill] sm:$0xff] }
 0x286   :  { %1546 = vmatpush.msrb.mxu1 %v3308_v17  ;;  %v187_v48 = vadd.f32 %v4013_v45, %v4012_v23  ;;  %v190_v45 = vadd.f32 %v4018_v22, %v4012_v23 }
 0x287   :  { %1566 = vmatpush.msrb.mxu2 %v3310_v27  ;;  %1586 = vmatpush.msrb.mxu3 %v3992_v0 }
 0x288   :  { %1547 = vmatpush.msrb.mxu1 %v3994_v43 }
 0x289   :  { %1567 = vmatpush.msrb.mxu2 %v3995_v39  ;;  %1587 = vmatpush.msrb.mxu3 %v3996_v56 }
 0x28a   :  { %1548 = vmatpush.msrb.mxu1 %v3998_v49 }
 0x28b   :  { %1568 = vmatpush.msrb.mxu2 %v3328_v5  ;;  %1588 = vmatpush.msrb.mxu3 %v3330_v47 }
 0x28c   :  { %1549 = vmatpush.msrb.mxu1 %v3335_v33 }
 0x28d   :  { %1569 = vmatpush.msrb.mxu2 %v3339_v57  ;;  %1589 = vmatpush.msrb.mxu3 %v3341_v12  ;;  %v4015_v12 = vld [vmem:[#allocation34_spill] sm:$0xff] }
 0x28e   :  { %1550 = vmatpush.msrb.mxu1 %v3345_v36 }
 0x28f   :  { %1570 = vmatpush.msrb.mxu2 %v3349_v35  ;;  %1590 = vmatpush.msrb.mxu3 %v3351_v15 }
 0x2eb   :  { %v1096_v51 = vpop.f32.mrf.mxu0  ;;  %v1116_v54 = vpop.f32.mrf.mxu1 }
 0x2ec   :  { %v1159_v61 = vadd.f32 %v1096_v51, %v187_v48  ;;  %v1160_v8 = vadd.f32 %v1116_v54, %v4014_v63  ;;  %v3544_v54 = vld [vmem:[#allocation11 + $0xc0] sm:$0xff] }
 0x2ed   :  { %v4019_v63 = vld [vmem:[#allocation30_spill] sm:$0xff] }
 0x2ee   :  { %v2261_v16 = vmul.f32 -1.442695, %v1159_v61  ;;  %v2262_v40 = vmul.f32 -1.442695, %v1160_v8 }
 0x2f0   :  { %2341 = vpow2.f32 %v2261_v16  ;;  %v3548_v16 = vld [vmem:[#allocation11 + $0xa0] sm:$0xff] }
 0x2f1   :  { %2343 = vpow2.f32 %v2262_v40 }
 0x2f2   :  { %v1156_v47 = vpop.f32.mrf.mxu3  ;;  %v1136_v28 = vpop.f32.mrf.mxu2 }
 0x2f3   :  { %v1162_v58 = vadd.f32 %v1156_v47, %v4015_v12  ;;  %v1161_v46 = vadd.f32 %v1136_v28, %v4016_v19  ;;  %v3551_v12 = vld [vmem:[#allocation11 + $0x80] sm:$0xff] }
 0x2f5   :  { %v2263_v11 = vmul.f32 -1.442695, %v1162_v58  ;;  %v3553_v58 = vld [vmem:[#allocation11 + $0x60] sm:$0xff] }
 0x2f6   :  { %v2342_v21 = vpop.eup %2341  ;;  %4020 = vst [vmem:[#allocation61_spill] sm:$0xff] %v3553_v58 }
 0x2f7   :  { %v2344_v24 = vpop.eup %2343  ;;  %v1166_v26 = vadd.f32 1.0, %v2342_v21  ;;  %2345 = vpow2.f32 %v2263_v11  ;;  %v3556_v11 = vld [vmem:[#allocation11 + $0x40] sm:$0xff] }
 0x2f8   :  { %v1185_v15 = vadd.f32 1.0, %v2344_v24  ;;  %4021 = vst [vmem:[#allocation62_spill] sm:$0xff] %v3556_v11  ;;  %v4022_v24 = vld [vmem:[#allocation37_spill] sm:$0xff] }
 0x2f9   :  { %2347 = vrcp.f32 %v1166_v26  ;;  %v1178_v33 = vand.u32 2147483648, %v1166_v26  ;;  %v1176_v29 = vand.u32 2147483647, %v1166_v26  ;;  %vm1172_vm7 = vweird.f32 %v1166_v26 }
 0x2fa   :  { %2349 = vrcp.f32 %v1185_v15  ;;  %v1197_v36 = vand.u32 2147483648, %v1185_v15  ;;  %v1195_v59 = vand.u32 2147483647, %v1185_v15  ;;  %vm1191_vm8 = vweird.f32 %v1185_v15 }
 0x2fb   :  { %v1179_v62 = vor.u32 1.1754944e-38, %v1178_v33  ;;  %vm1177_vm11 = vcmp.eq.f32.partialorder %v1176_v29, 8.507059e+37 }
 0x2fc   :  { %v1198_v32 = vor.u32 1.1754944e-38, %v1197_v36  ;;  %vm1196_vm12 = vcmp.eq.f32.partialorder %v1195_v59, 8.507059e+37 }
 0x2fd   :  { %v2346_v34 = vpop.eup %2345 }
 0x2fe   :  { %v1205_v13 = vadd.f32 1.0, %v2346_v34  ;;  %v3563_v34 = vld [vmem:[#allocation11] sm:$0xff] }
 0x2ff   :  { %v2348_v44 = vpop.eup %2347 }
 0x300   :  { %v2350_v17 = vpop.eup %2349  ;;  %v1168_v27 = vmul.f32 %v2348_v44, %v1166_v26  ;;  %2351 = vrcp.f32 %v1205_v13  ;;  %vm1173_vm5 = vweird.f32 %v2348_v44  ;;  %v1217_v31 = vand.u32 2147483648, %v1205_v13 }
 0x301   :  { %v1187_v57 = vmul.f32 %v2350_v17, %v1185_v15  ;;  %2353 = vtanh.f32 %v1161_v46  ;;  %vm1192_vm6 = vweird.f32 %v2350_v17  ;;  %vm1174_vm9 = vmor %vm1172_vm7, %vm1173_vm5  ;;  %vm1211_vm14 = vweird.f32 %v1205_v13  ;;  %v3560_v15 = vld [vmem:[#allocation11 + $0x20] sm:$0xff] }
 0x302   :  { %v1169_v35 = vsub.f32 1.0, %v1168_v27  ;;  %vm1193_vm10 = vmor %vm1191_vm8, %vm1192_vm6  ;;  %v1215_v42 = vand.u32 2147483647, %v1205_v13  ;;  %v1218_v4 = vor.u32 1.1754944e-38, %v1217_v31 }
 0x303   :  { %v1188_v5 = vsub.f32 1.0, %v1187_v57 }
 0x304   :  { %v1170_v1 = vmul.f32 %v2348_v44, %v1169_v35  ;;  %vm1216_vm0 = vcmp.eq.f32.partialorder %v1215_v42, 8.507059e+37 }
 0x305   :  { %v1189_v2 = vmul.f32 %v2350_v17, %v1188_v5  ;;  %v4023_v5 = vld [vmem:[#allocation29_spill] sm:$0xff] }
 0x306   :  { %v2352_v52 = vpop.eup %2351  ;;  %v1171_v53 = vadd.f32 %v2348_v44, %v1170_v1 }
 0x307   :  { %v1190_v60 = vadd.f32 %v2350_v17, %v1189_v2  ;;  %v1207_v0 = vmul.f32 %v2352_v52, %v1205_v13  ;;  %v2354_v43 = vpop.eup %2353  ;;  %vm1212_vm13 = vweird.f32 %v2352_v52 }
 0x308   :  { %v1175_v41 = vsel %vm1174_vm9, %v2348_v44, %v1171_v53  ;;  %vm1213_vm15 = vmor %vm1211_vm14, %vm1212_vm13 }
 0x309   :  { %v1180_v38 = vsel %vm1177_vm11, %v1179_v62, %v1175_v41  ;;  %v1194_v39 = vsel %vm1193_vm10, %v2350_v17, %v1190_v60  ;;  %v1208_v56 = vsub.f32 1.0, %v1207_v0 }
 0x30a   :  { %v1199_v6 = vsel %vm1196_vm12, %v1198_v32, %v1194_v39  ;;  %v1222_v49 = vmul.f32 %v2354_v43, %v1180_v38 }
 0x30b   :  { %v1221_v9 = vmul.f32 %v1199_v6, %v3423_v37  ;;  %v1209_v25 = vmul.f32 %v2352_v52, %v1208_v56  ;;  %v3533_v37 = vld [vmem:[#allocation11 + $0x120] sm:$0xff] }
 0x30c   :  { %1521 = vmatpush.msrb.mxu0 %v3533_v37 }
 0x30d   :  { %v3524_v10 = vadd.f32 %v1222_v49, %v1221_v9  ;;  %v1210_v55 = vadd.f32 %v2352_v52, %v1209_v25 }
 0x30e   :  { %1522 = vmatpush.msrb.mxu0 %v3536_v3 }
 0x30f   :  { %2355 = vtanh.f32 %v3524_v10  ;;  %v1214_v18 = vsel %vm1213_vm15, %v2352_v52, %v1210_v55 }
 0x310   :  { %v1219_v30 = vsel %vm1216_vm0, %v1218_v4, %v1214_v18  ;;  %1523 = vmatpush.msrb.mxu0 %v3539_v7 }
 0x312   :  { %1524 = vmatpush.msrb.mxu0 %v3544_v54 }
 0x314   :  { %1525 = vmatpush.msrb.mxu0 %v3548_v16 }
 0x315   :  { %v2356_v50 = vpop.eup %2355 }
 0x316   :  { %v3527_v20 = vmul.f32 %v2356_v50, %v1219_v30  ;;  %1526 = vmatpush.msrb.mxu0 %v3551_v12 }
 0x318   :  { %4017 = vst [vmem:[#allocation45_spill] sm:$0xff] %v3527_v20  ;;  %1313 = vmatmul.f32.vlgmr.msra.gmra.mxu0 %v3527_v20  ;;  %1333 = vmatmul.f32.vlgmr.msra.gmra.mxu1 %v3527_v20 }
 0x319   :  { %1353 = vmatmul.f32.vlgmr.msra.gmra.mxu2 %v3527_v20  ;;  %1373 = vmatmul.f32.vlgmr.msra.gmra.mxu3 %v3527_v20  ;;  %v4031_v20 = vld [vmem:[#allocation40_spill] sm:$0xff] }
 0x31a   :  { %1527 = vmatpush.msrb.mxu0 %v3553_v58 }
 0x31c   :  { %1528 = vmatpush.msrb.mxu0 %v3556_v11 }
 0x31e   :  { %1529 = vmatpush.msrb.mxu0 %v3560_v15 }
 0x320   :  { %1530 = vmatpush.msrb.mxu0 %v3563_v34 }
 0x395   :  { %v1314_v48 = vpop.f32.mrf.mxu0  ;;  %v1334_v51 = vpop.f32.mrf.mxu1 }
 0x396   :  { %v1377_v61 = vadd.f32 %v1314_v48, %v190_v45  ;;  %v1378_v8 = vadd.f32 %v1334_v51, %v4019_v63 }
 0x398   :  { %v2264_v40 = vmul.f32 -1.442695, %v1377_v61  ;;  %v2265_v47 = vmul.f32 -1.442695, %v1378_v8 }
 0x39a   :  { %2357 = vpow2.f32 %v2264_v40 }
 0x39b   :  { %2359 = vpow2.f32 %v2265_v47  ;;  %v3580_v47 = vld [vmem:[#allocation11 + $0x1e8] sm:$0xff] }
 0x39c   :  { %v1374_v21 = vpop.f32.mrf.mxu3  ;;  %v1354_v17 = vpop.f32.mrf.mxu2  ;;  %1753 = vmatpush.msra.mxu1 %v3580_v47 }
 0x39d   :  { %v1380_v26 = vadd.f32 %v1374_v21, %v4022_v24  ;;  %v1379_v33 = vadd.f32 %v1354_v17, %v4023_v5  ;;  %v3582_v21 = vld [vmem:[#allocation11 + $0x1f0] sm:$0xff]  ;;  %v3586_v24 = vld [vmem:[#allocation11 + $0x1f8] sm:$0xff] }
 0x39e   :  { %1773 = vmatpush.msra.mxu2 %v3582_v21  ;;  %1793 = vmatpush.msra.mxu3 %v3586_v24  ;;  %v3606_v17 = vld [vmem:[#allocation11 + $0x1b0] sm:$0xff] }
 0x39f   :  { %v2266_v28 = vmul.f32 -1.442695, %v1380_v26  ;;  %v3590_v26 = vld [vmem:[#allocation11 + $0x1c0] sm:$0xff]  ;;  %v3618_v5 = vld [vmem:[#allocation11 + $0x190] sm:$0xff] }
 0x3a0   :  { %v2358_v13 = vpop.eup %2357 }
 0x3a1   :  { %v2360_v44 = vpop.eup %2359  ;;  %v1384_v19 = vadd.f32 1.0, %v2358_v13  ;;  %2361 = vpow2.f32 %v2266_v28  ;;  %v3592_v28 = vld [vmem:[#allocation11 + $0x1c8] sm:$0xff]  ;;  %v3594_v13 = vld [vmem:[#allocation11 + $0x1d0] sm:$0xff] }
 0x3a2   :  { %v1403_v46 = vadd.f32 1.0, %v2360_v44  ;;  %1754 = vmatpush.msra.mxu1 %v3592_v28  ;;  %v3598_v44 = vld [vmem:[#allocation11 + $0x1d8] sm:$0xff]  ;;  %1774 = vmatpush.msra.mxu2 %v3594_v13 }
 0x3a3   :  { %2363 = vrcp.f32 %v1384_v19  ;;  %v1396_v52 = vand.u32 2147483648, %v1384_v19  ;;  %v1394_v60 = vand.u32 2147483647, %v1384_v19  ;;  %vm1390_vm3 = vweird.f32 %v1384_v19  ;;  %1794 = vmatpush.msra.mxu3 %v3598_v44 }
 0x3a4   :  { %2365 = vrcp.f32 %v1403_v46  ;;  %v1415_v53 = vand.u32 2147483648, %v1403_v46  ;;  %v1413_v32 = vand.u32 2147483647, %v1403_v46  ;;  %vm1409_vm4 = vweird.f32 %v1403_v46  ;;  %1775 = vmatpush.msra.mxu2 %v3606_v17 }
 0x3a5   :  { %v1397_v38 = vor.u32 1.1754944e-38, %v1396_v52  ;;  %vm1395_vm7 = vcmp.eq.f32.partialorder %v1394_v60, 8.507059e+37  ;;  %v3640_v52 = vld [vmem:[#allocation11 + $0x148] sm:$0xff] }
 0x3a6   :  { %v1416_v6 = vor.u32 1.1754944e-38, %v1415_v53  ;;  %vm1414_vm8 = vcmp.eq.f32.partialorder %v1413_v32, 8.507059e+37  ;;  %1776 = vmatpush.msra.mxu2 %v3618_v5  ;;  %v3642_v53 = vld [vmem:[#allocation11 + $0x150] sm:$0xff]  ;;  %v3650_v60 = vld [vmem:[#allocation11 + $0x128] sm:$0xff]  ;;  %v3654_v32 = vld [vmem:[#allocation11 + $0x138] sm:$0xff] }
 0x3a7   :  { %v2362_v27 = vpop.eup %2361 }
 0x3a8   :  { %v1423_v57 = vadd.f32 1.0, %v2362_v27  ;;  %v3610_v27 = vld [vmem:[#allocation11 + $0x1b8] sm:$0xff] }
 0x3a9   :  { %v2364_v35 = vpop.eup %2363  ;;  %1795 = vmatpush.msra.mxu3 %v3610_v27 }
 0x3aa   :  { %v2366_v36 = vpop.eup %2365  ;;  %v1386_v1 = vmul.f32 %v2364_v35, %v1384_v19  ;;  %2367 = vrcp.f32 %v1423_v57  ;;  %vm1391_vm1 = vweird.f32 %v2364_v35  ;;  %v1435_v45 = vand.u32 2147483648, %v1423_v57  ;;  %v3602_v19 = vld [vmem:[#allocation11 + $0x1a0] sm:$0xff] }
 0x3ab   :  { %v1405_v29 = vmul.f32 %v2366_v36, %v1403_v46  ;;  %2369 = vtanh.f32 %v1379_v33  ;;  %vm1410_vm2 = vweird.f32 %v2366_v36  ;;  %vm1392_vm5 = vmor %vm1390_vm3, %vm1391_vm1  ;;  %vm1429_vm10 = vweird.f32 %v1423_v57  ;;  %v3604_v46 = vld [vmem:[#allocation11 + $0x1a8] sm:$0xff]  ;;  %v3622_v33 = vld [vmem:[#allocation11 + $0x198] sm:$0xff] }
 0x3ac   :  { %v1387_v2 = vsub.f32 1.0, %v1386_v1  ;;  %vm1411_vm6 = vmor %vm1409_vm4, %vm1410_vm2  ;;  %v1433_v48 = vand.u32 2147483647, %v1423_v57  ;;  %v1436_v61 = vor.u32 1.1754944e-38, %v1435_v45  ;;  %1755 = vmatpush.msra.mxu1 %v3604_v46  ;;  %1796 = vmatpush.msra.mxu3 %v3622_v33  ;;  %v3628_v1 = vld [vmem:[#allocation11 + $0x168] sm:$0xff] }
 0x3ad   :  { %v1406_v59 = vsub.f32 1.0, %v1405_v29  ;;  %v3630_v29 = vld [vmem:[#allocation11 + $0x170] sm:$0xff]  ;;  %v3693_v45 = vld [vmem:[#allocation11 + $0xa8] sm:$0xff] }
 0x3ae   :  { %v1388_v62 = vmul.f32 %v2364_v35, %v1387_v2  ;;  %vm1434_vm12 = vcmp.eq.f32.partialorder %v1433_v48, 8.507059e+37  ;;  %v3634_v2 = vld [vmem:[#allocation11 + $0x178] sm:$0xff]  ;;  %1777 = vmatpush.msra.mxu2 %v3630_v29  ;;  %v3695_v48 = vld [vmem:[#allocation11 + $0xb0] sm:$0xff] }
 0x3af   :  { %v1407_v0 = vmul.f32 %v2366_v36, %v1406_v59  ;;  %1797 = vmatpush.msra.mxu3 %v3634_v2  ;;  %v3638_v59 = vld [vmem:[#allocation11 + $0x140] sm:$0xff] }
 0x3b0   :  { %v2368_v41 = vpop.eup %2367  ;;  %v1389_v43 = vadd.f32 %v2364_v35, %v1388_v62  ;;  %v3646_v62 = vld [vmem:[#allocation11 + $0x158] sm:$0xff]  ;;  %1778 = vmatpush.msra.mxu2 %v3642_v53 }
 0x3b1   :  { %v1408_v39 = vadd.f32 %v2366_v36, %v1407_v0  ;;  %v1425_v56 = vmul.f32 %v2368_v41, %v1423_v57  ;;  %v2370_v9 = vpop.eup %2369  ;;  %vm1430_vm9 = vweird.f32 %v2368_v41  ;;  %v3614_v57 = vld [vmem:[#allocation11 + $0x180] sm:$0xff]  ;;  %1798 = vmatpush.msra.mxu3 %v3646_v62  ;;  %v3652_v0 = vld [vmem:[#allocation11 + $0x130] sm:$0xff] }
 0x3b2   :  { %v1393_v49 = vsel %vm1392_vm5, %v2364_v35, %v1389_v43  ;;  %vm1431_vm11 = vmor %vm1429_vm10, %vm1430_vm9  ;;  %v3616_v35 = vld [vmem:[#allocation11 + $0x188] sm:$0xff]  ;;  %1779 = vmatpush.msra.mxu2 %v3652_v0  ;;  %v3662_v43 = vld [vmem:[#allocation11 + $0x110] sm:$0xff] }
 0x3b3   :  { %v1398_v25 = vsel %vm1395_vm7, %v1397_v38, %v1393_v49  ;;  %v1412_v55 = vsel %vm1411_vm6, %v2366_v36, %v1408_v39  ;;  %v1426_v31 = vsub.f32 1.0, %v1425_v56  ;;  %1756 = vmatpush.msra.mxu1 %v3616_v35  ;;  %v3626_v36 = vld [vmem:[#allocation11 + $0x160] sm:$0xff]  ;;  %1799 = vmatpush.msra.mxu3 %v3654_v32  ;;  %v3664_v38 = vld [vmem:[#allocation11 + $0x118] sm:$0xff]  ;;  %v3670_v39 = vld [vmem:[#allocation11 + $0xe8] sm:$0xff] }
 0x3b4   :  { %v1417_v42 = vsel %vm1414_vm8, %v1416_v6, %v1412_v55  ;;  %v1440_v18 = vmul.f32 %v2370_v9, %v1398_v25  ;;  %1780 = vmatpush.msra.mxu2 %v3662_v43  ;;  %v3672_v56 = vld [vmem:[#allocation11 + $0xf0] sm:$0xff]  ;;  %v3674_v6 = vld [vmem:[#allocation11 + $0xf8] sm:$0xff] }
 0x3b5   :  { %v1439_v4 = vmul.f32 %v1417_v42, %v3524_v10  ;;  %v1427_v50 = vmul.f32 %v2368_v41, %v1426_v31  ;;  %v3578_v10 = vld [vmem:[#allocation11 + $0x1e0] sm:$0xff]  ;;  %1757 = vmatpush.msra.mxu1 %v3628_v1  ;;  %1800 = vmatpush.msra.mxu3 %v3664_v38  ;;  %v4025_v49 = vld [vmem:[#allocation24_spill] sm:$0xff]  ;;  %v3682_v31 = vld [vmem:[#allocation11 + $0xc8] sm:$0xff] }
 0x3b6   :  { %1733 = vmatpush.msra.mxu0 %v3578_v10  ;;  %v193_v9 = vadd.f32 %v4025_v49, %v4012_v23  ;;  %1781 = vmatpush.msra.mxu2 %v3672_v56  ;;  %v3684_v42 = vld [vmem:[#allocation11 + $0xd0] sm:$0xff] }
 0x3b7   :  { %v3569_v30 = vadd.f32 %v1440_v18, %v1439_v4  ;;  %v1428_v22 = vadd.f32 %v2368_v41, %v1427_v50  ;;  %1758 = vmatpush.msra.mxu1 %v3640_v52  ;;  %1801 = vmatpush.msra.mxu3 %v3674_v6  ;;  %v3686_v18 = vld [vmem:[#allocation11 + $0xd8] sm:$0xff]  ;;  %v3705_v49 = vld [vmem:[#allocation11 + $0x90] sm:$0xff] }
 0x3b8   :  { %1734 = vmatpush.msra.mxu0 %v3590_v26  ;;  %v4026_v50 = vld [vmem:[#allocation32_spill] sm:$0xff]  ;;  %1782 = vmatpush.msra.mxu2 %v3684_v42 }
 0x3b9   :  { %2371 = vtanh.f32 %v3569_v30  ;;  %v1432_v51 = vsel %vm1431_vm11, %v2368_v41, %v1428_v22  ;;  %1759 = vmatpush.msra.mxu1 %v3650_v60  ;;  %v3660_v41 = vld [vmem:[#allocation11 + $0x108] sm:$0xff]  ;;  %1802 = vmatpush.msra.mxu3 %v3686_v18  ;;  %v3734_v23 = vld [vmem:[#allocation11 + $0x30] sm:$0xff] }
 0x3ba   :  { %v1437_v8 = vsel %vm1434_vm12, %v1436_v61, %v1432_v51  ;;  %1735 = vmatpush.msra.mxu0 %v3602_v19  ;;  %v3697_v51 = vld [vmem:[#allocation11 + $0xb8] sm:$0xff]  ;;  %1783 = vmatpush.msra.mxu2 %v3695_v48 }
 0x3bb   :  { %1760 = vmatpush.msra.mxu1 %v3660_v41  ;;  %1803 = vmatpush.msra.mxu3 %v3697_v51 }
 0x3bc   :  { %1736 = vmatpush.msra.mxu0 %v3614_v57  ;;  %1784 = vmatpush.msra.mxu2 %v3705_v49 }
 0x3bd   :  { %1761 = vmatpush.msra.mxu1 %v3670_v39 }
 0x3be   :  { %1737 = vmatpush.msra.mxu0 %v3626_v36 }
 0x3bf   :  { %v2372_v63 = vpop.eup %2371  ;;  %1762 = vmatpush.msra.mxu1 %v3682_v31 }
 0x3c0   :  { %v3572_v40 = vmul.f32 %v2372_v63, %v1437_v8  ;;  %1738 = vmatpush.msra.mxu0 %v3638_v59  ;;  %v3703_v8 = vld [vmem:[#allocation11 + $0x88] sm:$0xff] }
 0x3c1   :  { %1763 = vmatpush.msra.mxu1 %v3693_v45 }
 0x3c2   :  { %4024 = vst [vmem:[#allocation63_spill] sm:$0xff] %v3572_v40  ;;  %1531 = vmatmul.f32.vlgmr.msrb.gmra.mxu0 %v3572_v40  ;;  %1551 = vmatmul.f32.vlgmr.msrb.gmra.mxu1 %v3572_v40 }
 0x3c3   :  { %1571 = vmatmul.f32.vlgmr.msrb.gmra.mxu2 %v3572_v40  ;;  %1591 = vmatmul.f32.vlgmr.msrb.gmra.mxu3 %v3572_v40  ;;  %v3725_v40 = vld [vmem:[#allocation11 + $0x58] sm:$0xff] }
 0x3c4   :  { %1739 = vmatpush.msra.mxu0 %v3533_v37  ;;  %1764 = vmatpush.msra.mxu1 %v3703_v8 }
 0x3c6   :  { %1740 = vmatpush.msra.mxu0 %v3536_v3 }
 0x3c8   :  { %1741 = vmatpush.msra.mxu0 %v3539_v7 }
 0x3ca   :  { %1742 = vmatpush.msra.mxu0 %v3544_v54 }
 0x3cc   :  { %1743 = vmatpush.msra.mxu0 %v3548_v16 }
 0x3ce   :  { %1744 = vmatpush.msra.mxu0 %v3551_v12 }
 0x3d0   :  { %1745 = vmatpush.msra.mxu0 %v3553_v58  ;;  %v3736_v58 = vld [vmem:[#allocation11 + $0x38] sm:$0xff] }
 0x3d2   :  { %1746 = vmatpush.msra.mxu0 %v3556_v11  ;;  %v3746_v11 = vld [vmem:[#allocation11 + $0x18] sm:$0xff] }
 0x3d4   :  { %1747 = vmatpush.msra.mxu0 %v3560_v15 }
 0x3d6   :  { %1748 = vmatpush.msra.mxu0 %v3563_v34 }
 0x3d8   :  { %1951 = vmatpush.msrb.mxu0 %v3578_v10 }
 0x3da   :  { %1952 = vmatpush.msrb.mxu0 %v3590_v26 }
 0x3dc   :  { %1953 = vmatpush.msrb.mxu0 %v3602_v19 }
 0x3de   :  { %1954 = vmatpush.msrb.mxu0 %v3614_v57 }
 0x3e0   :  { %1955 = vmatpush.msrb.mxu0 %v3626_v36 }
 0x3e2   :  { %1956 = vmatpush.msrb.mxu0 %v3638_v59 }
 0x3e4   :  { %1957 = vmatpush.msrb.mxu0 %v3533_v37 }
 0x3e6   :  { %1958 = vmatpush.msrb.mxu0 %v3536_v3 }
 0x3e8   :  { %1959 = vmatpush.msrb.mxu0 %v3539_v7 }
 0x3ea   :  { %1960 = vmatpush.msrb.mxu0 %v3544_v54 }
 0x3ec   :  { %1961 = vmatpush.msrb.mxu0 %v3548_v16 }
 0x3ee   :  { %1962 = vmatpush.msrb.mxu0 %v3551_v12  ;;  %v4037_v12 = vld [vmem:[#allocation62_spill] sm:$0xff] }
 0x43f   :  { %v1532_v25 = vpop.f32.mrf.mxu0  ;;  %v1552_v55 = vpop.f32.mrf.mxu1 }
 0x440   :  { %v1595_v4 = vadd.f32 %v1532_v25, %v193_v9  ;;  %v1596_v22 = vadd.f32 %v1552_v55, %v4026_v50  ;;  %v3707_v9 = vld [vmem:[#allocation11 + $0x98] sm:$0xff]  ;;  %v3711_v25 = vld [vmem:[#allocation11 + $0x68] sm:$0xff]  ;;  %v3713_v55 = vld [vmem:[#allocation11 + $0x70] sm:$0xff] }
 0x441   :  { %4027 = vst [vmem:[#allocation46_spill] sm:$0xff] %v3711_v25  ;;  %1804 = vmatpush.msra.mxu3 %v3707_v9  ;;  %v3719_v50 = vld [vmem:[#allocation11 + $0x48] sm:$0xff]  ;;  %1765 = vmatpush.msra.mxu1 %v3711_v25 }
 0x442   :  { %v2267_v61 = vmul.f32 -1.442695, %v1595_v4  ;;  %v2268_v63 = vmul.f32 -1.442695, %v1596_v22  ;;  %4028 = vst [vmem:[#allocation64_spill] sm:$0xff] %v3713_v55  ;;  %v3715_v4 = vld [vmem:[#allocation11 + $0x78] sm:$0xff]  ;;  %1785 = vmatpush.msra.mxu2 %v3713_v55 }
 0x443   :  { %4029 = vst [vmem:[#allocation48_spill] sm:$0xff] %v3715_v4  ;;  %1805 = vmatpush.msra.mxu3 %v3715_v4  ;;  %1766 = vmatpush.msra.mxu1 %v3719_v50  ;;  %v3744_v4 = vld [vmem:[#allocation11 + $0x10] sm:$0xff] }
 0x444   :  { %2373 = vpow2.f32 %v2267_v61  ;;  %4030 = vst [vmem:[#allocation49_spill] sm:$0xff] %v3719_v50  ;;  %v3723_v61 = vld [vmem:[#allocation11 + $0x50] sm:$0xff] }
 0x445   :  { %2375 = vpow2.f32 %v2268_v63  ;;  %v3730_v63 = vld [vmem:[#allocation11 + $0x28] sm:$0xff]  ;;  %1786 = vmatpush.msra.mxu2 %v3723_v61  ;;  %1806 = vmatpush.msra.mxu3 %v3725_v40 }
 0x446   :  { %v1592_v22 = vpop.f32.mrf.mxu3  ;;  %1767 = vmatpush.msra.mxu1 %v3730_v63 }
 0x447   :  { %v1598_v14 = vadd.f32 %v1592_v22, %v4031_v20  ;;  %v3740_v20 = vld [vmem:[#allocation11 + $0x8] sm:$0xff]  ;;  %1787 = vmatpush.msra.mxu2 %v3734_v23  ;;  %1807 = vmatpush.msra.mxu3 %v3736_v58 }
 0x448   :  { %1768 = vmatpush.msra.mxu1 %v3740_v20 }
 0x449   :  { %v2269_v25 = vmul.f32 -1.442695, %v1598_v14  ;;  %1788 = vmatpush.msra.mxu2 %v3744_v4  ;;  %1808 = vmatpush.msra.mxu3 %v3746_v11 }
 0x44a   :  { %v2374_v22 = vpop.eup %2373  ;;  %1971 = vmatpush.msrb.mxu1 %v3580_v47  ;;  %v4032_v47 = vld [vmem:[#allocation31_spill] sm:$0xff] }
 0x44b   :  { %v2376_v50 = vpop.eup %2375  ;;  %v3748_v55 = vadd.f32 1.0, %v2374_v22  ;;  %2377 = vpow2.f32 %v2269_v25  ;;  %1991 = vmatpush.msrb.mxu2 %v3582_v21  ;;  %2011 = vmatpush.msrb.mxu3 %v3586_v24  ;;  %v1572_v25 = vpop.f32.mrf.mxu2 }
 0x44c   :  { %v3752_v14 = vadd.f32 1.0, %v2376_v50  ;;  %1972 = vmatpush.msrb.mxu1 %v3592_v28  ;;  %v1597_v21 = vadd.f32 %v1572_v25, %v4032_v47  ;;  %v2122_v25 = vld [vmem:[#allocation14 + $0x40] sm:$0xff]  ;;  %v4042_v47 = vld [vmem:[#allocation41_spill] sm:$0xff] }
 0x44d   :  { %2379 = vrcp.f32 %v3748_v55  ;;  %1992 = vmatpush.msrb.mxu2 %v3594_v13  ;;  %2012 = vmatpush.msrb.mxu3 %v3598_v44  ;;  %v1614_v19 = vand.u32 2147483648, %v3748_v55  ;;  %vm1608_vm15 = vweird.f32 %v3748_v55 }
 0x44e   :  { %2381 = vrcp.f32 %v3752_v14  ;;  %1973 = vmatpush.msrb.mxu1 %v3604_v46  ;;  %v1633_v46 = vand.u32 2147483648, %v3752_v14  ;;  %vm1627_vm0 = vweird.f32 %v3752_v14 }
 0x44f   :  { %1993 = vmatpush.msrb.mxu2 %v3606_v17  ;;  %2013 = vmatpush.msrb.mxu3 %v3610_v27  ;;  %v1612_v27 = vand.u32 2147483647, %v3748_v55  ;;  %v1615_v36 = vor.u32 1.1754944e-38, %v1614_v19 }
 0x450   :  { %1974 = vmatpush.msrb.mxu1 %v3616_v35  ;;  %v1631_v35 = vand.u32 2147483647, %v3752_v14 }
 0x451   :  { %v2378_v50 = vpop.eup %2377  ;;  %1994 = vmatpush.msrb.mxu2 %v3618_v5  ;;  %2014 = vmatpush.msrb.mxu3 %v3622_v33  ;;  %vm1613_vm3 = vcmp.eq.f32.partialorder %v1612_v27, 8.507059e+37  ;;  %v2116_v27 = vld [vmem:[#allocation14 + $0x10] sm:$0xff] }
 0x452   :  { %v3768_v22 = vadd.f32 1.0, %v2378_v50  ;;  %1975 = vmatpush.msrb.mxu1 %v3628_v1  ;;  %vm1632_vm4 = vcmp.eq.f32.partialorder %v1631_v35, 8.507059e+37  ;;  %v2121_v50 = vld [vmem:[#allocation14 + $0x38] sm:$0xff] }
 0x453   :  { %v2380_v10 = vpop.eup %2379  ;;  %1995 = vmatpush.msrb.mxu2 %v3630_v29  ;;  %2015 = vmatpush.msrb.mxu3 %v3634_v2  ;;  %v1634_v2 = vor.u32 1.1754944e-38, %v1633_v46 }
 0x454   :  { %v2382_v24 = vpop.eup %2381  ;;  %v1604_v26 = vmul.f32 %v2380_v10, %v3748_v55  ;;  %2383 = vrcp.f32 %v3768_v22  ;;  %vm1609_vm13 = vweird.f32 %v2380_v10  ;;  %1976 = vmatpush.msrb.mxu1 %v3640_v52  ;;  %v1653_v54 = vand.u32 2147483648, %v3768_v22  ;;  %v2124_v55 = vld [vmem:[#allocation14 + $0x50] sm:$0xff] }
 0x455   :  { %v1623_v28 = vmul.f32 %v2382_v24, %v3752_v14  ;;  %2385 = vtanh.f32 %v1597_v21  ;;  %vm1628_vm14 = vweird.f32 %v2382_v24  ;;  %1996 = vmatpush.msrb.mxu2 %v3642_v53  ;;  %2016 = vmatpush.msrb.mxu3 %v3646_v62  ;;  %vm1610_vm1 = vmor %vm1608_vm15, %vm1609_vm13  ;;  %vm1647_vm6 = vweird.f32 %v3768_v22 }
 0x456   :  { %v1605_v13 = vsub.f32 1.0, %v1604_v26  ;;  %1977 = vmatpush.msrb.mxu1 %v3650_v60  ;;  %vm1629_vm2 = vmor %vm1627_vm0, %vm1628_vm14 }
 0x457   :  { %v1624_v44 = vsub.f32 1.0, %v1623_v28  ;;  %1997 = vmatpush.msrb.mxu2 %v3652_v0  ;;  %2017 = vmatpush.msrb.mxu3 %v3654_v32  ;;  %v2118_v28 = vld [vmem:[#allocation14 + $0x20] sm:$0xff] }
 0x458   :  { %v1606_v17 = vmul.f32 %v2380_v10, %v1605_v13  ;;  %1978 = vmatpush.msrb.mxu1 %v3660_v41 }
 0x459   :  { %v1625_v57 = vmul.f32 %v2382_v24, %v1624_v44  ;;  %1998 = vmatpush.msrb.mxu2 %v3662_v43  ;;  %2018 = vmatpush.msrb.mxu3 %v3664_v38  ;;  %v4033_v43 = vld [vmem:[#allocation61_spill] sm:$0xff]  ;;  %v4034_v38 = vld [vmem:[#allocation46_spill] sm:$0xff] }
 0x45a   :  { %v3794_v5 = vpop.eup %2383  ;;  %v1607_v33 = vadd.f32 %v2380_v10, %v1606_v17  ;;  %1979 = vmatpush.msrb.mxu1 %v3670_v39  ;;  %1963 = vmatpush.msrb.mxu0 %v4033_v43  ;;  %v1654_v39 = vor.u32 1.1754944e-38, %v1653_v54  ;;  %v2117_v17 = vld [vmem:[#allocation14 + $0x18] sm:$0xff] }
 0x45b   :  { %v1626_v1 = vadd.f32 %v2382_v24, %v1625_v57  ;;  %v1643_v29 = vmul.f32 %v3794_v5, %v3768_v22  ;;  %v2386_v37 = vpop.eup %2385  ;;  %1999 = vmatpush.msrb.mxu2 %v3672_v56  ;;  %2019 = vmatpush.msrb.mxu3 %v3674_v6  ;;  %vm1648_vm5 = vweird.f32 %v3794_v5  ;;  %v4035_v56 = vld [vmem:[#allocation64_spill] sm:$0xff]  ;;  %v2115_v57 = vld [vmem:[#allocation14 + $0x8] sm:$0xff] }
 0x45c   :  { %v1611_v59 = vsel %vm1610_vm1, %v2380_v10, %v1607_v33  ;;  %1980 = vmatpush.msrb.mxu1 %v3682_v31  ;;  %vm1649_vm7 = vmor %vm1647_vm6, %vm1648_vm5  ;;  %v4036_v6 = vld [vmem:[#allocation48_spill] sm:$0xff]  ;;  %1964 = vmatpush.msrb.mxu0 %v4037_v12  ;;  %v4038_v31 = vld [vmem:[#allocation49_spill] sm:$0xff] }
 0x45d   :  { %v1616_v52 = vsel %vm1613_vm3, %v1615_v36, %v1611_v59  ;;  %v1630_v53 = vsel %vm1629_vm2, %v2382_v24, %v1626_v1  ;;  %v1644_v62 = vsub.f32 1.0, %v1643_v29  ;;  %2000 = vmatpush.msrb.mxu2 %v3684_v42  ;;  %2020 = vmatpush.msrb.mxu3 %v3686_v18  ;;  %v2119_v24 = vld [vmem:[#allocation14 + $0x28] sm:$0xff]  ;;  %v2114_v33 = vld [vmem:[#allocation14] sm:$0xff]  ;;  %v4043_v29 = vld [vmem:[#allocation33_spill] sm:$0xff] }
 0x45e   :  { %v1635_v60 = vsel %vm1632_vm4, %v1634_v2, %v1630_v53  ;;  %v1658_v0 = vmul.f32 %v2386_v37, %v1616_v52  ;;  %1981 = vmatpush.msrb.mxu1 %v3693_v45  ;;  %1965 = vmatpush.msrb.mxu0 %v3560_v15  ;;  %v2129_v15 = vld [vmem:[#allocation14 + $0x78] sm:$0xff] }
 0x45f   :  { %v1657_v32 = vmul.f32 %v1635_v60, %v3569_v30  ;;  %v1645_v3 = vmul.f32 %v3794_v5, %v1644_v62  ;;  %2001 = vmatpush.msrb.mxu2 %v3695_v48  ;;  %2021 = vmatpush.msrb.mxu3 %v3697_v51  ;;  %v1651_v30 = vand.u32 2147483647, %v3768_v22  ;;  %v2125_v48 = vld [vmem:[#allocation14 + $0x58] sm:$0xff]  ;;  %v4039_v51 = vld [vmem:[#allocation39_spill] sm:$0xff]  ;;  %v2120_v22 = vld [vmem:[#allocation14 + $0x30] sm:$0xff] }
 0x460   :  { %1982 = vmatpush.msrb.mxu1 %v3703_v8  ;;  %1966 = vmatpush.msrb.mxu0 %v3563_v34  ;;  %v4040_v8 = vld [vmem:[#allocation25_spill] sm:$0xff] }
 0x461   :  { %v3818_v41 = vadd.f32 %v1658_v0, %v1657_v32  ;;  %v1646_v7 = vadd.f32 %v3794_v5, %v1645_v3  ;;  %2002 = vmatpush.msrb.mxu2 %v3705_v49  ;;  %2022 = vmatpush.msrb.mxu3 %v3707_v9  ;;  %vm1652_vm8 = vcmp.eq.f32.partialorder %v1651_v30, 8.507059e+37  ;;  %v196_v49 = vadd.f32 %v4040_v8, %v4039_v51 }
 0x462   :  { %1983 = vmatpush.msrb.mxu1 %v4034_v38 }
 0x463   :  { %2387 = vtanh.f32 %v3818_v41  ;;  %v1650_v16 = vsel %vm1649_vm7, %v3794_v5, %v1646_v7  ;;  %2003 = vmatpush.msrb.mxu2 %v4035_v56  ;;  %2023 = vmatpush.msrb.mxu3 %v4036_v6 }
 0x464   :  { %1984 = vmatpush.msrb.mxu1 %v4038_v31  ;;  %v1655_v18 = vsel %vm1652_vm8, %v1654_v39, %v1650_v16 }
 0x465   :  { %2004 = vmatpush.msrb.mxu2 %v3723_v61  ;;  %2024 = vmatpush.msrb.mxu3 %v3725_v40  ;;  %v2126_v40 = vld [vmem:[#allocation14 + $0x60] sm:$0xff] }
 0x466   :  { %1985 = vmatpush.msrb.mxu1 %v3730_v63 }
 0x467   :  { %2005 = vmatpush.msrb.mxu2 %v3734_v23  ;;  %2025 = vmatpush.msrb.mxu3 %v3736_v58  ;;  %v2128_v23 = vld [vmem:[#allocation14 + $0x70] sm:$0xff]  ;;  %v2127_v58 = vld [vmem:[#allocation14 + $0x68] sm:$0xff] }
 0x468   :  { %1986 = vmatpush.msrb.mxu1 %v3740_v20 }
 0x469   :  { %v2388_v42 = vpop.eup %2387  ;;  %2006 = vmatpush.msrb.mxu2 %v3744_v4  ;;  %2026 = vmatpush.msrb.mxu3 %v3746_v11  ;;  %v4041_v4 = vld [vmem:[#allocation35_spill] sm:$0xff] }
 0x46a   :  { %v3845_v45 = vmul.f32 %v2388_v42, %v1655_v18  ;;  %v2123_v11 = vld [vmem:[#allocation14 + $0x48] sm:$0xff] }
 0x46c   :  { %1749 = vmatmul.f32.vlgmr.msra.gmra.mxu0 %v3845_v45  ;;  %1769 = vmatmul.f32.vlgmr.msra.gmra.mxu1 %v3845_v45 }
 0x46d   :  { %1789 = vmatmul.f32.vlgmr.msra.gmra.mxu2 %v3845_v45  ;;  %1809 = vmatmul.f32.vlgmr.msra.gmra.mxu3 %v3845_v45 }
 0x46e   :  { %2134 = vmatpush.msra.mxu0 %v2129_v15 }
 0x470   :  { %2135 = vmatpush.msra.mxu0 %v2128_v23 }
 0x472   :  { %2136 = vmatpush.msra.mxu0 %v2127_v58 }
 0x474   :  { %2137 = vmatpush.msra.mxu0 %v2126_v40 }
 0x476   :  { %2138 = vmatpush.msra.mxu0 %v2125_v48 }
 0x478   :  { %2139 = vmatpush.msra.mxu0 %v2124_v55 }
 0x47a   :  { %2140 = vmatpush.msra.mxu0 %v2123_v11  ;;  %v4045_v11 = vld [vmem:[#allocation47_spill] sm:$0xff] }
 0x47c   :  { %2141 = vmatpush.msra.mxu0 %v2122_v25  ;;  %v4048_v25 = vld [vmem:[#allocation63_spill] sm:$0xff] }
 0x47e   :  { %2142 = vmatpush.msra.mxu0 %v2121_v50  ;;  %v4049_v50 = vld [vmem:[#allocation26_spill] sm:$0xff] }
 0x480   :  { %2143 = vmatpush.msra.mxu0 %v2120_v22  ;;  %v199_v22 = vadd.f32 %v4049_v50, %v4039_v51 }
 0x482   :  { %2144 = vmatpush.msra.mxu0 %v2119_v24  ;;  %v4050_v24 = vld [vmem:[#allocation38_spill] sm:$0xff] }
 0x484   :  { %2145 = vmatpush.msra.mxu0 %v2118_v28 }
 0x486   :  { %2146 = vmatpush.msra.mxu0 %v2117_v17 }
 0x488   :  { %2147 = vmatpush.msra.mxu0 %v2116_v27 }
 0x48a   :  { %2148 = vmatpush.msra.mxu0 %v2115_v57 }
 0x48c   :  { %2149 = vmatpush.msra.mxu0 %v2114_v33 }
 0x4e9   :  { %v1750_v34 = vpop.f32.mrf.mxu0  ;;  %v1770_v9 = vpop.f32.mrf.mxu1 }
 0x4ea   :  { %v1813_v61 = vadd.f32 %v1750_v34, %v196_v49  ;;  %v1814_v63 = vadd.f32 %v1770_v9, %v4041_v4 }
 0x4ec   :  { %v2270_v20 = vmul.f32 -1.442695, %v1813_v61  ;;  %v2271_v14 = vmul.f32 -1.442695, %v1814_v63 }
 0x4ee   :  { %2389 = vpow2.f32 %v2270_v20  ;;  %v4046_v20 = vld [vmem:[#allocation60_spill] sm:$0xff] }
 0x4ef   :  { %2391 = vpow2.f32 %v2271_v14  ;;  %v4047_v14 = vld [vmem:[#allocation45_spill] sm:$0xff] }
 0x4f0   :  { %v1810_v10 = vpop.f32.mrf.mxu3  ;;  %v1790_v35 = vpop.f32.mrf.mxu2 }
 0x4f1   :  { %v1816_v21 = vadd.f32 %v1810_v10, %v4042_v47  ;;  %v1815_v2 = vadd.f32 %v1790_v35, %v4043_v29 }
 0x4f3   :  { %v2272_v26 = vmul.f32 -1.442695, %v1816_v21 }
 0x4f4   :  { %v2390_v13 = vpop.eup %2389 }
 0x4f5   :  { %v2392_v44 = vpop.eup %2391  ;;  %v1820_v19 = vadd.f32 1.0, %v2390_v13  ;;  %2393 = vpow2.f32 %v2272_v26 }
 0x4f6   :  { %v1839_v46 = vadd.f32 1.0, %v2392_v44  ;;  %v3880_v44 = vld [vmem:[%s3907_s5] ss:$0 sm:$0xff]  ;;  %s2609_s5 = smov [#allocation16]  }
 0x4f7   :  { %2395 = vrcp.f32 %v1820_v19  ;;  %v1832_v60 = vand.u32 2147483648, %v1820_v19  ;;  %v1830_v3 = vand.u32 2147483647, %v1820_v19  ;;  %vm1826_vm11 = vweird.f32 %v1820_v19  ;;  %s2201_s27 = sshll.u32 %s2609_s5, 4  ;;  %s2202_s27 = int_to_ptr.vmem [resolvable:$true] %s2201_s27 }
 0x4f8   :  { %2397 = vrcp.f32 %v1839_v46  ;;  %v1851_v0 = vand.u32 2147483648, %v1839_v46  ;;  %v1849_v54 = vand.u32 2147483647, %v1839_v46  ;;  %vm1845_vm12 = vweird.f32 %v1839_v46 }
 0x4f9   :  { %v1833_v43 = vor.u32 1.1754944e-38, %v1832_v60  ;;  %vm1831_vm15 = vcmp.eq.f32.partialorder %v1830_v3, 8.507059e+37 }
 0x4fa   :  { %v1852_v56 = vor.u32 1.1754944e-38, %v1851_v0  ;;  %vm1850_vm0 = vcmp.eq.f32.partialorder %v1849_v54, 8.507059e+37 }
 0x4fb   :  { %v2394_v5 = vpop.eup %2393 }
 0x4fc   :  { %v1859_v36 = vadd.f32 1.0, %v2394_v5 }
 0x4fd   :  { %v2396_v1 = vpop.eup %2395 }
 0x4fe   :  { %v2398_v59 = vpop.eup %2397  ;;  %v1822_v37 = vmul.f32 %v2396_v1, %v1820_v19  ;;  %2399 = vrcp.f32 %v1859_v36  ;;  %vm1827_vm9 = vweird.f32 %v2396_v1  ;;  %v1871_v49 = vand.u32 2147483648, %v1859_v36 }
 0x4ff   :  { %v1841_v52 = vmul.f32 %v2398_v59, %v1839_v46  ;;  %2401 = vtanh.f32 %v1815_v2  ;;  %vm1846_vm10 = vweird.f32 %v2398_v59  ;;  %vm1828_vm13 = vmor %vm1826_vm11, %vm1827_vm9  ;;  %vm1865_vm2 = vweird.f32 %v1859_v36 }
 0x500   :  { %v1823_v53 = vsub.f32 1.0, %v1822_v37  ;;  %vm1847_vm14 = vmor %vm1845_vm12, %vm1846_vm10  ;;  %v1869_v34 = vand.u32 2147483647, %v1859_v36  ;;  %v1872_v55 = vor.u32 1.1754944e-38, %v1871_v49 }
 0x501   :  { %v1842_v62 = vsub.f32 1.0, %v1841_v52  ;;  %v4052_v52 = vld [vmem:[#allocation36_spill] sm:$0xff] }
 0x502   :  { %v1824_v32 = vmul.f32 %v2396_v1, %v1823_v53  ;;  %vm1870_vm4 = vcmp.eq.f32.partialorder %v1869_v34, 8.507059e+37 }
 0x503   :  { %v1843_v7 = vmul.f32 %v2398_v59, %v1842_v62 }
 0x504   :  { %v2400_v30 = vpop.eup %2399  ;;  %v1825_v16 = vadd.f32 %v2396_v1, %v1824_v32 }
 0x505   :  { %v1844_v38 = vadd.f32 %v2398_v59, %v1843_v7  ;;  %v1861_v39 = vmul.f32 %v2400_v30, %v1859_v36  ;;  %v2402_v12 = vpop.eup %2401  ;;  %vm1866_vm1 = vweird.f32 %v2400_v30 }
 0x506   :  { %v1829_v6 = vsel %vm1828_vm13, %v2396_v1, %v1825_v16  ;;  %vm1867_vm3 = vmor %vm1865_vm2, %vm1866_vm1 }
 0x507   :  { %v1834_v31 = vsel %vm1831_vm15, %v1833_v43, %v1829_v6  ;;  %v1848_v42 = vsel %vm1847_vm14, %v2398_v59, %v1844_v38  ;;  %v1862_v18 = vsub.f32 1.0, %v1861_v39 }
 0x508   :  { %v1853_v15 = vsel %vm1850_vm0, %v1852_v56, %v1848_v42  ;;  %v1876_v23 = vmul.f32 %v2402_v12, %v1834_v31 }
 0x509   :  { %v1875_v58 = vmul.f32 %v1853_v15, %v3818_v41  ;;  %v1863_v40 = vmul.f32 %v2400_v30, %v1862_v18  ;;  %v4044_v41 = vld [vmem:[#allocation43_spill] sm:$0xff] }
 0x50b   :  { %v3865_v48 = vadd.f32 %v1876_v23, %v1875_v58  ;;  %v1864_v8 = vadd.f32 %v2400_v30, %v1863_v40 }
 0x50d   :  { %2403 = vtanh.f32 %v3865_v48  ;;  %v1868_v9 = vsel %vm1867_vm3, %v2400_v30, %v1864_v8 }
 0x50e   :  { %v1873_v4 = vsel %vm1870_vm4, %v1872_v55, %v1868_v9 }
 0x513   :  { %v2404_v61 = vpop.eup %2403 }
 0x514   :  { %v1879_v63 = vmul.f32 %v2404_v61, %v1873_v4 }
 0x516   :  { %1967 = vmatmul.f32.vlgmr.msrb.gmra.mxu0 %v1879_v63  ;;  %1987 = vmatmul.f32.vlgmr.msrb.gmra.mxu1 %v1879_v63 }
 0x517   :  { %2007 = vmatmul.f32.vlgmr.msrb.gmra.mxu2 %v1879_v63  ;;  %2027 = vmatmul.f32.vlgmr.msrb.gmra.mxu3 %v1879_v63 }
 0x51e   :  { %2150 = vmatmul.f32.vlgmr.msra.gmra.mxu0 %v4044_v41 }
 0x526   :  { %2153 = vmatmul.f32.gmra.mxu0 %v4045_v11 }
 0x52e   :  { %2156 = vmatmul.f32.gmra.mxu0 %v4046_v20 }
 0x536   :  { %2159 = vmatmul.f32.gmra.mxu0 %v4047_v14 }
 0x53e   :  { %2162 = vmatmul.f32.gmra.mxu0 %v4048_v25 }
 0x546   :  { %2165 = vmatmul.f32.gmra.mxu0 %v3845_v45  ;;  %v4051_v45 = vld [vmem:[#allocation42_spill] sm:$0xff] }
 0x54e   :  { %2168 = vmatmul.f32.gmra.mxu0 %v1879_v63 }
 0x593   :  { %v1968_v10 = vpop.f32.mrf.mxu0  ;;  %v1988_v47 = vpop.f32.mrf.mxu1 }
 0x594   :  { %v2031_v21 = vadd.f32 %v1968_v10, %v199_v22  ;;  %v2032_v26 = vadd.f32 %v1988_v47, %v4050_v24 }
 0x596   :  { %v2273_v28 = vmul.f32 -1.442695, %v2031_v21  ;;  %v2274_v13 = vmul.f32 -1.442695, %v2032_v26 }
 0x598   :  { %2405 = vpow2.f32 %v2273_v28 }
 0x599   :  { %2407 = vpow2.f32 %v2274_v13 }
 0x59a   :  { %v2028_v19 = vpop.f32.mrf.mxu3  ;;  %v2008_v1 = vpop.f32.mrf.mxu2 }
 0x59b   :  { %v2034_v46 = vadd.f32 %v2028_v19, %v4051_v45  ;;  %v2151_v17 = vpop.f32.mrf.mxu0  ;;  %v2033_v53 = vadd.f32 %v2008_v1, %v4052_v52 }
 0x59c   :  { %v2152_v51 = vadd.f32 %v3880_v44, %v2151_v17 }
 0x59d   :  { %v2275_v27 = vmul.f32 -1.442695, %v2034_v46 }
 0x59e   :  { %v2406_v57 = vpop.eup %2405  ;;  %2175 = vst [vmem:[#allocation15] sm:$0xff] %v2152_v51 }
 0x59f   :  { %v2408_v35 = vpop.eup %2407  ;;  %v2038_v5 = vadd.f32 1.0, %v2406_v57  ;;  %2409 = vpow2.f32 %v2275_v27 }
 0x5a0   :  { %v2057_v33 = vadd.f32 1.0, %v2408_v35 }
 0x5a1   :  { %2411 = vrcp.f32 %v2038_v5  ;;  %v2048_v7 = vand.u32 2147483647, %v2038_v5  ;;  %v2050_v54 = vand.u32 2147483648, %v2038_v5  ;;  %vm2044_vm7 = vweird.f32 %v2038_v5 }
 0x5a2   :  { %2413 = vrcp.f32 %v2057_v33  ;;  %v2069_v16 = vand.u32 2147483648, %v2057_v33  ;;  %v2067_v56 = vand.u32 2147483647, %v2057_v33  ;;  %vm2063_vm8 = vweird.f32 %v2057_v33 }
 0x5a3   :  { %v2154_v36 = vpop.f32.mrf.mxu0  ;;  %v2051_v31 = vor.u32 1.1754944e-38, %v2050_v54  ;;  %vm2049_vm10 = vcmp.eq.f32.partialorder %v2048_v7, 8.507059e+37 }
 0x5a4   :  { %v2155_v29 = vadd.f32 %v3880_v44, %v2154_v36  ;;  %v2070_v15 = vor.u32 1.1754944e-38, %v2069_v16  ;;  %vm2068_vm12 = vcmp.eq.f32.partialorder %v2067_v56, 8.507059e+37 }
 0x5a5   :  { %v2410_v2 = vpop.eup %2409 }
 0x5a6   :  { %v2077_v59 = vadd.f32 1.0, %v2410_v2  ;;  %2176 = vst [vmem:[#allocation15 + $0x8] sm:$0xff] %v2155_v29 }
 0x5a7   :  { %v2412_v37 = vpop.eup %2411 }
 0x5a8   :  { %v2414_v62 = vpop.eup %2413  ;;  %v2040_v60 = vmul.f32 %v2412_v37, %v2038_v5  ;;  %2415 = vrcp.f32 %v2077_v59  ;;  %vm2045_vm5 = vweird.f32 %v2412_v37  ;;  %v2089_v20 = vand.u32 2147483648, %v2077_v59 }
 0x5a9   :  { %v2059_v0 = vmul.f32 %v2414_v62, %v2057_v33  ;;  %2417 = vtanh.f32 %v2033_v53  ;;  %vm2064_vm6 = vweird.f32 %v2414_v62  ;;  %vm2046_vm9 = vmor %vm2044_vm7, %vm2045_vm5  ;;  %vm2083_vm14 = vweird.f32 %v2077_v59 }
 0x5aa   :  { %v2041_v32 = vsub.f32 1.0, %v2040_v60  ;;  %vm2065_vm11 = vmor %vm2063_vm8, %vm2064_vm6  ;;  %v2087_v14 = vand.u32 2147483647, %v2077_v59  ;;  %v2090_v22 = vor.u32 1.1754944e-38, %v2089_v20 }
 0x5ab   :  { %v2060_v3 = vsub.f32 1.0, %v2059_v0  ;;  %v2157_v30 = vpop.f32.mrf.mxu0 }
 0x5ac   :  { %v2042_v43 = vmul.f32 %v2412_v37, %v2041_v32  ;;  %v2158_v38 = vadd.f32 %v3880_v44, %v2157_v30  ;;  %vm2088_vm0 = vcmp.eq.f32.partialorder %v2087_v14, 8.507059e+37 }
 0x5ad   :  { %v2061_v39 = vmul.f32 %v2414_v62, %v2060_v3 }
 0x5ae   :  { %v2416_v6 = vpop.eup %2415  ;;  %v2043_v12 = vadd.f32 %v2412_v37, %v2042_v43  ;;  %2177 = vst [vmem:[#allocation15 + $0x10] sm:$0xff] %v2158_v38 }
 0x5af   :  { %v2062_v42 = vadd.f32 %v2414_v62, %v2061_v39  ;;  %v2079_v18 = vmul.f32 %v2416_v6, %v2077_v59  ;;  %v2418_v58 = vpop.eup %2417  ;;  %vm2084_vm13 = vweird.f32 %v2416_v6 }
 0x5b0   :  { %v2047_v23 = vsel %vm2046_vm9, %v2412_v37, %v2043_v12  ;;  %vm2085_vm15 = vmor %vm2083_vm14, %vm2084_vm13 }
 0x5b1   :  { %v2052_v40 = vsel %vm2049_vm10, %v2051_v31, %v2047_v23  ;;  %v2066_v8 = vsel %vm2065_vm11, %v2414_v62, %v2062_v42  ;;  %v2080_v49 = vsub.f32 1.0, %v2079_v18 }
 0x5b2   :  { %v2094_v34 = vmul.f32 %v2418_v58, %v2052_v40  ;;  %v2071_v9 = vsel %vm2068_vm12, %v2070_v15, %v2066_v8 }
 0x5b3   :  { %v2160_v55 = vpop.f32.mrf.mxu0  ;;  %v2081_v61 = vmul.f32 %v2416_v6, %v2080_v49  ;;  %v2093_v4 = vmul.f32 %v2071_v9, %v3865_v48 }
 0x5b4   :  { %v2161_v63 = vadd.f32 %v3880_v44, %v2160_v55 }
 0x5b5   :  { %v2095_v41 = vadd.f32 %v2094_v34, %v2093_v4  ;;  %v2082_v11 = vadd.f32 %v2416_v6, %v2081_v61 }
 0x5b6   :  { %2178 = vst [vmem:[#allocation15 + $0x18] sm:$0xff] %v2161_v63 }
 0x5b7   :  { %2419 = vtanh.f32 %v2095_v41  ;;  %v2086_v25 = vsel %vm2085_vm15, %v2416_v6, %v2082_v11 }
 0x5b8   :  { %v2091_v21 = vsel %vm2088_vm0, %v2090_v22, %v2086_v25 }
 0x5bb   :  { %v2163_v50 = vpop.f32.mrf.mxu0 }
 0x5bc   :  { %v2164_v10 = vadd.f32 %v3880_v44, %v2163_v50 }
 0x5bd   :  { %v2420_v47 = vpop.eup %2419 }
 0x5be   :  { %2179 = vst [vmem:[#allocation15 + $0x20] sm:$0xff] %v2164_v10  ;;  %v2097_v48 = vmul.f32 %v2420_v47, %v2091_v21 }
 0x5c0   :  { %2171 = vmatmul.f32.gmra.mxu0 %v2097_v48  ;;  %2105 = vst [vmem:[#allocation16] sm:$0xff] %v2097_v48 }
 0x5c1   :  { %2206 = dma.vmem_to_hbm [thread:$0]  %s2202_s27, 128, %s2204_s30, [#allocation17]  }
 0x5c3   :  { %v2166_v24 = vpop.f32.mrf.mxu0 }
 0x5c4   :  { %v2167_v26 = vadd.f32 %v3880_v44, %v2166_v24 }
 0x5c6   :  { %2180 = vst [vmem:[#allocation15 + $0x28] sm:$0xff] %v2167_v26 }
 0x5cb   :  { %v2169_v28 = vpop.f32.mrf.mxu0 }
 0x5cc   :  { %v2170_v13 = vadd.f32 %v3880_v44, %v2169_v28 }
 0x5ce   :  { %2181 = vst [vmem:[#allocation15 + $0x30] sm:$0xff] %v2170_v13 }
 0x63d   :  { %v2172_v19 = vpop.f32.mrf.mxu0 }
 0x63e   :  { %v2173_v45 = vadd.f32 %v3880_v44, %v2172_v19 }
 0x640   :  { %2182 = vst [vmem:[#allocation15 + $0x38] sm:$0xff] %v2173_v45 }
 0x641   :  { %2195 = dma.vmem_to_hbm [thread:$0]  %s2188_s9, 1024, %s2190_s12, [#allocation8], %s2604_s19, %s2604_s19, %s2605_s20  }
 0x642   :  { %2595 = dma.done.wait [#allocation8], 1024  }
 0x643   :  { %2596 = vsyncadd [#allocation8], 4294966272 }
 0x644   :  { %2597 = dma.done.wait [#allocation17], 128  }
 0x645   :  { %2598 = vsyncadd [#allocation17], 4294967168 }
 0x646   :  { %2215 = vsyncpa [#allocation7], 1 }
 0x647   :  { %2216 = vsyncpa [#allocation10], 1 }
 0x648   :  { %2217 = vsyncpa [#allocation13], 1 }
 0x649   :  { %2218 = vsyncpa [#allocation8], 1 }
 0x64a   :  { %2219 = vsyncpa [#allocation17], 1 }

</bundles_post_ra>
